<compile_context>
chip_gen: v7x
topology: tpu7x:2x2x1
jax: 0.10.0
libtpu: 0.0.40
codegen_flags: <defaults>
</compile_context>

<pallas_src>
import functools

import jax
import jax.numpy as jnp
from jax.experimental import pallas as pl
from jax.experimental.pallas import tpu as pltpu


def _mha_kernel(q_ref, kt_ref, vt_ref, e_ref, mi_ref, mj_ref, wbd_ref,
                o_ref, num_acc, den_acc, *, ti, tj, num_heads, k_dim):
    """One grid step = (batch b, i-row block, j-key block); all heads in-kernel."""
    jb = pl.program_id(2)

    @pl.when(jb == 0)
    def _init():
        num_acc[...] = jnp.zeros_like(num_acc)
        den_acc[...] = jnp.zeros_like(den_acc)

    e_blk = e_ref[0]            # (ti*De, tj)  edge block, (i, d)-major, lane-dense in j
    kt = kt_ref[0]              # (H*K, tj)    pre-projected K^T block
    vt = vt_ref[0]              # (H*K, tj)    pre-projected V^T block
    q = q_ref[0]                # (ti, H*K)    pre-projected Q block (1/sqrt(K) folded in)
    mj = mj_ref[0]              # (1, tj)

    # Edge projection for every (head, row, channel) of this block with a single
    # MXU matmul against the all-heads block-diagonal We^T (rows ordered (h,i,k)).
    e2 = jnp.dot(wbd_ref[...], e_blk, preferred_element_type=jnp.float32)   # (H*ti*K, tj)
    e2 = e2.reshape(num_heads, ti, k_dim, tj)

    for head in range(num_heads):
        lo = head * k_dim
        qh = q[:, lo:lo + k_dim]                                            # (ti, K)
        kh = kt[lo:lo + k_dim, :]                                           # (K, tj)
        vh = vt[lo:lo + k_dim, :]                                           # (K, tj)
        raw = jnp.dot(qh, kh, preferred_element_type=jnp.float32)           # (ti, tj)
        s = jnp.exp(jnp.clip(raw[:, None, :] + e2[head], -5.0, 5.0)) * mj   # (ti, K, tj)
        # denominator reduced every step (XLU); numerator kept as lane partials (VMEM)
        den_acc[head] += jnp.sum(s, axis=-1)
        num_acc[head] += s * vh[None, :, :].astype(jnp.float32)

    @pl.when(jb == pl.num_programs(2) - 1)
    def _finalize():
        m_i = mi_ref[0]                                       # (ti, 1)
        for head in range(num_heads):
            num = jnp.sum(num_acc[head], axis=-1) * m_i       # (ti, K)
            den = jnp.maximum(den_acc[head] * m_i, 1e-6)
            o_ref[0, head] = (num / den).astype(o_ref.dtype)


def _pick_tiles(n_pad, de, num_heads, k_dim, esz):
    # ti targets a ti*De ~ 128 contraction for the block-diag edge matmul (fills
    # the v5e MXU; the fused all-heads M = ti*H*K is already >= 128 everywhere).
    target = max(1, 128 // max(1, de))
    ti = 8
    while ti * 2 <= min(target, 32):
        ti *= 2
    hk = num_heads * k_dim
    budget = 12 << 20                 # stay under the smallest (v5e) scoped-VMEM default
    tj = 128
    for cand in (512, 256, 128):
        if n_pad % cand:
            continue
        est = (num_heads * ti * k_dim * cand * 4                  # numerator partials (f32)
               + 2 * esz * cand * (ti * de + 2 * hk)              # e + K^T/V^T, double-buffered
               + 2 * esz * (num_heads * ti * k_dim) * (ti * de))  # block-diag We^T
        if est <= budget:
            tj = cand
            break
    return ti, tj


def multi_head_attention(h, e, mask, wq, wk, wv, we, *, num_heads, out_dim,
                         compute_dtype=jnp.bfloat16):
    """h: (B,N,Din), e: (B,N,N,De), mask: (B,N) or None; weights in (in, out) layout.

    Returns (B, N, num_heads*out_dim), matching the PyTorch forward.
    """
    B, N, _ = h.shape
    De = e.shape[-1]
    H, K = num_heads, out_dim
    HK = H * K
    out_dtype = h.dtype
    cd = jnp.dtype(compute_dtype) if compute_dtype is not None else jnp.dtype(h.dtype)
    esz = cd.itemsize

    if mask is None:
        mask = jnp.ones((B, N), jnp.float32)

    # Pad node count to a lane-aligned multiple of 128; padded rows/cols carry
    # mask=0 so they contribute nothing and are sliced off at the end.
    Np = ((N + 127) // 128) * 128
    pad = Np - N
    h_p = jnp.pad(h, ((0, 0), (0, pad), (0, 0)))
    e_p = jnp.pad(e, ((0, 0), (0, pad), (0, pad), (0, 0)))
    m_p = jnp.pad(mask.astype(jnp.float32), ((0, 0), (0, pad)))

    ti, tj = _pick_tiles(Np, De, H, K, esz)

    scaling = float(K) ** -0.5

    # Q/K/V projections hoisted to full-size XLA matmuls (done once, not per block).
    q = ((h_p @ wq) * scaling).astype(cd)                  # (B, Np, HK)
    kt = jnp.swapaxes(h_p @ wk, 1, 2).astype(cd)           # (B, HK, Np)
    vt = jnp.swapaxes(h_p @ wv, 1, 2).astype(cd)           # (B, HK, Np)

    # Edge tensor in (i, d)-major layout so each (ti*De, tj) block is lane-dense.
    e_t = jnp.swapaxes(e_p, 2, 3).reshape(B, Np * De, Np).astype(cd)

    mask_i = m_p.reshape(B, Np, 1)
    mask_j = m_p.reshape(B, 1, Np)

    # All-heads block-diagonal We^T: wbd[(h,a,k), (b,d)] = (a==b) * we[d, h*K+k]
    we_t = we.T.reshape(H, K, De)
    eye = jnp.eye(ti, dtype=we.dtype)
    wbd = jnp.einsum('ab,hkd->hakbd', eye, we_t).reshape(H * ti * K, ti * De).astype(cd)

    grid = (B, Np // ti, Np // tj)
    kernel = functools.partial(_mha_kernel, ti=ti, tj=tj, num_heads=H, k_dim=K)

    # Complete per-step VMEM estimate: double-buffered streams + f32 scratch + output.
    vmem_est = (
        H * ti * K * tj * 4 + H * ti * K * 4                        # scratch accumulators
        + 2 * esz * (ti * De * tj + 2 * HK * tj + ti * HK)          # e, K^T, V^T, Q blocks
        + 2 * esz * (H * ti * K) * (ti * De)                        # block-diag We^T
        + 2 * 4 * (ti + tj)                                         # masks
        + 2 * jnp.dtype(out_dtype).itemsize * ti * HK               # output block
        + (1 << 20))                                                # slack
    if vmem_est <= (14 << 20):          # fits the smallest (v5e) scoped default
        vmem_limit = None
    else:
        try:
            cap = int(0.75 * pltpu.get_tpu_info().vmem_capacity_bytes)
        except Exception:
            cap = 48 << 20              # safe on every generation (v7x has 64 MiB)
        vmem_limit = min(max(2 * vmem_est, 32 << 20), cap)

    out = pl.pallas_call(
        kernel,
        out_shape=jax.ShapeDtypeStruct((B, H, Np, K), out_dtype),
        grid_spec=pltpu.PrefetchScalarGridSpec(
            num_scalar_prefetch=0,
            grid=grid,
            in_specs=[
                pl.BlockSpec((1, ti, HK), lambda b, i, j: (b, i, 0)),          # Q
                pl.BlockSpec((1, HK, tj), lambda b, i, j: (b, 0, j)),          # K^T
                pl.BlockSpec((1, HK, tj), lambda b, i, j: (b, 0, j)),          # V^T
                pl.BlockSpec((1, ti * De, tj), lambda b, i, j: (b, i, j)),     # e, (i,d)-major
                pl.BlockSpec((1, ti, 1), lambda b, i, j: (b, i, 0)),           # mask_i
                pl.BlockSpec((1, 1, tj), lambda b, i, j: (b, 0, j)),           # mask_j
                pl.BlockSpec((H * ti * K, ti * De), lambda b, i, j: (0, 0)),   # blockdiag We^T
            ],
            out_specs=pl.BlockSpec((1, H, ti, K), lambda b, i, j: (b, 0, i, 0)),
            scratch_shapes=[
                pltpu.VMEM((H, ti, K, tj), jnp.float32),   # numerator per-lane partials
                pltpu.VMEM((H, ti, K), jnp.float32),       # denominator (reduced per step)
            ],
        ),
        compiler_params=pltpu.CompilerParams(
            dimension_semantics=("parallel", "parallel", "arbitrary"),
            vmem_limit_bytes=vmem_limit,
        ),
    )(q, kt, vt, e_t, mask_i, mask_j, wbd)

    # (B, H, Np, K) -> (B, N, H*K); the output tensor is tiny relative to e, so
    # this host-side relayout is negligible HBM traffic.
    out = out[:, :, :N, :]
    return jnp.transpose(out, (0, 2, 1, 3)).reshape(B, N, HK)


def reference_jax(h, e, mask, wq, wk, wv, we, *, num_heads, out_dim):
    """Pure-JAX transcription of the PyTorch forward (edge-features path)."""
    B, N, _ = h.shape
    Qh = (h @ wq).reshape(B, N, num_heads, out_dim)
    Kh = (h @ wk).reshape(B, N, num_heads, out_dim) * (float(out_dim) ** -0.5)
    Vh = (h @ wv).reshape(B, N, num_heads, out_dim)
    E2 = (e.reshape(B, N * N, -1) @ we).reshape(B, N, N, num_heads, out_dim)
    scores = jnp.einsum('bihk,bjhk->bijh', Qh, Kh)[..., None] + E2
    scores = jnp.exp(jnp.clip(scores, -5.0, 5.0))
    scores = scores * mask[:, :, None, None, None] * mask[:, None, :, None, None]
    denom = jnp.maximum(jnp.sum(scores, axis=2), 1e-6)          # (B, N, H, K)
    out = jnp.einsum('bijhk,bjhk->bihk', scores, Vh) / denom
    return out.reshape(B, N, num_heads * out_dim)


if __name__ == "__main__":
    # Small deterministic config: in_dim=16, in_dim_edges=8, out_dim=8, heads=4
    B, N = 2, 8
    in_dim, in_dim_edges = 16, 8
    num_heads, out_dim = 4, 8
    HK = num_heads * out_dim

    key = jax.random.PRNGKey(0)
    k0, k1, k2, k3, k4, k5, k6 = jax.random.split(key, 7)

    h = jax.random.normal(k0, (B, N, in_dim), jnp.float32)
    e = jax.random.normal(k1, (B, N, N, in_dim_edges), jnp.float32)
    mask = (jax.random.uniform(k2, (B, N)) > 0.2).astype(jnp.float32)

    wq = jax.random.normal(k3, (in_dim, HK), jnp.float32) * (in_dim ** -0.5)
    wk = jax.random.normal(k4, (in_dim, HK), jnp.float32) * (in_dim ** -0.5)
    wv = jax.random.normal(k5, (in_dim, HK), jnp.float32) * (in_dim ** -0.5)
    we = jax.random.normal(k6, (in_dim_edges, HK), jnp.float32) * (in_dim_edges ** -0.5)

    ref = reference_jax(h, e, mask, wq, wk, wv, we,
                        num_heads=num_heads, out_dim=out_dim)

    # exact (f32) path -- strict check
    out = multi_head_attention(h, e, mask, wq, wk, wv, we,
                               num_heads=num_heads, out_dim=out_dim,
                               compute_dtype=jnp.float32)
    out = jax.block_until_ready(out)
    assert out.shape == (B, N, HK), out.shape
    err = float(jnp.max(jnp.abs(out - ref)))
    assert jnp.allclose(out, ref, atol=2e-4, rtol=2e-4), err

    # default bf16 streaming path (f32 accumulation, exp, clamp, divide) -- loose check
    out_bf16 = multi_head_attention(h, e, mask, wq, wk, wv, we,
                                    num_heads=num_heads, out_dim=out_dim)
    out_bf16 = jax.block_until_ready(out_bf16)
    assert bool(jnp.all(jnp.isfinite(out_bf16)))
    err_bf16 = float(jnp.max(jnp.abs(out_bf16 - ref)))
    assert err_bf16 < 0.25, err_bf16

    print("KERNEL_OK")
</pallas_src>

<mosaic_0001>
module attributes {stable_mosaic.version = 11 : i64} {
  func.func @_mha_kernel(%arg0: i32, %arg1: i32, %arg2: i32, %arg3: memref<1x16x32xf32, #tpu.memory_space<vmem>>, %arg4: memref<1x32x128xf32, #tpu.memory_space<vmem>>, %arg5: memref<1x32x128xf32, #tpu.memory_space<vmem>>, %arg6: memref<1x128x128xf32, #tpu.memory_space<vmem>>, %arg7: memref<1x16x1xf32, #tpu.memory_space<vmem>>, %arg8: memref<1x1x128xf32, #tpu.memory_space<vmem>>, %arg9: memref<512x128xf32, #tpu.memory_space<vmem>>, %arg10: memref<1x4x16x8xf32, #tpu.memory_space<vmem>>, %arg11: memref<4x16x8x128xf32, #tpu.memory_space<vmem>>, %arg12: memref<4x16x8xf32, #tpu.memory_space<vmem>>) attributes {dimension_semantics = [#tpu.dimension_semantics<parallel>, #tpu.dimension_semantics<parallel>, #tpu.dimension_semantics<arbitrary>], iteration_bounds = array<i64: 2, 8, 1>, scalar_prefetch = 0 : i64, scratch_operands = 2 : i64, tpu.core_type = #tpu.core_type<tc>, window_params = [{transform_indices = @transform_0, window_bounds = array<i64: 1, 16, 32>}, {transform_indices = @transform_1, window_bounds = array<i64: 1, 32, 128>}, {transform_indices = @transform_2, window_bounds = array<i64: 1, 32, 128>}, {transform_indices = @transform_3, window_bounds = array<i64: 1, 128, 128>}, {transform_indices = @transform_4, window_bounds = array<i64: 1, 16, 1>}, {transform_indices = @transform_5, window_bounds = array<i64: 1, 1, 128>}, {pipeline_mode = #tpu.pipeline_mode<synchronous>, transform_indices = @transform_6, window_bounds = array<i64: 512, 128>}, {transform_indices = @transform_7, window_bounds = array<i64: 1, 4, 16, 8>}]} {
    %c0_i32 = arith.constant 0 : i32
    %0 = arith.cmpi eq, %arg2, %c0_i32 : i32
    %1 = arith.extui %0 : i1 to i32
    %c0_i32_0 = arith.constant 0 : i32
    %2 = arith.cmpi ne, %1, %c0_i32_0 : i32
    scf.if %2 {
      %cst_88 = arith.constant 0.000000e+00 : f32
      %151 = vector.broadcast %cst_88 : f32 to vector<4x16x8x128xf32>
      %c0_89 = arith.constant 0 : index
      %c0_90 = arith.constant 0 : index
      %c0_91 = arith.constant 0 : index
      %c0_92 = arith.constant 0 : index
      %152 = vector.load %arg11[%c0_89, %c0_90, %c0_91, %c0_92] : memref<4x16x8x128xf32, #tpu.memory_space<vmem>>, vector<4x16x8x128xf32>
      tpu.vector_store %arg11[%c0_89, %c0_90, %c0_91, %c0_92], %151 {strides = array<i32>} : memref<4x16x8x128xf32, #tpu.memory_space<vmem>>, vector<4x16x8x128xf32>,
      %cst_93 = arith.constant 0.000000e+00 : f32
      %153 = vector.broadcast %cst_93 : f32 to vector<4x16x8xf32>
      %c0_94 = arith.constant 0 : index
      %c0_95 = arith.constant 0 : index
      %c0_96 = arith.constant 0 : index
      %154 = vector.load %arg12[%c0_94, %c0_95, %c0_96] : memref<4x16x8xf32, #tpu.memory_space<vmem>>, vector<4x16x8xf32>
      tpu.vector_store %arg12[%c0_94, %c0_95, %c0_96], %153 {strides = array<i32>} : memref<4x16x8xf32, #tpu.memory_space<vmem>>, vector<4x16x8xf32>,
    } else {
    }
    %c0 = arith.constant 0 : index
    %c0_1 = arith.constant 0 : index
    %c0_2 = arith.constant 0 : index
    %3 = vector.load %arg6[%c0, %c0_1, %c0_2] : memref<1x128x128xf32, #tpu.memory_space<vmem>>, vector<1x128x128xf32>
    %4 = vector.shape_cast %3 : vector<1x128x128xf32> to vector<128x128xf32>
    %c0_3 = arith.constant 0 : index
    %c0_4 = arith.constant 0 : index
    %c0_5 = arith.constant 0 : index
    %5 = vector.load %arg4[%c0_3, %c0_4, %c0_5] : memref<1x32x128xf32, #tpu.memory_space<vmem>>, vector<1x32x128xf32>
    %6 = vector.shape_cast %5 : vector<1x32x128xf32> to vector<32x128xf32>
    %c0_6 = arith.constant 0 : index
    %c0_7 = arith.constant 0 : index
    %c0_8 = arith.constant 0 : index
    %7 = vector.load %arg5[%c0_6, %c0_7, %c0_8] : memref<1x32x128xf32, #tpu.memory_space<vmem>>, vector<1x32x128xf32>
    %8 = vector.shape_cast %7 : vector<1x32x128xf32> to vector<32x128xf32>
    %c0_9 = arith.constant 0 : index
    %c0_10 = arith.constant 0 : index
    %c0_11 = arith.constant 0 : index
    %9 = vector.load %arg3[%c0_9, %c0_10, %c0_11] : memref<1x16x32xf32, #tpu.memory_space<vmem>>, vector<1x16x32xf32>
    %10 = vector.shape_cast %9 : vector<1x16x32xf32> to vector<16x32xf32>
    %c0_12 = arith.constant 0 : index
    %c0_13 = arith.constant 0 : index
    %c0_14 = arith.constant 0 : index
    %11 = vector.load %arg8[%c0_12, %c0_13, %c0_14] : memref<1x1x128xf32, #tpu.memory_space<vmem>>, vector<1x1x128xf32>
    %12 = vector.shape_cast %11 : vector<1x1x128xf32> to vector<1x128xf32>
    %c0_15 = arith.constant 0 : index
    %c0_16 = arith.constant 0 : index
    %13 = vector.load %arg9[%c0_15, %c0_16] : memref<512x128xf32, #tpu.memory_space<vmem>>, vector<512x128xf32>
    %cst = arith.constant dense<0.000000e+00> : vector<512x128xf32>
    %14 = tpu.matmul %13, %4, %cst {dimension_numbers = #tpu.dot_dimension_numbers<[1], [0], [0], [1], [0, 0, 1, 1], [], []>} : vector<512x128xf32>, vector<128x128xf32>, vector<512x128xf32> -> vector<512x128xf32>
    %15 = vector.shape_cast %14 : vector<512x128xf32> to vector<4x16x8x128xf32>
    %16 = vector.extract_strided_slice %10 {offsets = [0, 0], sizes = [16, 8], strides = [1, 1]} : vector<16x32xf32> to vector<16x8xf32>
    %17 = vector.extract_strided_slice %6 {offsets = [0, 0], sizes = [8, 128], strides = [1, 1]} : vector<32x128xf32> to vector<8x128xf32>
    %18 = vector.extract_strided_slice %8 {offsets = [0, 0], sizes = [8, 128], strides = [1, 1]} : vector<32x128xf32> to vector<8x128xf32>
    %cst_17 = arith.constant dense<0.000000e+00> : vector<16x128xf32>
    %19 = tpu.matmul %16, %17, %cst_17 {dimension_numbers = #tpu.dot_dimension_numbers<[1], [0], [0], [1], [0, 0, 1, 1], [], []>} : vector<16x8xf32>, vector<8x128xf32>, vector<16x128xf32> -> vector<16x128xf32>
    %20 = vector.shape_cast %19 : vector<16x128xf32> to vector<16x1x128xf32>
    %21 = vector.extract_strided_slice %15 {offsets = [0, 0, 0, 0], sizes = [1, 16, 8, 128], strides = [1, 1, 1, 1]} : vector<4x16x8x128xf32> to vector<1x16x8x128xf32>
    %22 = vector.shape_cast %21 : vector<1x16x8x128xf32> to vector<16x8x128xf32>
    %23 = vector.broadcast %20 : vector<16x1x128xf32> to vector<16x8x128xf32>
    %24 = arith.addf %23, %22 : vector<16x8x128xf32>
    %cst_18 = arith.constant -5.000000e+00 : f32
    %cst_19 = arith.constant 5.000000e+00 : f32
    %25 = vector.broadcast %cst_18 : f32 to vector<16x8x128xf32>
    %26 = arith.maximumf %25, %24 : vector<16x8x128xf32>
    %27 = vector.broadcast %cst_19 : f32 to vector<16x8x128xf32>
    %28 = arith.minimumf %27, %26 : vector<16x8x128xf32>
    %29 = math.exp %28 : vector<16x8x128xf32>
    %30 = vector.shape_cast %12 : vector<1x128xf32> to vector<1x1x128xf32>
    %31 = vector.broadcast %30 : vector<1x1x128xf32> to vector<16x8x128xf32>
    %32 = arith.mulf %29, %31 : vector<16x8x128xf32>
    %c0_20 = arith.constant 0 : index
    %c0_21 = arith.constant 0 : index
    %c0_22 = arith.constant 0 : index
    %33 = vector.load %arg12[%c0_20, %c0_21, %c0_22] : memref<4x16x8xf32, #tpu.memory_space<vmem>>, vector<1x16x8xf32>
    %34 = vector.shape_cast %33 : vector<1x16x8xf32> to vector<16x8xf32>
    %cst_23 = arith.constant dense<0.000000e+00> : vector<16x8xf32>
    %35 = vector.multi_reduction <add>, %32, %cst_23 [2] : vector<16x8x128xf32> to vector<16x8xf32>
    %36 = arith.addf %34, %35 : vector<16x8xf32>
    %c0_24 = arith.constant 0 : index
    %c0_25 = arith.constant 0 : index
    %c0_26 = arith.constant 0 : index
    %37 = vector.load %arg12[%c0_24, %c0_25, %c0_26] : memref<4x16x8xf32, #tpu.memory_space<vmem>>, vector<1x16x8xf32>
    %38 = vector.shape_cast %37 : vector<1x16x8xf32> to vector<16x8xf32>
    %39 = vector.shape_cast %36 : vector<16x8xf32> to vector<1x16x8xf32>
    tpu.vector_store %arg12[%c0_24, %c0_25, %c0_26], %39 {strides = array<i32>} : memref<4x16x8xf32, #tpu.memory_space<vmem>>, vector<1x16x8xf32>,
    %c0_27 = arith.constant 0 : index
    %c0_28 = arith.constant 0 : index
    %c0_29 = arith.constant 0 : index
    %c0_30 = arith.constant 0 : index
    %40 = vector.load %arg11[%c0_27, %c0_28, %c0_29, %c0_30] : memref<4x16x8x128xf32, #tpu.memory_space<vmem>>, vector<1x16x8x128xf32>
    %41 = vector.shape_cast %40 : vector<1x16x8x128xf32> to vector<16x8x128xf32>
    %42 = vector.shape_cast %18 : vector<8x128xf32> to vector<1x8x128xf32>
    %43 = vector.broadcast %42 : vector<1x8x128xf32> to vector<16x8x128xf32>
    %44 = arith.mulf %32, %43 : vector<16x8x128xf32>
    %45 = arith.addf %41, %44 : vector<16x8x128xf32>
    %c0_31 = arith.constant 0 : index
    %c0_32 = arith.constant 0 : index
    %c0_33 = arith.constant 0 : index
    %c0_34 = arith.constant 0 : index
    %46 = vector.load %arg11[%c0_31, %c0_32, %c0_33, %c0_34] : memref<4x16x8x128xf32, #tpu.memory_space<vmem>>, vector<1x16x8x128xf32>
    %47 = vector.shape_cast %46 : vector<1x16x8x128xf32> to vector<16x8x128xf32>
    %48 = vector.shape_cast %45 : vector<16x8x128xf32> to vector<1x16x8x128xf32>
    tpu.vector_store %arg11[%c0_31, %c0_32, %c0_33, %c0_34], %48 {strides = array<i32>} : memref<4x16x8x128xf32, #tpu.memory_space<vmem>>, vector<1x16x8x128xf32>,
    %49 = vector.extract_strided_slice %10 {offsets = [0, 8], sizes = [16, 8], strides = [1, 1]} : vector<16x32xf32> to vector<16x8xf32>
    %50 = vector.extract_strided_slice %6 {offsets = [8, 0], sizes = [8, 128], strides = [1, 1]} : vector<32x128xf32> to vector<8x128xf32>
    %51 = vector.extract_strided_slice %8 {offsets = [8, 0], sizes = [8, 128], strides = [1, 1]} : vector<32x128xf32> to vector<8x128xf32>
    %cst_35 = arith.constant dense<0.000000e+00> : vector<16x128xf32>
    %52 = tpu.matmul %49, %50, %cst_35 {dimension_numbers = #tpu.dot_dimension_numbers<[1], [0], [0], [1], [0, 0, 1, 1], [], []>} : vector<16x8xf32>, vector<8x128xf32>, vector<16x128xf32> -> vector<16x128xf32>
    %53 = vector.shape_cast %52 : vector<16x128xf32> to vector<16x1x128xf32>
    %54 = vector.extract_strided_slice %15 {offsets = [1, 0, 0, 0], sizes = [1, 16, 8, 128], strides = [1, 1, 1, 1]} : vector<4x16x8x128xf32> to vector<1x16x8x128xf32>
    %55 = vector.shape_cast %54 : vector<1x16x8x128xf32> to vector<16x8x128xf32>
    %56 = vector.broadcast %53 : vector<16x1x128xf32> to vector<16x8x128xf32>
    %57 = arith.addf %56, %55 : vector<16x8x128xf32>
    %cst_36 = arith.constant -5.000000e+00 : f32
    %cst_37 = arith.constant 5.000000e+00 : f32
    %58 = vector.broadcast %cst_36 : f32 to vector<16x8x128xf32>
    %59 = arith.maximumf %58, %57 : vector<16x8x128xf32>
    %60 = vector.broadcast %cst_37 : f32 to vector<16x8x128xf32>
    %61 = arith.minimumf %60, %59 : vector<16x8x128xf32>
    %62 = math.exp %61 : vector<16x8x128xf32>
    %63 = vector.shape_cast %12 : vector<1x128xf32> to vector<1x1x128xf32>
    %64 = vector.broadcast %63 : vector<1x1x128xf32> to vector<16x8x128xf32>
    %65 = arith.mulf %62, %64 : vector<16x8x128xf32>
    %c1 = arith.constant 1 : index
    %c0_38 = arith.constant 0 : index
    %c0_39 = arith.constant 0 : index
    %66 = vector.load %arg12[%c1, %c0_38, %c0_39] : memref<4x16x8xf32, #tpu.memory_space<vmem>>, vector<1x16x8xf32>
    %67 = vector.shape_cast %66 : vector<1x16x8xf32> to vector<16x8xf32>
    %cst_40 = arith.constant dense<0.000000e+00> : vector<16x8xf32>
    %68 = vector.multi_reduction <add>, %65, %cst_40 [2] : vector<16x8x128xf32> to vector<16x8xf32>
    %69 = arith.addf %67, %68 : vector<16x8xf32>
    %c1_41 = arith.constant 1 : index
    %c0_42 = arith.constant 0 : index
    %c0_43 = arith.constant 0 : index
    %70 = vector.load %arg12[%c1_41, %c0_42, %c0_43] : memref<4x16x8xf32, #tpu.memory_space<vmem>>, vector<1x16x8xf32>
    %71 = vector.shape_cast %70 : vector<1x16x8xf32> to vector<16x8xf32>
    %72 = vector.shape_cast %69 : vector<16x8xf32> to vector<1x16x8xf32>
    tpu.vector_store %arg12[%c1_41, %c0_42, %c0_43], %72 {strides = array<i32>} : memref<4x16x8xf32, #tpu.memory_space<vmem>>, vector<1x16x8xf32>,
    %c1_44 = arith.constant 1 : index
    %c0_45 = arith.constant 0 : index
    %c0_46 = arith.constant 0 : index
    %c0_47 = arith.constant 0 : index
    %73 = vector.load %arg11[%c1_44, %c0_45, %c0_46, %c0_47] : memref<4x16x8x128xf32, #tpu.memory_space<vmem>>, vector<1x16x8x128xf32>
    %74 = vector.shape_cast %73 : vector<1x16x8x128xf32> to vector<16x8x128xf32>
    %75 = vector.shape_cast %51 : vector<8x128xf32> to vector<1x8x128xf32>
    %76 = vector.broadcast %75 : vector<1x8x128xf32> to vector<16x8x128xf32>
    %77 = arith.mulf %65, %76 : vector<16x8x128xf32>
    %78 = arith.addf %74, %77 : vector<16x8x128xf32>
    %c1_48 = arith.constant 1 : index
    %c0_49 = arith.constant 0 : index
    %c0_50 = arith.constant 0 : index
    %c0_51 = arith.constant 0 : index
    %79 = vector.load %arg11[%c1_48, %c0_49, %c0_50, %c0_51] : memref<4x16x8x128xf32, #tpu.memory_space<vmem>>, vector<1x16x8x128xf32>
    %80 = vector.shape_cast %79 : vector<1x16x8x128xf32> to vector<16x8x128xf32>
    %81 = vector.shape_cast %78 : vector<16x8x128xf32> to vector<1x16x8x128xf32>
    tpu.vector_store %arg11[%c1_48, %c0_49, %c0_50, %c0_51], %81 {strides = array<i32>} : memref<4x16x8x128xf32, #tpu.memory_space<vmem>>, vector<1x16x8x128xf32>,
    %82 = vector.extract_strided_slice %10 {offsets = [0, 16], sizes = [16, 8], strides = [1, 1]} : vector<16x32xf32> to vector<16x8xf32>
    %83 = vector.extract_strided_slice %6 {offsets = [16, 0], sizes = [8, 128], strides = [1, 1]} : vector<32x128xf32> to vector<8x128xf32>
    %84 = vector.extract_strided_slice %8 {offsets = [16, 0], sizes = [8, 128], strides = [1, 1]} : vector<32x128xf32> to vector<8x128xf32>
    %cst_52 = arith.constant dense<0.000000e+00> : vector<16x128xf32>
    %85 = tpu.matmul %82, %83, %cst_52 {dimension_numbers = #tpu.dot_dimension_numbers<[1], [0], [0], [1], [0, 0, 1, 1], [], []>} : vector<16x8xf32>, vector<8x128xf32>, vector<16x128xf32> -> vector<16x128xf32>
    %86 = vector.shape_cast %85 : vector<16x128xf32> to vector<16x1x128xf32>
    %87 = vector.extract_strided_slice %15 {offsets = [2, 0, 0, 0], sizes = [1, 16, 8, 128], strides = [1, 1, 1, 1]} : vector<4x16x8x128xf32> to vector<1x16x8x128xf32>
    %88 = vector.shape_cast %87 : vector<1x16x8x128xf32> to vector<16x8x128xf32>
    %89 = vector.broadcast %86 : vector<16x1x128xf32> to vector<16x8x128xf32>
    %90 = arith.addf %89, %88 : vector<16x8x128xf32>
    %cst_53 = arith.constant -5.000000e+00 : f32
    %cst_54 = arith.constant 5.000000e+00 : f32
    %91 = vector.broadcast %cst_53 : f32 to vector<16x8x128xf32>
    %92 = arith.maximumf %91, %90 : vector<16x8x128xf32>
    %93 = vector.broadcast %cst_54 : f32 to vector<16x8x128xf32>
    %94 = arith.minimumf %93, %92 : vector<16x8x128xf32>
    %95 = math.exp %94 : vector<16x8x128xf32>
    %96 = vector.shape_cast %12 : vector<1x128xf32> to vector<1x1x128xf32>
    %97 = vector.broadcast %96 : vector<1x1x128xf32> to vector<16x8x128xf32>
    %98 = arith.mulf %95, %97 : vector<16x8x128xf32>
    %c2 = arith.constant 2 : index
    %c0_55 = arith.constant 0 : index
    %c0_56 = arith.constant 0 : index
    %99 = vector.load %arg12[%c2, %c0_55, %c0_56] : memref<4x16x8xf32, #tpu.memory_space<vmem>>, vector<1x16x8xf32>
    %100 = vector.shape_cast %99 : vector<1x16x8xf32> to vector<16x8xf32>
    %cst_57 = arith.constant dense<0.000000e+00> : vector<16x8xf32>
    %101 = vector.multi_reduction <add>, %98, %cst_57 [2] : vector<16x8x128xf32> to vector<16x8xf32>
    %102 = arith.addf %100, %101 : vector<16x8xf32>
    %c2_58 = arith.constant 2 : index
    %c0_59 = arith.constant 0 : index
    %c0_60 = arith.constant 0 : index
    %103 = vector.load %arg12[%c2_58, %c0_59, %c0_60] : memref<4x16x8xf32, #tpu.memory_space<vmem>>, vector<1x16x8xf32>
    %104 = vector.shape_cast %103 : vector<1x16x8xf32> to vector<16x8xf32>
    %105 = vector.shape_cast %102 : vector<16x8xf32> to vector<1x16x8xf32>
    tpu.vector_store %arg12[%c2_58, %c0_59, %c0_60], %105 {strides = array<i32>} : memref<4x16x8xf32, #tpu.memory_space<vmem>>, vector<1x16x8xf32>,
    %c2_61 = arith.constant 2 : index
    %c0_62 = arith.constant 0 : index
    %c0_63 = arith.constant 0 : index
    %c0_64 = arith.constant 0 : index
    %106 = vector.load %arg11[%c2_61, %c0_62, %c0_63, %c0_64] : memref<4x16x8x128xf32, #tpu.memory_space<vmem>>, vector<1x16x8x128xf32>
    %107 = vector.shape_cast %106 : vector<1x16x8x128xf32> to vector<16x8x128xf32>
    %108 = vector.shape_cast %84 : vector<8x128xf32> to vector<1x8x128xf32>
    %109 = vector.broadcast %108 : vector<1x8x128xf32> to vector<16x8x128xf32>
    %110 = arith.mulf %98, %109 : vector<16x8x128xf32>
    %111 = arith.addf %107, %110 : vector<16x8x128xf32>
    %c2_65 = arith.constant 2 : index
    %c0_66 = arith.constant 0 : index
    %c0_67 = arith.constant 0 : index
    %c0_68 = arith.constant 0 : index
    %112 = vector.load %arg11[%c2_65, %c0_66, %c0_67, %c0_68] : memref<4x16x8x128xf32, #tpu.memory_space<vmem>>, vector<1x16x8x128xf32>
    %113 = vector.shape_cast %112 : vector<1x16x8x128xf32> to vector<16x8x128xf32>
    %114 = vector.shape_cast %111 : vector<16x8x128xf32> to vector<1x16x8x128xf32>
    tpu.vector_store %arg11[%c2_65, %c0_66, %c0_67, %c0_68], %114 {strides = array<i32>} : memref<4x16x8x128xf32, #tpu.memory_space<vmem>>, vector<1x16x8x128xf32>,
    %115 = vector.extract_strided_slice %10 {offsets = [0, 24], sizes = [16, 8], strides = [1, 1]} : vector<16x32xf32> to vector<16x8xf32>
    %116 = vector.extract_strided_slice %6 {offsets = [24, 0], sizes = [8, 128], strides = [1, 1]} : vector<32x128xf32> to vector<8x128xf32>
    %117 = vector.extract_strided_slice %8 {offsets = [24, 0], sizes = [8, 128], strides = [1, 1]} : vector<32x128xf32> to vector<8x128xf32>
    %cst_69 = arith.constant dense<0.000000e+00> : vector<16x128xf32>
    %118 = tpu.matmul %115, %116, %cst_69 {dimension_numbers = #tpu.dot_dimension_numbers<[1], [0], [0], [1], [0, 0, 1, 1], [], []>} : vector<16x8xf32>, vector<8x128xf32>, vector<16x128xf32> -> vector<16x128xf32>
    %119 = vector.shape_cast %118 : vector<16x128xf32> to vector<16x1x128xf32>
    %120 = vector.extract_strided_slice %15 {offsets = [3, 0, 0, 0], sizes = [1, 16, 8, 128], strides = [1, 1, 1, 1]} : vector<4x16x8x128xf32> to vector<1x16x8x128xf32>
    %121 = vector.shape_cast %120 : vector<1x16x8x128xf32> to vector<16x8x128xf32>
    %122 = vector.broadcast %119 : vector<16x1x128xf32> to vector<16x8x128xf32>
    %123 = arith.addf %122, %121 : vector<16x8x128xf32>
    %cst_70 = arith.constant -5.000000e+00 : f32
    %cst_71 = arith.constant 5.000000e+00 : f32
    %124 = vector.broadcast %cst_70 : f32 to vector<16x8x128xf32>
    %125 = arith.maximumf %124, %123 : vector<16x8x128xf32>
    %126 = vector.broadcast %cst_71 : f32 to vector<16x8x128xf32>
    %127 = arith.minimumf %126, %125 : vector<16x8x128xf32>
    %128 = math.exp %127 : vector<16x8x128xf32>
    %129 = vector.shape_cast %12 : vector<1x128xf32> to vector<1x1x128xf32>
    %130 = vector.broadcast %129 : vector<1x1x128xf32> to vector<16x8x128xf32>
    %131 = arith.mulf %128, %130 : vector<16x8x128xf32>
    %c3 = arith.constant 3 : index
    %c0_72 = arith.constant 0 : index
    %c0_73 = arith.constant 0 : index
    %132 = vector.load %arg12[%c3, %c0_72, %c0_73] : memref<4x16x8xf32, #tpu.memory_space<vmem>>, vector<1x16x8xf32>
    %133 = vector.shape_cast %132 : vector<1x16x8xf32> to vector<16x8xf32>
    %cst_74 = arith.constant dense<0.000000e+00> : vector<16x8xf32>
    %134 = vector.multi_reduction <add>, %131, %cst_74 [2] : vector<16x8x128xf32> to vector<16x8xf32>
    %135 = arith.addf %133, %134 : vector<16x8xf32>
    %c3_75 = arith.constant 3 : index
    %c0_76 = arith.constant 0 : index
    %c0_77 = arith.constant 0 : index
    %136 = vector.load %arg12[%c3_75, %c0_76, %c0_77] : memref<4x16x8xf32, #tpu.memory_space<vmem>>, vector<1x16x8xf32>
    %137 = vector.shape_cast %136 : vector<1x16x8xf32> to vector<16x8xf32>
    %138 = vector.shape_cast %135 : vector<16x8xf32> to vector<1x16x8xf32>
    tpu.vector_store %arg12[%c3_75, %c0_76, %c0_77], %138 {strides = array<i32>} : memref<4x16x8xf32, #tpu.memory_space<vmem>>, vector<1x16x8xf32>,
    %c3_78 = arith.constant 3 : index
    %c0_79 = arith.constant 0 : index
    %c0_80 = arith.constant 0 : index
    %c0_81 = arith.constant 0 : index
    %139 = vector.load %arg11[%c3_78, %c0_79, %c0_80, %c0_81] : memref<4x16x8x128xf32, #tpu.memory_space<vmem>>, vector<1x16x8x128xf32>
    %140 = vector.shape_cast %139 : vector<1x16x8x128xf32> to vector<16x8x128xf32>
    %141 = vector.shape_cast %117 : vector<8x128xf32> to vector<1x8x128xf32>
    %142 = vector.broadcast %141 : vector<1x8x128xf32> to vector<16x8x128xf32>
    %143 = arith.mulf %131, %142 : vector<16x8x128xf32>
    %144 = arith.addf %140, %143 : vector<16x8x128xf32>
    %c3_82 = arith.constant 3 : index
    %c0_83 = arith.constant 0 : index
    %c0_84 = arith.constant 0 : index
    %c0_85 = arith.constant 0 : index
    %145 = vector.load %arg11[%c3_82, %c0_83, %c0_84, %c0_85] : memref<4x16x8x128xf32, #tpu.memory_space<vmem>>, vector<1x16x8x128xf32>
    %146 = vector.shape_cast %145 : vector<1x16x8x128xf32> to vector<16x8x128xf32>
    %147 = vector.shape_cast %144 : vector<16x8x128xf32> to vector<1x16x8x128xf32>
    tpu.vector_store %arg11[%c3_82, %c0_83, %c0_84, %c0_85], %147 {strides = array<i32>} : memref<4x16x8x128xf32, #tpu.memory_space<vmem>>, vector<1x16x8x128xf32>,
    %c0_i32_86 = arith.constant 0 : i32
    %148 = arith.cmpi eq, %arg2, %c0_i32_86 : i32
    %149 = arith.extui %148 : i1 to i32
    %c0_i32_87 = arith.constant 0 : i32
    %150 = arith.cmpi ne, %149, %c0_i32_87 : i32
    scf.if %150 {
      %c0_88 = arith.constant 0 : index
      %c0_89 = arith.constant 0 : index
      %c0_90 = arith.constant 0 : index
      %151 = vector.load %arg7[%c0_88, %c0_89, %c0_90] : memref<1x16x1xf32, #tpu.memory_space<vmem>>, vector<1x16x1xf32>
      %152 = vector.shape_cast %151 : vector<1x16x1xf32> to vector<16x1xf32>
      %c0_91 = arith.constant 0 : index
      %c0_92 = arith.constant 0 : index
      %c0_93 = arith.constant 0 : index
      %c0_94 = arith.constant 0 : index
      %153 = vector.load %arg11[%c0_91, %c0_92, %c0_93, %c0_94] : memref<4x16x8x128xf32, #tpu.memory_space<vmem>>, vector<1x16x8x128xf32>
      %154 = vector.shape_cast %153 : vector<1x16x8x128xf32> to vector<16x8x128xf32>
      %cst_95 = arith.constant dense<0.000000e+00> : vector<16x8xf32>
      %155 = vector.multi_reduction <add>, %154, %cst_95 [2] : vector<16x8x128xf32> to vector<16x8xf32>
      %156 = vector.broadcast %152 : vector<16x1xf32> to vector<16x8xf32>
      %157 = arith.mulf %155, %156 : vector<16x8xf32>
      %c0_96 = arith.constant 0 : index
      %c0_97 = arith.constant 0 : index
      %c0_98 = arith.constant 0 : index
      %158 = vector.load %arg12[%c0_96, %c0_97, %c0_98] : memref<4x16x8xf32, #tpu.memory_space<vmem>>, vector<1x16x8xf32>
      %159 = vector.shape_cast %158 : vector<1x16x8xf32> to vector<16x8xf32>
      %160 = vector.broadcast %152 : vector<16x1xf32> to vector<16x8xf32>
      %161 = arith.mulf %159, %160 : vector<16x8xf32>
      %cst_99 = arith.constant 9.99999997E-7 : f32
      %162 = vector.broadcast %cst_99 : f32 to vector<16x8xf32>
      %163 = arith.maximumf %161, %162 : vector<16x8xf32>
      %164 = arith.divf %157, %163 : vector<16x8xf32>
      %c0_100 = arith.constant 0 : index
      %c0_101 = arith.constant 0 : index
      %c0_102 = arith.constant 0 : index
      %c0_103 = arith.constant 0 : index
      %165 = vector.load %arg10[%c0_100, %c0_101, %c0_102, %c0_103] : memref<1x4x16x8xf32, #tpu.memory_space<vmem>>, vector<1x1x16x8xf32>
      %166 = vector.shape_cast %165 : vector<1x1x16x8xf32> to vector<16x8xf32>
      %167 = vector.shape_cast %164 : vector<16x8xf32> to vector<1x1x16x8xf32>
      tpu.vector_store %arg10[%c0_100, %c0_101, %c0_102, %c0_103], %167 {strides = array<i32>} : memref<1x4x16x8xf32, #tpu.memory_space<vmem>>, vector<1x1x16x8xf32>,
      %c1_104 = arith.constant 1 : index
      %c0_105 = arith.constant 0 : index
      %c0_106 = arith.constant 0 : index
      %c0_107 = arith.constant 0 : index
      %168 = vector.load %arg11[%c1_104, %c0_105, %c0_106, %c0_107] : memref<4x16x8x128xf32, #tpu.memory_space<vmem>>, vector<1x16x8x128xf32>
      %169 = vector.shape_cast %168 : vector<1x16x8x128xf32> to vector<16x8x128xf32>
      %cst_108 = arith.constant dense<0.000000e+00> : vector<16x8xf32>
      %170 = vector.multi_reduction <add>, %169, %cst_108 [2] : vector<16x8x128xf32> to vector<16x8xf32>
      %171 = vector.broadcast %152 : vector<16x1xf32> to vector<16x8xf32>
      %172 = arith.mulf %170, %171 : vector<16x8xf32>
      %c1_109 = arith.constant 1 : index
      %c0_110 = arith.constant 0 : index
      %c0_111 = arith.constant 0 : index
      %173 = vector.load %arg12[%c1_109, %c0_110, %c0_111] : memref<4x16x8xf32, #tpu.memory_space<vmem>>, vector<1x16x8xf32>
      %174 = vector.shape_cast %173 : vector<1x16x8xf32> to vector<16x8xf32>
      %175 = vector.broadcast %152 : vector<16x1xf32> to vector<16x8xf32>
      %176 = arith.mulf %174, %175 : vector<16x8xf32>
      %cst_112 = arith.constant 9.99999997E-7 : f32
      %177 = vector.broadcast %cst_112 : f32 to vector<16x8xf32>
      %178 = arith.maximumf %176, %177 : vector<16x8xf32>
      %179 = arith.divf %172, %178 : vector<16x8xf32>
      %c0_113 = arith.constant 0 : index
      %c1_114 = arith.constant 1 : index
      %c0_115 = arith.constant 0 : index
      %c0_116 = arith.constant 0 : index
      %180 = vector.load %arg10[%c0_113, %c1_114, %c0_115, %c0_116] : memref<1x4x16x8xf32, #tpu.memory_space<vmem>>, vector<1x1x16x8xf32>
      %181 = vector.shape_cast %180 : vector<1x1x16x8xf32> to vector<16x8xf32>
      %182 = vector.shape_cast %179 : vector<16x8xf32> to vector<1x1x16x8xf32>
      tpu.vector_store %arg10[%c0_113, %c1_114, %c0_115, %c0_116], %182 {strides = array<i32>} : memref<1x4x16x8xf32, #tpu.memory_space<vmem>>, vector<1x1x16x8xf32>,
      %c2_117 = arith.constant 2 : index
      %c0_118 = arith.constant 0 : index
      %c0_119 = arith.constant 0 : index
      %c0_120 = arith.constant 0 : index
      %183 = vector.load %arg11[%c2_117, %c0_118, %c0_119, %c0_120] : memref<4x16x8x128xf32, #tpu.memory_space<vmem>>, vector<1x16x8x128xf32>
      %184 = vector.shape_cast %183 : vector<1x16x8x128xf32> to vector<16x8x128xf32>
      %cst_121 = arith.constant dense<0.000000e+00> : vector<16x8xf32>
      %185 = vector.multi_reduction <add>, %184, %cst_121 [2] : vector<16x8x128xf32> to vector<16x8xf32>
      %186 = vector.broadcast %152 : vector<16x1xf32> to vector<16x8xf32>
      %187 = arith.mulf %185, %186 : vector<16x8xf32>
      %c2_122 = arith.constant 2 : index
      %c0_123 = arith.constant 0 : index
      %c0_124 = arith.constant 0 : index
      %188 = vector.load %arg12[%c2_122, %c0_123, %c0_124] : memref<4x16x8xf32, #tpu.memory_space<vmem>>, vector<1x16x8xf32>
      %189 = vector.shape_cast %188 : vector<1x16x8xf32> to vector<16x8xf32>
      %190 = vector.broadcast %152 : vector<16x1xf32> to vector<16x8xf32>
      %191 = arith.mulf %189, %190 : vector<16x8xf32>
      %cst_125 = arith.constant 9.99999997E-7 : f32
      %192 = vector.broadcast %cst_125 : f32 to vector<16x8xf32>
      %193 = arith.maximumf %191, %192 : vector<16x8xf32>
      %194 = arith.divf %187, %193 : vector<16x8xf32>
      %c0_126 = arith.constant 0 : index
      %c2_127 = arith.constant 2 : index
      %c0_128 = arith.constant 0 : index
      %c0_129 = arith.constant 0 : index
      %195 = vector.load %arg10[%c0_126, %c2_127, %c0_128, %c0_129] : memref<1x4x16x8xf32, #tpu.memory_space<vmem>>, vector<1x1x16x8xf32>
      %196 = vector.shape_cast %195 : vector<1x1x16x8xf32> to vector<16x8xf32>
      %197 = vector.shape_cast %194 : vector<16x8xf32> to vector<1x1x16x8xf32>
      tpu.vector_store %arg10[%c0_126, %c2_127, %c0_128, %c0_129], %197 {strides = array<i32>} : memref<1x4x16x8xf32, #tpu.memory_space<vmem>>, vector<1x1x16x8xf32>,
      %c3_130 = arith.constant 3 : index
      %c0_131 = arith.constant 0 : index
      %c0_132 = arith.constant 0 : index
      %c0_133 = arith.constant 0 : index
      %198 = vector.load %arg11[%c3_130, %c0_131, %c0_132, %c0_133] : memref<4x16x8x128xf32, #tpu.memory_space<vmem>>, vector<1x16x8x128xf32>
      %199 = vector.shape_cast %198 : vector<1x16x8x128xf32> to vector<16x8x128xf32>
      %cst_134 = arith.constant dense<0.000000e+00> : vector<16x8xf32>
      %200 = vector.multi_reduction <add>, %199, %cst_134 [2] : vector<16x8x128xf32> to vector<16x8xf32>
      %201 = vector.broadcast %152 : vector<16x1xf32> to vector<16x8xf32>
      %202 = arith.mulf %200, %201 : vector<16x8xf32>
      %c3_135 = arith.constant 3 : index
      %c0_136 = arith.constant 0 : index
      %c0_137 = arith.constant 0 : index
      %203 = vector.load %arg12[%c3_135, %c0_136, %c0_137] : memref<4x16x8xf32, #tpu.memory_space<vmem>>, vector<1x16x8xf32>
      %204 = vector.shape_cast %203 : vector<1x16x8xf32> to vector<16x8xf32>
      %205 = vector.broadcast %152 : vector<16x1xf32> to vector<16x8xf32>
      %206 = arith.mulf %204, %205 : vector<16x8xf32>
      %cst_138 = arith.constant 9.99999997E-7 : f32
      %207 = vector.broadcast %cst_138 : f32 to vector<16x8xf32>
      %208 = arith.maximumf %206, %207 : vector<16x8xf32>
      %209 = arith.divf %202, %208 : vector<16x8xf32>
      %c0_139 = arith.constant 0 : index
      %c3_140 = arith.constant 3 : index
      %c0_141 = arith.constant 0 : index
      %c0_142 = arith.constant 0 : index
      %210 = vector.load %arg10[%c0_139, %c3_140, %c0_141, %c0_142] : memref<1x4x16x8xf32, #tpu.memory_space<vmem>>, vector<1x1x16x8xf32>
      %211 = vector.shape_cast %210 : vector<1x1x16x8xf32> to vector<16x8xf32>
      %212 = vector.shape_cast %209 : vector<16x8xf32> to vector<1x1x16x8xf32>
      tpu.vector_store %arg10[%c0_139, %c3_140, %c0_141, %c0_142], %212 {strides = array<i32>} : memref<1x4x16x8xf32, #tpu.memory_space<vmem>>, vector<1x1x16x8xf32>,
    } else {
    }
    return
  }
  func.func @transform_0(%arg0: i32, %arg1: i32, %arg2: i32) -> (i32, i32, i32) {
    %c0_i32 = arith.constant 0 : i32
    %c0_i32_0 = arith.constant 0 : i32
    return %arg0, %arg1, %c0_i32 : i32, i32, i32
  }
  func.func @transform_1(%arg0: i32, %arg1: i32, %arg2: i32) -> (i32, i32, i32) {
    %c0_i32 = arith.constant 0 : i32
    %c0_i32_0 = arith.constant 0 : i32
    return %arg0, %c0_i32, %arg2 : i32, i32, i32
  }
  func.func @transform_2(%arg0: i32, %arg1: i32, %arg2: i32) -> (i32, i32, i32) {
    %c0_i32 = arith.constant 0 : i32
    %c0_i32_0 = arith.constant 0 : i32
    return %arg0, %c0_i32, %arg2 : i32, i32, i32
  }
  func.func @transform_3(%arg0: i32, %arg1: i32, %arg2: i32) -> (i32, i32, i32) {
    %c0_i32 = arith.constant 0 : i32
    return %arg0, %arg1, %arg2 : i32, i32, i32
  }
  func.func @transform_4(%arg0: i32, %arg1: i32, %arg2: i32) -> (i32, i32, i32) {
    %c0_i32 = arith.constant 0 : i32
    %c0_i32_0 = arith.constant 0 : i32
    return %arg0, %arg1, %c0_i32 : i32, i32, i32
  }
  func.func @transform_5(%arg0: i32, %arg1: i32, %arg2: i32) -> (i32, i32, i32) {
    %c0_i32 = arith.constant 0 : i32
    %c0_i32_0 = arith.constant 0 : i32
    return %arg0, %c0_i32, %arg2 : i32, i32, i32
  }
  func.func @transform_6(%arg0: i32, %arg1: i32, %arg2: i32) -> (i32, i32) {
    %c0_i32 = arith.constant 0 : i32
    %c0_i32_0 = arith.constant 0 : i32
    %c0_i32_1 = arith.constant 0 : i32
    return %c0_i32, %c0_i32_0 : i32, i32
  }
  func.func @transform_7(%arg0: i32, %arg1: i32, %arg2: i32) -> (i32, i32, i32, i32) {
    %c0_i32 = arith.constant 0 : i32
    %c0_i32_0 = arith.constant 0 : i32
    %c0_i32_1 = arith.constant 0 : i32
    return %arg0, %c0_i32, %arg1, %c0_i32_0 : i32, i32, i32, i32
  }
}

</mosaic_0001>

<bundles_post_ra>
// kernel: tpu_custom_call.1
= control target key start
LH: loop header
LB: loop body
LE: loop exit
PB: predicated region body
PF: predicated region fallthrough
CT: control target
= control target key end

     0   :  { %s8447_s0 = inlined_call_operand.vmem [shape: f32[2,128,32], index: 0, kind: input, shape index: {}]   ;;  %s8448_s1 = inlined_call_operand.vmem [shape: f32[2,32,128], index: 1, kind: input, shape index: {}]   ;;  %s8449_s2 = inlined_call_operand.hbm [shape: f32[2,32,128], index: 2, kind: input, shape index: {}]   ;;  %s8450_s3 = inlined_call_operand.hbm [shape: f32[2,1024,128], index: 3, kind: input, shape index: {}]   ;;  %s8451_s4 = inlined_call_operand.vmem [shape: f32[2,128,1], index: 4, kind: input, shape index: {}]   ;;  %s8452_s5 = inlined_call_operand.vmem [shape: f32[2,1,128], index: 5, kind: input, shape index: {}]   ;;  %s8453_s6 = inlined_call_operand.vmem [shape: f32[512,128], index: 6, kind: input, shape index: {}]   ;;  %s8454_s7 = inlined_call_operand.vmem [shape: f32[2,4,128,8], index: 7, kind: output, shape index: {}]  }
   0x1   :  { %8475 = sst [smem:[#allocation47_spill]] %s8448_s1 }
   0x2   :  { %8476 = sst [smem:[#allocation48_spill]] %s8449_s2 }
   0x3   :  { %8477 = sst [smem:[#allocation49_spill]] %s8451_s4 }
   0x4   :  { %8478 = sst [smem:[#allocation50_spill]] %s8452_s5 }
   0x5   :  { %8479 = sst [smem:[#allocation51_spill]] %s8453_s6 }
   0x6   :  { %8480 = sst [smem:[#allocation52_spill]] %s8454_s7 }
   0x7   :  { %12 = vsyncpa [#allocation5], 0 }
   0x8   :  { %14 = vsyncpa [#allocation5 + $0x1], 0 }
   0x9   :  { %15 = vsyncpa [#allocation7], 0 }
   0xa   :  { %17 = vsyncpa [#allocation7 + $0x1], 0  ;;  %s6123_s24 = smov 0   ;;  %s6125_s25 = smov 0  }
   0xb   :  { %s6127_s26 = smov 0   ;;  %s6129_s27 = smov 0  }
   0xc   :  { %s6131_s28 = smov 0   ;;  %s6133_s29 = smov 0  }
   0xd   :  { %s6135_s30 = smov 0   ;;  %s6137_s8 = smov 0  }
   0xe   :  { %s6139_s9 = smov 0   ;;  %s6141_s10 = smov 0  }
   0xf   :  { %s6143_s11 = smov 0  }
  0x10 LB: > { %s8455_s12 = sadd.s32 4294967295, %s6071_s11   ;;  %p114_p0 = scmp.ne.s32.totalorder %s6051_s29, %s6047_s28  ;;  %s6071_s11 = sphi %s6143_s11, %s23_s11   ;;  %s6067_s10 = sphi %s6141_s10, %s8664_s10   ;;  %s6063_s9 = sphi %s6139_s9, %s8663_s9   ;;  %s6059_s8 = sphi %s6137_s8, %s8662_s8   ;;  %s6055_s30 = sphi %s6135_s30, %s8661_s30   ;;  %s6051_s29 = sphi %s6133_s29, %s8660_s29   ;;  %s6047_s28 = sphi %s6131_s28, %s8659_s28   ;;  %s6043_s27 = sphi %s6129_s27, %s8658_s27   ;;  %s6039_s26 = sphi %s6127_s26, %s8657_s26   ;;  %s6035_s25 = sphi %s6125_s25, %s8656_s25   ;;  %s6031_s24 = sphi %s6123_s24, %s8655_s24  }
  0x11   : > { %p8457_p1 = scmp.eq.s32.totalorder %s6071_s11, 0  ;;  %p120_p2 = scmp.ne.s32.totalorder %s6047_s28, %s6043_s27 }
  0x12   : > { %p6185_p3 = scmp.eq.s32.totalorder %s8455_s12, 0  ;;  %p8456_p5 = scmp.lt.s32.totalorder %s6071_s11, 16 }
  0x13   : > { %p116_p4 = por %p8457_p1, %p114_p0  ;;  %s306_s17 = sand.u32 1, %s6051_s29  }
  0x14   : > { %p6194_p6 = por %p6185_p3, %p120_p2  ;;  %s5155_s18 = sshll.u32 %s306_s17, 5 }
  0x15   : > { %s5259_s19 = sshll.u32 %s6067_s10, 9  ;;  %s8483_s2 = sld [smem:[#allocation48_spill]] }
  0x16   : > { %s8482_s16 = scalar_select %p6194_p6, 1, 0 }
  0x17   : > { %s310_s23 = scalar_lea.vmem [#allocation4], %s5155_s18  ;;  %p6209_p7 = pnand %p8456_p5, %p116_p4 }
  0x18   : > { %s318_s27 = sshll.u32 %s310_s23, 4  ;;  %s6214_s13 = scalar_lea.sflag [#allocation5], %s306_s17  ;;  %s6205_s27 = int_to_ptr.vmem [resolvable:$true] %s318_s27 }
  0x19   : > { %p5919_p10 = pneg %p6209_p7 }
  0x1b   : > { %s6203_s22 = scalar_lea.hbm %s8483_s2, %s5259_s19  ;;  %s5922_s21 = scalar_lea.hbm %s8483_s2, 1024 }
  0x1c   : > { %s5917_s19 = scalar_lea.hbm %s6203_s22, 512  ;;  %p5923_p13 = scmp.lt.u32.totalorder %s6203_s22, %s8483_s2 }
  0x1d   : > { %p5918_p9 = scmp.ne.s32.totalorder %s6203_s22, %s5917_s19  ;;  %p5924_p0 = scmp.lt.u32.totalorder %s5922_s21, %s5917_s19 }
  0x1e   : > { %p5926_p4 = scmp.lt.u32.totalorder %s5917_s19, %s6203_s22 }
  0x1f   : > { %p5920_p11 = pnand %p5919_p10, %p5918_p9  ;;  %p5925_p2 = por %p5924_p0, %p5923_p13 }
  0x21   : > { %p5921_p12 = pneg %p5920_p11  ;;  %p5927_p5 = por %p5926_p4, %p5925_p2 }
  0x23   : > { %p5928_p1 = pnand %p5927_p5, %p5921_p12 }
  0x25   : > { %5931 = shalt.err (!%p5928_p1)
}
  0x26   : > { %s5932_s17 = scalar_lea.vmem %s6205_s27, 512  ;;  %s6073_s18 = smov [#allocation4]  }
  0x27   : > { %p5933_p9 = scmp.ne.s32.totalorder %s6205_s27, %s5932_s17  ;;  %s5937_s20 = sshll.u32 %s6073_s18, 4  ;;  %s5938_s20 = int_to_ptr.vmem [resolvable:$false] %s5937_s20 }
  0x28   : > { %s5939_s12 = scalar_lea.vmem %s5938_s20, 1024  ;;  %p5940_p6 = scmp.lt.s32.totalorder %s6205_s27, %s5938_s20 }
  0x29   : > { %p5935_p11 = pnand %p5933_p9, %p5919_p10  ;;  %p5941_p13 = scmp.lt.s32.totalorder %s5939_s12, %s5932_s17 }
  0x2b   : > { %p5936_p8 = pneg %p5935_p11  ;;  %p5942_p0 = por %p5941_p13, %p5940_p6 }
  0x2d   : > { %p5943_p2 = pnand %p5942_p0, %p5936_p8 }
  0x2f   : > { %5946 = shalt.err (!%p5943_p2)
}
  0x30   : > { %s8459_s19 = smov 128   ;;  %s8460_s21 = smov 8  }
  0x31   : > { %5556 = dma.hbm_to_vmem [thread:$0]  (!%p6209_p7), %s6203_s22, 512, %s6205_s27, %s6214_s13, %s8459_s19, %s8459_s19, %s8460_s21  }
  0x32   : > { %p372_p1 = scmp.lt.s32.totalorder %s6071_s11, 17  ;;  %p8485_p5 = scmp.ge.s32.totalorder %s6071_s11, 1 }
  0x33   : > { %s38_s17 = sadd.s32 1, %s6063_s9  ;;  %s137_s18 = sadd.s32 1, %s6039_s26 }
  0x34   : > { %p6248_p6 = pnand %p8485_p5, %p372_p1  ;;  %p40_p8 = scmp.ge.s32.totalorder %s38_s17, 8 }
  0x35   : > { %p144_p10 = scmp.ne.s32.totalorder %s6039_s26, %s6035_s25  ;;  %p150_p12 = scmp.ne.s32.totalorder %s6035_s25, %s6031_s24 }
  0x36   : > { %s8487_s20 = sadd.s32 4294967295, %s6071_s11   ;;  %s8666_s17 = smov (%p40_p8, %s38_s17), 0 }
  0x37   : > { %p253_p4 = scmp.eq.s32.totalorder %s8487_s20, 15  ;;  %8488 = sst [smem:[#allocation11_spill]] %s8666_s17 }
  0x38   : > { %s8489_s13 = sadd.s32 1, %s6067_s10  ;;  %s131_s14 = ssub.s32 %s6063_s9, %s8666_s17 }
  0x39   : > { %s8668_s13 = smov (!%p40_p8, %s8489_s13), %s6067_s10  ;;  %p8490_p7 = scmp.eq.s32.totalorder %s6071_s11, 0 }
  0x3a   : > { %p44_p11 = scmp.ge.s32.totalorder %s8668_s13, 2  ;;  %p6275_p13 = por %p150_p12, %p6185_p3 }
  0x3b   : > { %p6269_p9 = por %p144_p10, %p8490_p7  ;;  %p6279_p0 = por %p253_p4, %p144_p10 }
  0x3c   : > { %s8492_s24 = scalar_select %p6275_p13, 1, 0 }
  0x3d   : > { %s8493_s27 = scalar_select %p6279_p0, 1, 0 }
  0x3e   : > { %s328_s12 = sand.u32 1, %s6039_s26   ;;  %s8670_s13 = smov (%p44_p11, %s8668_s13), 0 }
  0x3f   : > { %8494 = sst [smem:[#allocation12_spill]] %s8493_s27  ;;  %s5158_s20 = sshll.u32 %s328_s12, 7 }
  0x40   : > { %8495 = sst [smem:[#allocation13_spill]] %s8670_s13  ;;  %s102_s19 = ssub.s32 %s6067_s10, %s8670_s13 }
  0x41   : > { %p105_p2 = scmp.eq.s32.totalorder %s102_s19, 0  ;;  %s132_s21 = sor.u32 %s131_s14, %s102_s19 }
  0x42   : > { %p135_p1 = scmp.eq.s32.totalorder %s132_s21, 0  ;;  %s5159_s15 = sshll.u32 %s6063_s9, 4 }
  0x43   : > { %s8496_s2 = sadd.s32 1, %s6051_s29  ;;  %s5160_s4 = sshll.u32 %s6067_s10, 7 }
  0x44   : > { %s6292_s17 = scalar_select %p105_p2, %s6051_s29, %s8496_s2  }
  0x45   : > { %s6295_s7 = scalar_select %p135_p1, %s6039_s26, %s137_s18  }
  0x46   : > { %s332_s5 = scalar_lea.vmem [#allocation6], %s5158_s20  ;;  %s339_s1 = sadd.s32 %s5160_s4, %s5159_s15 }
  0x47   : > { %s342_s27 = sshll.u32 %s332_s5, 4  ;;  %s5161_s6 = sshll.u32 %s339_s1, 7  ;;  %s6298_s27 = int_to_ptr.vmem [resolvable:$true] %s342_s27 }
  0x48   : > { %p8497_p3 = scmp.lt.s32.totalorder %s6071_s11, 16  ;;  %s6311_s2 = scalar_lea.hbm %s8450_s3, %s5161_s6 }
  0x49   : > { %s6313_s4 = scalar_lea.sflag [#allocation7], %s328_s12  ;;  %s5947_s1 = scalar_lea.hbm %s6311_s2, 2048 }
  0x4a   : > { %p6304_p5 = pnand %p8497_p3, %p6269_p9  ;;  %p5948_p8 = scmp.ne.s32.totalorder %s6311_s2, %s5947_s1 }
  0x4b   : > { %s5952_s14 = scalar_lea.hbm %s8450_s3, 32768  ;;  %p5953_p7 = scmp.lt.u32.totalorder %s6311_s2, %s8450_s3 }
  0x4c   : > { %p5949_p10 = pneg %p6304_p5  ;;  %p5954_p9 = scmp.lt.u32.totalorder %s5952_s14, %s5947_s1 }
  0x4d   : > { %p5956_p2 = scmp.lt.u32.totalorder %s5947_s1, %s6311_s2 }
  0x4e   : > { %p5950_p12 = pnand %p5949_p10, %p5948_p8  ;;  %p5955_p11 = por %p5954_p9, %p5953_p7 }
  0x50   : > { %p5951_p4 = pneg %p5950_p12  ;;  %p5957_p1 = por %p5956_p2, %p5955_p11 }
  0x52   : > { %p5958_p3 = pnand %p5957_p1, %p5951_p4 }
  0x54   : > { %5961 = shalt.err (!%p5958_p3)
}
  0x55   : > { %s5962_s12 = scalar_lea.vmem %s6298_s27, 2048  ;;  %s6076_s20 = smov [#allocation6]  }
  0x56   : > { %p5963_p8 = scmp.ne.s32.totalorder %s6298_s27, %s5962_s12  ;;  %s5967_s15 = sshll.u32 %s6076_s20, 4  ;;  %s5968_s15 = int_to_ptr.vmem [resolvable:$false] %s5967_s15 }
  0x57   : > { %s5969_s19 = scalar_lea.vmem %s5968_s15, 4096  ;;  %p5970_p13 = scmp.lt.s32.totalorder %s6298_s27, %s5968_s15 }
  0x58   : > { %p5965_p12 = pnand %p5963_p8, %p5949_p10  ;;  %p5971_p7 = scmp.lt.s32.totalorder %s5969_s19, %s5962_s12 }
  0x5a   : > { %p5966_p0 = pneg %p5965_p12  ;;  %p5972_p9 = por %p5971_p7, %p5970_p13 }
  0x5c   : > { %p5973_p11 = pnand %p5972_p9, %p5966_p0 }
  0x5e   : > { %5976 = shalt.err (!%p5973_p11)
}
  0x5f   : > { %s8499_s21 = smov 8   ;;  %s8500_s1 = smov 128  }
  0x60   : > { %5559 = dma.hbm_to_vmem [thread:$0]  (!%p6304_p5), %s6311_s2, 2048, %s6298_s27, %s6313_s4, %s8500_s1, %s8500_s1, %s8499_s21  }
  0x61   : > { %376 = sbr.rel (%p6248_p6) target bundleno = 1532 (0x5fc), region = 48 }
  0x68   : > { %s378_s5 = sand.u32 1, %s6047_s28   ;;  %p8501_p13 = scmp.ne.s32.totalorder %s8482_s16, 0 }
  0x69   : > { %s5163_s18 = sshll.u32 %s378_s5, 5  ;;  %s379_s14 = scalar_lea.sflag [#allocation5], %s378_s5 }
  0x6a   : > { %s6347_s6 = scalar_lea.vmem [#allocation4], %s5163_s18 }
  0x6b   : > { %6022 = dma.done.wait (%p8501_p13), %s379_s14, 512  }
  0x6c   : > { %6024 = vsyncadd (%p8501_p13), %s379_s14, 4294966784  ;;  %s6354_s13 = sand.u32 1, %s6035_s25   ;;  %p8502_p6 = scmp.ne.s32.totalorder %s8492_s24, 0 }
  0x6d   : > { %s5164_s23 = sshll.u32 %s6354_s13, 7  ;;  %s388_s27 = scalar_lea.sflag [#allocation7], %s6354_s13 }
  0x6e   : > { %s6358_s2 = scalar_lea.vmem [#allocation6], %s5164_s23 }
  0x6f   : > { %6026 = dma.done.wait (%p8502_p6), %s388_s27, 2048  }
  0x70   : > { %6028 = vsyncadd (%p8502_p6), %s388_s27, 4294965248  ;;  %s6365_s16 = sshll.u32 %s6055_s30, 1  ;;  %p459_p0 = scmp.lt.s32.totalorder %s6059_s8, 1  ;;  %v571_v0 = vld [vmem:[%s6358_s2] sm:$0xff]  ;;  %v572_v1 = vld [vmem:[%s6358_s2 + $0x8] sm:$0xff]  ;;  %vm562_vm0 = vcmask 64512  }
  0x71   : > { %p461_p5 = scmp.lt.s32.totalorder %s6365_s16, 15  ;;  %v5501_v4 = vpack.c.bf16 %v572_v1, %v571_v0  ;;  %v573_v5 = vld [vmem:[%s6358_s2 + $0x10] sm:$0xff]  ;;  %s6077_s21 = smov 120   ;;  %v574_v6 = vld [vmem:[%s6358_s2 + $0x18] sm:$0xff]  ;;  %v575_v7 = vld [vmem:[%s6358_s2 + $0x20] sm:$0xff]  ;;  %vm1527_vm1 = vcmask 1041409  }
  0x72   : > { %s6370_s4 = scalar_select %p459_p0, %s6059_s8, 1  ;;  %v5505_v8 = vpack.c.bf16 %v574_v6, %v573_v5  ;;  %v576_v9 = vld [vmem:[%s6358_s2 + $0x28] sm:$0xff]  ;;  %v577_v11 = vld [vmem:[%s6358_s2 + $0x30] sm:$0xff]  ;;  %v578_v12 = vld [vmem:[%s6358_s2 + $0x38] sm:$0xff]  ;;  %vm1529_vm2 = vcmask 1042434   ;;  %vm1531_vm3 = vcmask 1043459  }
  0x73   : > { %s462_s22 = scalar_select %p461_p5, %s6365_s16, 15  ;;  %5533 = vmatprep.subr.bf16.mxu1 %v5501_v4  ;;  %5502 = vmatprep.subr.bf16.mxu0 %v5501_v4  ;;  %v5509_v10 = vpack.c.bf16 %v576_v9, %v575_v7  ;;  %v5513_v14 = vpack.c.bf16 %v578_v12, %v577_v11  ;;  %v579_v15 = vld [vmem:[%s6358_s2 + $0x40] sm:$0xff]  ;;  %v580_v16 = vld [vmem:[%s6358_s2 + $0x48] sm:$0xff]  ;;  %v581_v18 = vld [vmem:[%s6358_s2 + $0x50] sm:$0xff]  ;;  %vm1533_vm4 = vcmask 1044484   ;;  %vm1535_vm5 = vcmask 1045509  }
  0x74   : > { %s5167_s24 = sshll.u32 %s6370_s4, 4  ;;  %5541 = vmatpush3.bf16.msra.mxu1 %v5501_v4  ;;  %5504 = vmatpush3.bf16.msra.mxu0 %v5501_v4  ;;  %s6078_s1 = smov 112   ;;  %v5517_v17 = vpack.c.bf16 %v580_v16, %v579_v15  ;;  %v582_v19 = vld [vmem:[%s6358_s2 + $0x58] sm:$0xff]  ;;  %v583_v22 = vld [vmem:[%s6358_s2 + $0x60] sm:$0xff]  ;;  %v584_v23 = vld [vmem:[%s6358_s2 + $0x68] sm:$0xff]  ;;  %vm1537_vm6 = vcmask 1046534  }
  0x75   : > { %s6374_s12 = sadd.s32 %s5167_s24, %s462_s22  ;;  %5534 = vmatprep.subr.bf16.mxu1 %v5505_v8  ;;  %5506 = vmatprep.subr.bf16.mxu0 %v5505_v8  ;;  %s8503_s14 = sld [smem:[#allocation51_spill]]  ;;  %v5521_v21 = vpack.c.bf16 %v582_v19, %v581_v18  ;;  %v5525_v24 = vpack.c.bf16 %v584_v23, %v583_v22  ;;  %v585_v25 = vld [vmem:[%s6358_s2 + $0x70] sm:$0xff]  ;;  %v586_v26 = vld [vmem:[%s6358_s2 + $0x78] sm:$0xff]  ;;  %vm1539_vm7 = vcmask 1047559  }
  0x76   : > { %s5168_s20 = sshll.u32 %s6374_s12, 3  ;;  %s6079_s23 = smov 104   ;;  %v5529_v27 = vpack.c.bf16 %v586_v26, %v585_v25 }
  0x77   : > { %s466_s19 = scalar_lea.vmem %s8447_s0, %s5168_s20  ;;  %s5260_s24 = sshll.u32 %s6370_s4, 5 }
  0x78   : > { %v6384_v2 = vld [vmem:[%s466_s19] sm:$0xff]  ;;  %v6386_v3 = vld [vmem:[%s466_s19 + $0x8] sm:$0xff]  ;;  %5542 = vmatpush3.bf16.msra.mxu1 %v5505_v8  ;;  %5508 = vmatpush3.bf16.msra.mxu0 %v5505_v8  ;;  %s8504_s19 = sld [smem:[#allocation47_spill]] }
  0x79   : > { %1618 = vrot.lane.b32.xlu0 %v6384_v2, %s6077_s21  ;;  %1620 = vrot.lane.b32.xlu1 %v6386_v3, %s6077_s21 }
  0x7a   : > { %5535 = vmatprep.subr.bf16.mxu1 %v5509_v10  ;;  %5510 = vmatprep.subr.bf16.mxu0 %v5509_v10 }
  0x7b   : > { %v634_v13 = vld [vmem:[%s8503_s14 + $0x120] sm:$0xff]  ;;  %v635_v29 = vld [vmem:[%s8503_s14 + $0x128] sm:$0xff]  ;;  %v636_v30 = vld [vmem:[%s8503_s14 + $0x130] sm:$0xff] }
  0x7c   : > { %5439 = vmatprep.mubr.f32.mxu1 %v634_v13  ;;  %5543 = vmatpush3.bf16.msra.mxu1 %v5509_v10  ;;  %v598_v20 = vld [vmem:[%s8503_s14] sm:$0xff]  ;;  %v599_v31 = vld [vmem:[%s8503_s14 + $0x8] sm:$0xff]  ;;  %v600_v33 = vld [vmem:[%s8503_s14 + $0x10] sm:$0xff] }
  0x7d   : > { %2177 = vrot.lane.b32.xlu0 %v6384_v2, %s6078_s1  ;;  %2179 = vrot.lane.b32.xlu1 %v6386_v3, %s6078_s1  ;;  %v637_v34 = vld [vmem:[%s8503_s14 + $0x138] sm:$0xff]  ;;  %v638_v35 = vld [vmem:[%s8503_s14 + $0x140] sm:$0xff] }
  0x7e   : > { %5536 = vmatprep.subr.bf16.mxu1 %v5513_v14  ;;  %5512 = vmatpush3.bf16.msra.mxu0 %v5509_v10  ;;  %s6418_s21 = scalar_lea.vmem %s8504_s19, %s5260_s24  ;;  %v601_v36 = vld [vmem:[%s8503_s14 + $0x18] sm:$0xff]  ;;  %v602_v37 = vld [vmem:[%s8503_s14 + $0x20] sm:$0xff]  ;;  %v639_v38 = vld [vmem:[%s8503_s14 + $0x148] sm:$0xff]  ;;  %s8576_s24 = sld [smem:[#allocation49_spill]] }
  0x7f   : > { %5514 = vmatprep.subr.bf16.mxu0 %v5513_v14  ;;  %5385 = vmatprep.mubr.f32.mxu0 %v598_v20  ;;  %v587_v28 = vld [vmem:[%s6418_s21] sm:$0xff]  ;;  %v6431_v32 = vld [vmem:[%s6418_s21 + $0x8] sm:$0xff]  ;;  %v640_v39 = vld [vmem:[%s8503_s14 + $0x150] sm:$0xff] }
  0x80   : > { %5544 = vmatpush3.bf16.msra.mxu1 %v5513_v14  ;;  %v603_v40 = vld [vmem:[%s8503_s14 + $0x28] sm:$0xff]  ;;  %v604_v41 = vld [vmem:[%s8503_s14 + $0x30] sm:$0xff]  ;;  %v641_v42 = vld [vmem:[%s8503_s14 + $0x158] sm:$0xff] }
  0x81   : > { %2736 = vrot.lane.b32.xlu0 %v6384_v2, %s6079_s23  ;;  %2738 = vrot.lane.b32.xlu1 %v6386_v3, %s6079_s23  ;;  %v642_v43 = vld [vmem:[%s8503_s14 + $0x160] sm:$0xff]  ;;  %v605_v44 = vld [vmem:[%s8503_s14 + $0x38] sm:$0xff]  ;;  %s8529_s23 = sld [smem:[#allocation50_spill]] }
  0x82   : > { %5537 = vmatprep.subr.bf16.mxu1 %v5517_v17  ;;  %5516 = vmatpush3.bf16.msra.mxu0 %v5513_v14  ;;  %v606_v45 = vld [vmem:[%s8503_s14 + $0x40] sm:$0xff]  ;;  %v643_v46 = vld [vmem:[%s8503_s14 + $0x168] sm:$0xff]  ;;  %v644_v47 = vld [vmem:[%s8503_s14 + $0x170] sm:$0xff] }
  0x83   : > { %5518 = vmatprep.subr.bf16.mxu0 %v5517_v17  ;;  %v607_v48 = vld [vmem:[%s8503_s14 + $0x48] sm:$0xff]  ;;  %v608_v49 = vld [vmem:[%s8503_s14 + $0x50] sm:$0xff]  ;;  %v645_v50 = vld [vmem:[%s8503_s14 + $0x178] sm:$0xff] }
  0x84   : > { %5545 = vmatpush3.bf16.msra.mxu1 %v5517_v17  ;;  %v646_v51 = vld [vmem:[%s8503_s14 + $0x180] sm:$0xff]  ;;  %v609_v52 = vld [vmem:[%s8503_s14 + $0x58] sm:$0xff]  ;;  %v647_v54 = vld [vmem:[%s8503_s14 + $0x188] sm:$0xff]  ;;  %s485_s30 = scalar_lea.vmem %s8576_s24, %s5168_s20 }
  0x85   : > { %5538 = vmatprep.subr.bf16.mxu1 %v5521_v21  ;;  %v610_v53 = vld [vmem:[%s8503_s14 + $0x60] sm:$0xff]  ;;  %v648_v55 = vld [vmem:[%s8503_s14 + $0x190] sm:$0xff]  ;;  %v611_v56 = vld [vmem:[%s8503_s14 + $0x68] sm:$0xff] }
  0x86   : > { %5520 = vmatpush3.bf16.msra.mxu0 %v5517_v17  ;;  %v612_v57 = vld [vmem:[%s8503_s14 + $0x70] sm:$0xff]  ;;  %v649_v58 = vld [vmem:[%s8503_s14 + $0x198] sm:$0xff]  ;;  %v650_v59 = vld [vmem:[%s8503_s14 + $0x1a0] sm:$0xff] }
  0x87   : > { %5522 = vmatprep.subr.bf16.mxu0 %v5521_v21  ;;  %v613_v60 = vld [vmem:[%s8503_s14 + $0x78] sm:$0xff]  ;;  %v614_v61 = vld [vmem:[%s8503_s14 + $0x80] sm:$0xff]  ;;  %v651_v62 = vld [vmem:[%s8503_s14 + $0x1a8] sm:$0xff]  ;;  %s6833_s27 = scalar_lea.vmem %s8529_s23, %s6370_s4 }
  0x88   : > { %5546 = vmatpush3.bf16.msra.mxu1 %v5521_v21  ;;  %v652_v63 = vld [vmem:[%s8503_s14 + $0x1b0] sm:$0xff]  ;;  %v615_v0 = vld [vmem:[%s8503_s14 + $0x88] sm:$0xff]  ;;  %v653_v4 = vld [vmem:[%s8503_s14 + $0x1b8] sm:$0xff] }
  0x89   : > { %5539 = vmatprep.subr.bf16.mxu1 %v5525_v24  ;;  %v616_v1 = vld [vmem:[%s8503_s14 + $0x90] sm:$0xff]  ;;  %v654_v5 = vld [vmem:[%s8503_s14 + $0x1c0] sm:$0xff]  ;;  %v617_v6 = vld [vmem:[%s8503_s14 + $0x98] sm:$0xff] }
  0x8a   : > { %5524 = vmatpush3.bf16.msra.mxu0 %v5521_v21  ;;  %v618_v7 = vld [vmem:[%s8503_s14 + $0xa0] sm:$0xff]  ;;  %v655_v8 = vld [vmem:[%s8503_s14 + $0x1c8] sm:$0xff]  ;;  %v656_v9 = vld [vmem:[%s8503_s14 + $0x1d0] sm:$0xff] }
  0x8b   : > { %5526 = vmatprep.subr.bf16.mxu0 %v5525_v24  ;;  %v619_v10 = vld [vmem:[%s8503_s14 + $0xa8] sm:$0xff]  ;;  %v620_v11 = vld [vmem:[%s8503_s14 + $0xb0] sm:$0xff]  ;;  %v657_v12 = vld [vmem:[%s8503_s14 + $0x1d8] sm:$0xff] }
  0x8c   : > { %5547 = vmatpush3.bf16.msra.mxu1 %v5525_v24  ;;  %v658_v13 = vld [vmem:[%s8503_s14 + $0x1e0] sm:$0xff]  ;;  %v621_v14 = vld [vmem:[%s8503_s14 + $0xb8] sm:$0xff]  ;;  %v659_v16 = vld [vmem:[%s8503_s14 + $0x1e8] sm:$0xff] }
  0x8d   : > { %5540 = vmatprep.subr.bf16.mxu1 %v5529_v27  ;;  %v622_v15 = vld [vmem:[%s8503_s14 + $0xc0] sm:$0xff]  ;;  %v660_v17 = vld [vmem:[%s8503_s14 + $0x1f0] sm:$0xff]  ;;  %v623_v18 = vld [vmem:[%s8503_s14 + $0xc8] sm:$0xff] }
  0x8e   : > { %5528 = vmatpush3.bf16.msra.mxu0 %v5525_v24  ;;  %v624_v19 = vld [vmem:[%s8503_s14 + $0xd0] sm:$0xff]  ;;  %v661_v20 = vld [vmem:[%s8503_s14 + $0x1f8] sm:$0xff]  ;;  %v626_v22 = vld [vmem:[%s8503_s14 + $0xe0] sm:$0xff] }
  0x8f   : > { %5530 = vmatprep.subr.bf16.mxu0 %v5529_v27  ;;  %v625_v21 = vld [vmem:[%s8503_s14 + $0xd8] sm:$0xff]  ;;  %v589_v23 = vld [vmem:[%s6418_s21 + $0x10] sm:$0xff]  ;;  %v627_v24 = vld [vmem:[%s8503_s14 + $0xe8] sm:$0xff] }
  0x90   : > { %5548 = vmatpush3.bf16.msra.mxu1 %v5529_v27  ;;  %v628_v25 = vld [vmem:[%s8503_s14 + $0xf0] sm:$0xff]  ;;  %v630_v26 = vld [vmem:[%s8503_s14 + $0x100] sm:$0xff] }
  0x91   : > { %5481 = vmatprep.subr.mxu1 %v587_v28 }
  0x92   : > { %5532 = vmatpush3.bf16.msra.mxu0 %v5529_v27  ;;  %v632_v27 = vld [vmem:[%s8503_s14 + $0x110] sm:$0xff] }
  0x93   : > { %5440 = vmatmul.mubr.f32.vlgmr.msra.gmra.mrb[0].mxu1 %v635_v29 }
  0x94   : > { %5482 = vmatpush3.msra.mxu1 %v587_v28  ;;  %5442 = vmatprep.mubr.f32.mxu1 %v636_v30  ;;  %v633_v28 = vld [vmem:[%s8503_s14 + $0x118] sm:$0xff] }
  0x95   : > { %5386 = vmatmul.mubr.f32.vlgmr.msra.gmra.mrb[0].mxu0 %v599_v31  ;;  %5486 = vmatprep.subr.mxu1 %v6431_v32  ;;  %v590_v31 = vld [vmem:[%s6418_s21 + $0x18] sm:$0xff] }
  0x96   : > { %5388 = vmatprep.mubr.f32.mxu0 %v600_v33 }
  0x97   : > { %5443 = vmatmul.mubr.f32.gmra.mrb[2].mxu1 %v637_v34 }
  0x98   : > { %5445 = vmatprep.mubr.f32.mxu1 %v638_v35 }
  0x99   : > { %5389 = vmatmul.mubr.f32.gmra.mrb[2].mxu0 %v601_v36 }
  0x9a   : > { %5391 = vmatprep.mubr.f32.mxu0 %v602_v37 }
  0x9b   : > { %5446 = vmatmul.mubr.f32.gmra.mrb[4].mxu1 %v639_v38 }
  0x9c   : > { %5448 = vmatprep.mubr.f32.mxu1 %v640_v39 }
  0x9d   : > { %5392 = vmatmul.mubr.f32.gmra.mrb[4].mxu0 %v603_v40 }
  0x9e   : > { %5394 = vmatprep.mubr.f32.mxu0 %v604_v41 }
  0x9f   : > { %5449 = vmatmul.mubr.f32.gmra.mrb[6].mxu1 %v641_v42 }
  0xa0   : > { %5451 = vmatprep.mubr.f32.mxu1 %v642_v43 }
  0xa1   : > { %5395 = vmatmul.mubr.f32.gmra.mrb[6].mxu0 %v605_v44 }
  0xa2   : > { %5397 = vmatprep.mubr.f32.mxu0 %v606_v45 }
  0xa3   : > { %5452 = vmatmul.mubr.f32.gmra.mrb[8].mxu1 %v643_v46 }
  0xa4   : > { %5454 = vmatprep.mubr.f32.mxu1 %v644_v47 }
  0xa5   : > { %5398 = vmatmul.mubr.f32.gmra.mrb[8].mxu0 %v607_v48 }
  0xa6   : > { %5400 = vmatprep.mubr.f32.mxu0 %v608_v49 }
  0xa7   : > { %5455 = vmatmul.mubr.f32.gmra.mrb[10].mxu1 %v645_v50 }
  0xa8   : > { %5457 = vmatprep.mubr.f32.mxu1 %v646_v51 }
  0xa9   : > { %5401 = vmatmul.mubr.f32.gmra.mrb[10].mxu0 %v609_v52 }
  0xaa   : > { %5403 = vmatprep.mubr.f32.mxu0 %v610_v53 }
  0xab   : > { %5458 = vmatmul.mubr.f32.gmra.mrb[12].mxu1 %v647_v54 }
  0xac   : > { %5460 = vmatprep.mubr.f32.mxu1 %v648_v55 }
  0xad   : > { %5404 = vmatmul.mubr.f32.gmra.mrb[12].mxu0 %v611_v56 }
  0xae   : > { %5406 = vmatprep.mubr.f32.mxu0 %v612_v57 }
  0xaf   : > { %5461 = vmatmul.mubr.f32.gmra.mrb[14].mxu1 %v649_v58 }
  0xb0   : > { %5463 = vmatprep.mubr.f32.mxu1 %v650_v59 }
  0xb1   : > { %5407 = vmatmul.mubr.f32.gmra.mrb[14].mxu0 %v613_v60 }
  0xb2   : > { %5409 = vmatprep.mubr.f32.mxu0 %v614_v61 }
  0xb3   : > { %5464 = vmatmul.mubr.f32.gmra.mrb[16].mxu1 %v651_v62 }
  0xb4   : > { %5466 = vmatprep.mubr.f32.mxu1 %v652_v63 }
  0xb5   : > { %5410 = vmatmul.mubr.f32.gmra.mrb[16].mxu0 %v615_v0 }
  0xb6   : > { %5412 = vmatprep.mubr.f32.mxu0 %v616_v1 }
  0xb7   : > { %5467 = vmatmul.mubr.f32.gmra.mrb[18].mxu1 %v653_v4 }
  0xb8   : > { %5469 = vmatprep.mubr.f32.mxu1 %v654_v5 }
  0xb9   : > { %5413 = vmatmul.mubr.f32.gmra.mrb[18].mxu0 %v617_v6 }
  0xba   : > { %5415 = vmatprep.mubr.f32.mxu0 %v618_v7 }
  0xbb   : > { %5470 = vmatmul.mubr.f32.gmra.mrb[20].mxu1 %v655_v8 }
  0xbc   : > { %5472 = vmatprep.mubr.f32.mxu1 %v656_v9 }
  0xbd   : > { %5416 = vmatmul.mubr.f32.gmra.mrb[20].mxu0 %v619_v10 }
  0xbe   : > { %5418 = vmatprep.mubr.f32.mxu0 %v620_v11 }
  0xbf   : > { %5473 = vmatmul.mubr.f32.gmra.mrb[22].mxu1 %v657_v12 }
  0xc0   : > { %5475 = vmatprep.mubr.f32.mxu1 %v658_v13 }
  0xc1   : > { %5419 = vmatmul.mubr.f32.gmra.mrb[22].mxu0 %v621_v14 }
  0xc2   : > { %5421 = vmatprep.mubr.f32.mxu0 %v622_v15 }
  0xc3   : > { %5476 = vmatmul.mubr.f32.gmra.mrb[24].mxu1 %v659_v16 }
  0xc4   : > { %5478 = vmatprep.mubr.f32.mxu1 %v660_v17 }
  0xc5   : > { %5422 = vmatmul.mubr.f32.gmra.mrb[24].mxu0 %v623_v18 }
  0xc6   : > { %5424 = vmatprep.mubr.f32.mxu0 %v624_v19 }
  0xc7   : > { %5479 = vmatmul.mubr.f32.gmra.mrb[26].mxu1 %v661_v20  ;;  %v6080_v20 = vmov 1966171168  }
  0xc8   : > { %5483 = vmatprep.mubr.msk.f32.mxu1 %vm562_vm0, %v6384_v2  ;;  %v629_v2 = vld [vmem:[%s8503_s14 + $0xf8] sm:$0xff] }
  0xc9   : > { %5425 = vmatmul.mubr.f32.gmra.mrb[26].mxu0 %v625_v21  ;;  %v1133_v21 = vunpack.c.l.s4 %v6080_v20 }
  0xca   : > { %5427 = vmatprep.mubr.f32.mxu0 %v626_v22  ;;  %v8466_v22 = vlaneseq }
  0xcb   : > { %5484 = vmatmul.mubr.msk.f32.vlgmr.msra.gmra.mrb[28].mxu1 %vm562_vm0, %v6386_v3  ;;  %v631_v3 = vld [vmem:[%s8503_s14 + $0x108] sm:$0xff] }
  0xcc   : > { %5487 = vmatpush3.msra.mxu1 %v6431_v32 }
  0xcd   : > { %5491 = vmatprep.subr.mxu1 %v589_v23  ;;  %5428 = vmatmul.mubr.f32.gmra.mrb[28].mxu0 %v627_v24 }
  0xce   : > { %5430 = vmatprep.mubr.f32.mxu0 %v628_v25 }
  0xd1   : > { %5431 = vmatmul.mubr.f32.gmra.mrb[30].mxu0 %v629_v2 }
  0xd2   : > { %5433 = vmatprep.mubr.f32.mxu0 %v630_v26  ;;  %v1134_v26 = vunpack.c.0.s8 %v1133_v21 }
  0xd5   : > { %5434 = vmatmul.mubr.f32.gmra.mrb[32].mxu0 %v631_v3  ;;  %v6725_v3 = vshrl.u32 %v8466_v22, 7 }
  0xd6   : > { %5436 = vmatprep.mubr.f32.mxu0 %v632_v27 }
  0xd7   : > { %8516 = vst [vmem:[#allocation25_spill] sm:$0xff] %v6725_v3  ;;  %v6744_v21 = vsub.s32 0, %v6725_v3 }
  0xd9   : > { %5437 = vmatmul.mubr.f32.gmra.mrb[34].mxu0 %v633_v28 }
  0xeb   : > { %v1619_v29 = vpop.permute.xlu0 %1618  ;;  %v1621_v30 = vpop.permute.xlu1 %1620 }
  0xec   : > { %5488 = vmatprep.mubr.msk.f32.mxu1 %vm562_vm0, %v1619_v29 }
  0xed   : > { %5489 = vmatmul.mubr.msk.f32.vlgmr.msra.gmra.mrb[30].mxu1 %vm562_vm0, %v1621_v30 }
  0xee   : > { %5492 = vmatpush3.msra.mxu1 %v589_v23 }
  0xef   : > { %v2178_v32 = vpop.permute.xlu0 %2177  ;;  %v2180_v33 = vpop.permute.xlu1 %2179  ;;  %5496 = vmatprep.subr.mxu1 %v590_v31 }
  0xf0   : > { %5493 = vmatprep.mubr.msk.f32.mxu1 %vm562_vm0, %v2178_v32 }
  0xf1   : > { %5494 = vmatmul.mubr.msk.f32.vlgmr.msra.gmra.mrb[32].mxu1 %vm562_vm0, %v2180_v33 }
  0xf2   : > { %5497 = vmatpush3.msra.mxu1 %v590_v31  ;;  %v6736_v31 = vsub.s32 %v1134_v26, %v6725_v3 }
  0xf3   : > { %v2737_v34 = vpop.permute.xlu0 %2736  ;;  %v2739_v35 = vpop.permute.xlu1 %2738 }
  0xf4   : > { %5498 = vmatprep.mubr.msk.f32.mxu1 %vm562_vm0, %v2737_v34 }
  0xf5   : > { %5499 = vmatmul.mubr.msk.f32.vlgmr.msra.gmra.mrb[34].mxu1 %vm562_vm0, %v2739_v35 }
 0x166   : > { %v6624_v36 = vpop.f32.mrb[0].mxu1 }
 0x167   : > { %v6626_v37 = vpop.f32.mrb[1].mxu1 }
 0x168   : > { %v6628_v38 = vpop.f32.mrb[0].mxu0 }
 0x169   : > { %v6630_v39 = vpop.f32.mrb[1].mxu0 }
 0x16a   : > { %v6632_v40 = vpop.f32.mrb[2].mxu1 }
 0x16b   : > { %v6634_v41 = vpop.f32.mrb[3].mxu1 }
 0x16c   : > { %v6636_v42 = vpop.f32.mrb[2].mxu0 }
 0x16d   : > { %v6638_v43 = vpop.f32.mrb[3].mxu0 }
 0x16e   : > { %v6640_v44 = vpop.f32.mrb[4].mxu1 }
 0x16f   : > { %v6642_v45 = vpop.f32.mrb[5].mxu1 }
 0x170   : > { %v6644_v46 = vpop.f32.mrb[4].mxu0 }
 0x171   : > { %v6646_v47 = vpop.f32.mrb[5].mxu0 }
 0x172   : > { %v6648_v48 = vpop.f32.mrb[6].mxu1 }
 0x173   : > { %v6650_v49 = vpop.f32.mrb[7].mxu1 }
 0x174   : > { %v6652_v50 = vpop.f32.mrb[6].mxu0 }
 0x175   : > { %v6654_v51 = vpop.f32.mrb[7].mxu0 }
 0x176   : > { %v6656_v52 = vpop.f32.mrb[8].mxu1 }
 0x177   : > { %v6658_v53 = vpop.f32.mrb[9].mxu1 }
 0x178   : > { %v6660_v54 = vpop.f32.mrb[8].mxu0 }
 0x179   : > { %v6662_v55 = vpop.f32.mrb[9].mxu0 }
 0x17a   : > { %v6664_v56 = vpop.f32.mrb[10].mxu1 }
 0x17b   : > { %v6666_v57 = vpop.f32.mrb[11].mxu1 }
 0x17c   : > { %v6668_v58 = vpop.f32.mrb[10].mxu0 }
 0x17d   : > { %v6670_v59 = vpop.f32.mrb[11].mxu0 }
 0x17e   : > { %v6672_v60 = vpop.f32.mrb[12].mxu1 }
 0x17f   : > { %v6674_v61 = vpop.f32.mrb[13].mxu1 }
 0x180   : > { %v6676_v62 = vpop.f32.mrb[12].mxu0 }
 0x181   : > { %v6678_v63 = vpop.f32.mrb[13].mxu0 }
 0x182   : > { %v6680_v0 = vpop.f32.mrb[14].mxu1 }
 0x183   : > { %8505 = vst [vmem:[#allocation14_spill] sm:$0xff] %v6680_v0  ;;  %v6682_v1 = vpop.f32.mrb[15].mxu1 }
 0x184   : > { %v6684_v4 = vpop.f32.mrb[14].mxu0 }
 0x185   : > { %v6686_v5 = vpop.f32.mrb[15].mxu0 }
 0x186   : > { %v6688_v6 = vpop.f32.mrb[16].mxu1 }
 0x187   : > { %v6690_v7 = vpop.f32.mrb[17].mxu1 }
 0x188   : > { %v6692_v8 = vpop.f32.mrb[16].mxu0 }
 0x189   : > { %8506 = vst [vmem:[#allocation15_spill] sm:$0xff] %v6692_v8  ;;  %v6694_v9 = vpop.f32.mrb[17].mxu0 }
 0x18a   : > { %8507 = vst [vmem:[#allocation16_spill] sm:$0xff] %v6694_v9  ;;  %v6696_v10 = vpop.f32.mrb[18].mxu1 }
 0x18b   : > { %8508 = vst [vmem:[#allocation17_spill] sm:$0xff] %v6696_v10  ;;  %v6698_v11 = vpop.f32.mrb[19].mxu1 }
 0x18c   : > { %8509 = vst [vmem:[#allocation18_spill] sm:$0xff] %v6698_v11  ;;  %v6700_v12 = vpop.f32.mrb[18].mxu0 }
 0x18d   : > { %8510 = vst [vmem:[#allocation19_spill] sm:$0xff] %v6700_v12  ;;  %v6702_v13 = vpop.f32.mrb[19].mxu0 }
 0x18e   : > { %8511 = vst [vmem:[#allocation20_spill] sm:$0xff] %v6702_v13  ;;  %v6704_v14 = vpop.f32.mrb[20].mxu1 }
 0x18f   : > { %v6706_v15 = vpop.f32.mrb[21].mxu1 }
 0x190   : > { %v6708_v16 = vpop.f32.mrb[20].mxu0 }
 0x191   : > { %8512 = vst [vmem:[#allocation21_spill] sm:$0xff] %v6708_v16  ;;  %v6710_v17 = vpop.f32.mrb[21].mxu0 }
 0x192   : > { %8513 = vst [vmem:[#allocation22_spill] sm:$0xff] %v6710_v17  ;;  %v6712_v18 = vpop.f32.mrb[22].mxu1 }
 0x193   : > { %v6714_v19 = vpop.f32.mrb[23].mxu1 }
 0x194   : > { %v6716_v23 = vpop.f32.mrb[22].mxu0 }
 0x195   : > { %8514 = vst [vmem:[#allocation23_spill] sm:$0xff] %v6716_v23  ;;  %v6718_v24 = vpop.f32.mrb[23].mxu0 }
 0x196   : > { %8515 = vst [vmem:[#allocation24_spill] sm:$0xff] %v6718_v24  ;;  %v6720_v25 = vpop.f32.mrb[24].mxu1 }
 0x197   : > { %v6722_v2 = vpop.f32.mrb[25].mxu1 }
 0x198   : > { %v6727_v27 = vpop.f32.mrb[24].mxu0 }
 0x199   : > { %8517 = vst [vmem:[#allocation26_spill] sm:$0xff] %v6727_v27  ;;  %v6729_v28 = vpop.f32.mrb[25].mxu0 }
 0x19a   : > { %8518 = vst [vmem:[#allocation27_spill] sm:$0xff] %v6729_v28  ;;  %v6731_v29 = vpop.f32.mrb[26].mxu1 }
 0x19b   : > { %v6733_v30 = vpop.f32.mrb[27].mxu1 }
 0x19c   : > { %v6738_v32 = vpop.f32.mrb[26].mxu0 }
 0x19d   : > { %8519 = vst [vmem:[#allocation28_spill] sm:$0xff] %v6738_v32  ;;  %v6740_v33 = vpop.f32.mrb[27].mxu0 }
 0x19e   : > { %8520 = vst [vmem:[#allocation29_spill] sm:$0xff] %v6740_v33  ;;  %v5485_v34 = vpop.f32.mrb[28].mxu1 }
 0x19f   : > { %v1187_v35 = vrot.slane %v5485_v34, %v6736_v31  ;;  %v1120_v20 = vpop.f32.mrb[29].mxu1 }
 0x1a0   : > { %v1131_v22 = vcombine.high %v1120_v20, %v1120_v20  ;;  %v1138_v28 = vrot.slane %v1120_v20, %v6736_v31  ;;  %v6747_v27 = vpop.f32.mrb[28].mxu0 }
 0x1a1   : > { %8521 = vst [vmem:[#allocation30_spill] sm:$0xff] %v6747_v27  ;;  %v1195_v24 = vcombine.high %v1187_v35, %v1187_v35  ;;  %v1203_v26 = vrot.slane %v1187_v35, %v6736_v31  ;;  %v6750_v23 = vpop.f32.mrb[29].mxu0  ;;  %v1180_v35 = vcombine.high %v5485_v34, %v5485_v34 }
 0x1a2   : > { %8522 = vst [vmem:[#allocation31_spill] sm:$0xff] %v6750_v23  ;;  %v1145_v32 = vrot.slane %v1131_v22, %v6736_v31  ;;  %v1146_v33 = vcombine.high %v1138_v28, %v1138_v28  ;;  %v1154_v17 = vrot.slane %v1138_v28, %v6736_v31 }
 0x1a3   : > { %v1217_v12 = vrot.slane %v1195_v24, %v6736_v31  ;;  %v1264_v3 = vrot.slane %v1203_v26, %v6744_v21 }
 0x1a4   : > { %v1147_v16 = vcombine.high %v1145_v32, %v1145_v32  ;;  %v1161_v13 = vrot.slane %v1145_v32, %v6736_v31  ;;  %v1168_v20 = vrot.slane %v1146_v33, %v6736_v31  ;;  %v1176_v27 = vcombine.high %v1154_v17, %v1154_v17  ;;  %v6758_v8 = vpop.f32.mrb[30].mxu0 }
 0x1a5   : > { %8523 = vst [vmem:[#allocation32_spill] sm:$0xff] %v6758_v8  ;;  %v1232_v23 = vrot.slane %v1154_v17, %v6744_v21  ;;  %v1268_v22 = vrot.slane %v1217_v12, %v6744_v21  ;;  %v1317_v9 = vadd.f32 %v1264_v3, %v6662_v55  ;;  %v6763_v28 = vpop.f32.mrb[31].mxu0 }
 0x1a6   : > { %8524 = vst [vmem:[#allocation33_spill] sm:$0xff] %v6763_v28  ;;  %v1178_v24 = vcombine.high %v1168_v20, %v1168_v20  ;;  %v1236_v10 = vrot.slane %v1168_v20, %v6744_v21  ;;  %v1240_v11 = vrot.slane %v1176_v27, %v6744_v21  ;;  %v1248_v32 = vrot.slane %v1161_v13, %v6744_v21 }
 0x1a7   : > { %v1309_v33 = vadd.f32 %v1232_v23, %v6630_v39  ;;  %v1175_v8 = vrot.slane %v1147_v16, %v6736_v31  ;;  %v1177_v34 = vcombine.high %v1161_v13, %v1161_v13  ;;  %v1318_v17 = vadd.f32 %v6660_v54, %v1268_v22 }
 0x1a8   : > { %v1244_v0 = vrot.slane %v1178_v24, %v6744_v21  ;;  %v6773_v55 = vadd.f32 %v6628_v38, %v1236_v10  ;;  %v1311_v3 = vadd.f32 %v1240_v11, %v6638_v43  ;;  %v6777_v20 = vadd.f32 %v1248_v32, %v6646_v47  ;;  %v6782_v13 = vpop.f32.mrb[32].mxu0 }
 0x1a9   : > { %v1194_v27 = vrot.slane %v1180_v35, %v6736_v31  ;;  %v1179_v28 = vcombine.high %v1175_v8, %v1175_v8  ;;  %v1252_v39 = vrot.slane %v1175_v8, %v6744_v21  ;;  %v1256_v16 = vrot.slane %v1177_v34, %v6744_v21  ;;  %8525 = vst [vmem:[#allocation34_spill] sm:$0xff] %v6782_v13  ;;  %v6794_v10 = vpop.f32.mrb[33].mxu0 }
 0x1aa   : > { %v6785_v54 = vadd.f32 %v6636_v42, %v1244_v0  ;;  %v5176_v23 = vclamps-f32 %v1309_v33, 5.0  ;;  %8526 = vst [vmem:[#allocation35_spill] sm:$0xff] %v6794_v10  ;;  %v5185_v11 = vclamps-f32 %v1318_v17, 5.0  ;;  %v1227_v8 = vcombine.high %v1217_v12, %v1217_v12 }
 0x1ab   : > { %v1260_v38 = vrot.slane %v1179_v28, %v6744_v21  ;;  %v6789_v43 = vadd.f32 %v6644_v46, %v1252_v39  ;;  %v6792_v47 = vadd.f32 %v1256_v16, %v6654_v51  ;;  %v1225_v35 = vcombine.high %v1203_v26, %v1203_v26 }
 0x1ac   : > { %v1196_v22 = vcombine.high %v1194_v27, %v1194_v27  ;;  %v6799_v42 = vpop.f32.mrb[34].mxu0  ;;  %v5178_v0 = vclamps-f32 %v1311_v3, 5.0  ;;  %v1357_v28 = vmul.f32 1.442695, %v5176_v23  ;;  %v5184_v46 = vclamps-f32 %v1317_v9, 5.0 }
 0x1ad   : > { %v6797_v24 = vadd.f32 %v6652_v50, %v1260_v38  ;;  %8527 = vst [vmem:[#allocation36_spill] sm:$0xff] %v6799_v42  ;;  %v6801_v32 = vpop.f32.mrb[35].mxu0  ;;  %v1375_v33 = vmul.f32 1.442695, %v5185_v11  ;;  %v1276_v51 = vrot.slane %v1227_v8, %v6744_v21  ;;  %v1272_v34 = vrot.slane %v1225_v35, %v6744_v21 }
 0x1ae   : > { %8528 = vst [vmem:[#allocation37_spill] sm:$0xff] %v6801_v32  ;;  %v1373_v39 = vmul.f32 1.442695, %v5184_v46  ;;  %v1224_v12 = vrot.slane %v1196_v22, %v6736_v31  ;;  %v1361_v26 = vmul.f32 1.442695, %v5178_v0  ;;  %v1210_v3 = vrot.slane %v1194_v27, %v6736_v31 }
 0x1af   : > { %v6807_v17 = vadd.f32 %v6668_v58, %v1276_v51  ;;  %v1319_v50 = vadd.f32 %v1272_v34, %v6670_v59  ;;  %5659 = vpow2.f32 %v1357_v28 }
 0x1b0   : > { %v1284_v9 = vrot.slane %v1224_v12, %v6744_v21  ;;  %v1228_v16 = vcombine.high %v1224_v12, %v1224_v12  ;;  %5661 = vpow2.f32 %v1375_v33  ;;  %v1280_v23 = vrot.slane %v1210_v3, %v6744_v21 }
 0x1b1   : > { %5663 = vpow2.f32 %v1373_v39  ;;  %v1226_v58 = vcombine.high %v1210_v3, %v1210_v3  ;;  %v5186_v35 = vclamps-f32 %v1319_v50, 5.0 }
 0x1b2   : > { %v6814_v38 = vadd.f32 %v6676_v62, %v1284_v9  ;;  %v1292_v11 = vrot.slane %v1228_v16, %v6744_v21  ;;  %5665 = vpow2.f32 %v1361_v26  ;;  %v6818_v59 = vadd.f32 %v1280_v23, %v6678_v63 }
 0x1b3   : > { %v1288_v8 = vrot.slane %v1226_v58, %v6744_v21  ;;  %v1377_v63 = vmul.f32 1.442695, %v5186_v35  ;;  %v5187_v58 = vclamps-f32 %v6807_v17, 5.0 }
 0x1b4   : > { %v6821_v27 = vadd.f32 %v6684_v4, %v1292_v11  ;;  %v6838_v4 = vld [vmem:[%s6833_s27] ss:$0 sm:$0xff] }
 0x1b5   : > { %v6825_v22 = vadd.f32 %v1288_v8, %v6686_v5  ;;  %5667 = vpow2.f32 %v1377_v63 }
 0x1b9   : > { %v5660_v28 = vpop.eup %5659 }
 0x1ba   : > { %v5662_v33 = vpop.eup %5661 }
 0x1bb   : > { %v5664_v39 = vpop.eup %5663  ;;  %v6844_v12 = vmul.f32 %v5662_v33, %v6838_v4  ;;  %v6861_v33 = vmul.f32 %v5660_v28, %v6838_v4 }
 0x1bc   : > { %v5666_v26 = vpop.eup %5665  ;;  %v6847_v50 = vmul.f32 %v5664_v39, %v6838_v4 }
 0x1bd   : > { %1431 = vadd.xlane.f32.xlu1 %v6844_v12  ;;  %v6865_v39 = vmul.f32 %v5666_v26, %v6838_v4 }
 0x1be   : > { %1429 = vadd.xlane.f32.xlu0 %v6847_v50 }
 0x1c0   : > { %v6827_v0 = vpop.f32.mrb[30].mxu1 }
 0x1c1   : > { %v6835_v62 = vpop.f32.mrb[31].mxu1  ;;  %1417 = vadd.xlane.f32.xlu1 %v6865_v39 }
 0x1c2   : > { %1413 = vadd.xlane.f32.xlu0 %v6861_v33 }
 0x1c4   : > { %v5495_v46 = vpop.f32.mrb[32].mxu1 }
 0x1c5   : > { %v2311_v51 = vcombine.high %v5495_v46, %v5495_v46  ;;  %v2318_v5 = vrot.slane %v5495_v46, %v6736_v31  ;;  %v6841_v34 = vpop.f32.mrb[33].mxu1 }
 0x1c6   : > { %v2262_v23 = vcombine.high %v6841_v34, %v6841_v34 }
 0x1c7   : > { %v2325_v3 = vrot.slane %v2311_v51, %v6736_v31  ;;  %v2326_v9 = vcombine.high %v2318_v5, %v2318_v5  ;;  %v2334_v16 = vrot.slane %v2318_v5, %v6736_v31 }
 0x1c8   : > { %v5500_v11 = vpop.f32.mrb[34].mxu1  ;;  %v2276_v28 = vrot.slane %v2262_v23, %v6736_v31 }
 0x1c9   : > { %v2327_v8 = vcombine.high %v2325_v3, %v2325_v3  ;;  %v2341_v35 = vrot.slane %v2325_v3, %v6736_v31  ;;  %v2348_v63 = vrot.slane %v2326_v9, %v6736_v31  ;;  %v6858_v46 = vpop.f32.mrb[35].mxu1  ;;  %v2356_v51 = vcombine.high %v2334_v16, %v2334_v16 }
 0x1ca   : > { %v2395_v5 = vrot.slane %v2334_v16, %v6744_v21 }
 0x1cb   : > { %v2355_v17 = vrot.slane %v2327_v8, %v6736_v31  ;;  %v2357_v42 = vcombine.high %v2341_v35, %v2341_v35  ;;  %v2358_v32 = vcombine.high %v2348_v63, %v2348_v63  ;;  %v2399_v13 = vrot.slane %v2348_v63, %v6744_v21 }
 0x1cc   : > { %v2403_v3 = vrot.slane %v2356_v51, %v6744_v21  ;;  %v2411_v9 = vrot.slane %v2341_v35, %v6744_v21  ;;  %v6872_v10 = vadd.f32 %v2395_v5, %v6642_v45 }
 0x1cd   : > { %v2359_v26 = vcombine.high %v2355_v17, %v2355_v17  ;;  %v2407_v16 = vrot.slane %v2358_v32, %v6744_v21  ;;  %v2415_v8 = vrot.slane %v2355_v17, %v6744_v21  ;;  %v2419_v63 = vrot.slane %v2357_v42, %v6744_v21 }
 0x1ce   : > { %v6881_v51 = vadd.f32 %v6640_v44, %v2399_v13  ;;  %v6884_v35 = vadd.f32 %v2403_v3, %v6650_v49  ;;  %v6887_v45 = vadd.f32 %v2411_v9, %v6658_v53  ;;  %v2278_v42 = vcombine.high %v2276_v28, %v2276_v28  ;;  %v5668_v44 = vpop.eup %5667 }
 0x1cf   : > { %v2423_v23 = vrot.slane %v2359_v26, %v6744_v21  ;;  %v6891_v5 = vadd.f32 %v6648_v48, %v2407_v16  ;;  %v6894_v32 = vadd.f32 %v6656_v52, %v2415_v8  ;;  %v6897_v17 = vadd.f32 %v2419_v63, %v6666_v57 }
 0x1d0   : > { %v1379_v13 = vmul.f32 1.442695, %v5187_v58  ;;  %v2870_v3 = vcombine.high %v5500_v11, %v5500_v11  ;;  %v5188_v53 = vclamps-f32 %v6818_v59, 5.0  ;;  %v2292_v9 = vrot.slane %v2276_v28, %v6736_v31 }
 0x1d1   : > { %v6900_v49 = vadd.f32 %v6664_v56, %v2423_v23  ;;  %v2306_v48 = vrot.slane %v2278_v42, %v6736_v31  ;;  %v6906_v26 = vmul.f32 %v5668_v44, %v6838_v4  ;;  %v5189_v52 = vclamps-f32 %v6814_v38, 5.0 }
 0x1d2   : > { %5669 = vpow2.f32 %v1379_v13  ;;  %v2877_v57 = vrot.slane %v5500_v11, %v6736_v31  ;;  %v2884_v58 = vrot.slane %v2870_v3, %v6736_v31  ;;  %v1381_v16 = vmul.f32 1.442695, %v5188_v53 }
 0x1d3   : > { %v2308_v56 = vcombine.high %v2292_v9, %v2292_v9  ;;  %v2310_v8 = vcombine.high %v2306_v48, %v2306_v48  ;;  %v2379_v63 = vrot.slane %v2292_v9, %v6744_v21  ;;  %1433 = vadd.xlane.f32.xlu0 %v6906_v26  ;;  %v2383_v59 = vrot.slane %v2306_v48, %v6744_v21 }
 0x1d4   : > { %v2885_v28 = vcombine.high %v2877_v57, %v2877_v57  ;;  %v2886_v23 = vcombine.high %v2884_v58, %v2884_v58  ;;  %v2893_v42 = vrot.slane %v2877_v57, %v6736_v31  ;;  %v2900_v13 = vrot.slane %v2884_v58, %v6736_v31 }
 0x1d5   : > { %v2387_v44 = vrot.slane %v2308_v56, %v6744_v21  ;;  %v2391_v38 = vrot.slane %v2310_v8, %v6744_v21  ;;  %v6918_v11 = vadd.f32 %v2379_v63, %v6626_v37  ;;  %v6922_v3 = vadd.f32 %v6624_v36, %v2383_v59 }
 0x1d6   : > { %v2907_v53 = vrot.slane %v2885_v28, %v6736_v31  ;;  %v2914_v9 = vrot.slane %v2886_v23, %v6736_v31  ;;  %v2915_v48 = vcombine.high %v2893_v42, %v2893_v42  ;;  %5671 = vpow2.f32 %v1381_v16 }
 0x1d7   : > { %v6927_v57 = vadd.f32 %v2387_v44, %v6634_v41  ;;  %v6930_v56 = vadd.f32 %v6632_v40, %v2391_v38  ;;  %v2916_v8 = vcombine.high %v2900_v13, %v2900_v13  ;;  %v2954_v58 = vrot.slane %v2893_v42, %v6744_v21 }
 0x1d8   : > { %v2917_v37 = vcombine.high %v2907_v53, %v2907_v53  ;;  %v2918_v63 = vcombine.high %v2914_v9, %v2914_v9  ;;  %v5177_v36 = vclamps-f32 %v6773_v55, 5.0  ;;  %v2958_v59 = vrot.slane %v2907_v53, %v6744_v21 }
 0x1d9   : > { %8530 = vst [vmem:[#allocation38_spill] sm:$0xff] %v6930_v56  ;;  %v2962_v28 = vrot.slane %v2915_v48, %v6744_v21  ;;  %v5180_v23 = vclamps-f32 %v6777_v20, 5.0  ;;  %v2970_v41 = vrot.slane %v2900_v13, %v6744_v21  ;;  %v2974_v40 = vrot.slane %v2914_v9, %v6744_v21 }
 0x1da   : > { %v2966_v16 = vrot.slane %v2917_v37, %v6744_v21  ;;  %v1383_v44 = vmul.f32 1.442695, %v5189_v52  ;;  %v2978_v38 = vrot.slane %v2916_v8, %v6744_v21  ;;  %v2982_v56 = vrot.slane %v2918_v63, %v6744_v21 }
 0x1db   : > { %v2821_v55 = vcombine.high %v6858_v46, %v6858_v46  ;;  %v6945_v53 = vadd.f32 %v2954_v58, %v6706_v15  ;;  %v6948_v20 = vadd.f32 %v6704_v14, %v2958_v59  ;;  %v6951_v48 = vadd.f32 %v2962_v28, %v6714_v19 }
 0x1dc   : > { %v5670_v42 = vpop.eup %5669  ;;  %v6954_v13 = vadd.f32 %v6712_v18, %v2966_v16  ;;  %v6957_v52 = vadd.f32 %v2970_v41, %v6722_v2  ;;  %v6960_v9 = vadd.f32 %v6720_v25, %v2974_v40  ;;  %v6963_v8 = vadd.f32 %v2978_v38, %v6733_v30 }
 0x1dd   : > { %v6966_v15 = vadd.f32 %v6731_v29, %v2982_v56  ;;  %v5179_v14 = vclamps-f32 %v6785_v54, 5.0  ;;  %v1359_v37 = vmul.f32 1.442695, %v5177_v36  ;;  %v5181_v19 = vclamps-f32 %v6789_v43, 5.0 }
 0x1de   : > { %8531 = vst [vmem:[#allocation39_spill] sm:$0xff] %v6963_v8  ;;  %v1365_v63 = vmul.f32 1.442695, %v5180_v23  ;;  %5673 = vpow2.f32 %v1383_v44  ;;  %v2828_v18 = vrot.slane %v6858_v46, %v6736_v31  ;;  %v2835_v25 = vrot.slane %v2821_v55, %v6736_v31 }
 0x1df   : > { %8532 = vst [vmem:[#allocation40_spill] sm:$0xff] %v6966_v15  ;;  %5675 = vpow2.f32 %v1359_v37  ;;  %v1363_v58 = vmul.f32 1.442695, %v5179_v14  ;;  %v1367_v59 = vmul.f32 1.442695, %v5181_v19  ;;  %v6977_v56 = vmul.f32 %v5670_v42, %v6838_v4 }
 0x1e0   : > { %v5672_v2 = vpop.eup %5671  ;;  %v2836_v30 = vcombine.high %v2828_v18, %v2828_v18  ;;  %v2837_v28 = vcombine.high %v2835_v25, %v2835_v25  ;;  %v2844_v29 = vrot.slane %v2828_v18, %v6736_v31  ;;  %v2851_v54 = vrot.slane %v2835_v25, %v6736_v31 }
 0x1e1   : > { %5677 = vpow2.f32 %v1365_v63  ;;  %v6980_v46 = vmul.f32 %v5672_v2, %v6838_v4  ;;  %v1703_v36 = vcombine.high %v6835_v62, %v6835_v62  ;;  %1435 = vadd.xlane.f32.xlu1 %v6977_v56 }
 0x1e2   : > { %v2858_v43 = vrot.slane %v2836_v30, %v6736_v31  ;;  %v2865_v23 = vrot.slane %v2837_v28, %v6736_v31  ;;  %v2866_v16 = vcombine.high %v2844_v29, %v2844_v29  ;;  %v2867_v41 = vcombine.high %v2851_v54, %v2851_v54 }
 0x1e3   : > { %v2922_v44 = vrot.slane %v2844_v29, %v6744_v21  ;;  %1437 = vadd.xlane.f32.xlu0 %v6980_v46  ;;  %5679 = vpow2.f32 %v1363_v58  ;;  %v2938_v14 = vrot.slane %v2851_v54, %v6744_v21  ;;  %v5190_v54 = vclamps-f32 %v6825_v22, 5.0 }
 0x1e4   : > { %v2868_v40 = vcombine.high %v2858_v43, %v2858_v43  ;;  %v2926_v38 = vrot.slane %v2858_v43, %v6744_v21  ;;  %v2869_v55 = vcombine.high %v2865_v23, %v2865_v23  ;;  %v2930_v42 = vrot.slane %v2866_v16, %v6744_v21  ;;  %v8535_v43 = vld [vmem:[#allocation14_spill] sm:$0xff] }
 0x1e5   : > { %v2942_v37 = vrot.slane %v2865_v23, %v6744_v21  ;;  %v2946_v63 = vrot.slane %v2867_v41, %v6744_v21  ;;  %v6995_v18 = vadd.f32 %v2922_v44, %v6674_v61  ;;  %v7005_v30 = vadd.f32 %v2938_v14, %v6690_v7  ;;  %v8537_v23 = vld [vmem:[#allocation18_spill] sm:$0xff]  ;;  %v8539_v41 = vld [vmem:[#allocation17_spill] sm:$0xff] }
 0x1e6   : > { %v2934_v19 = vrot.slane %v2868_v40, %v6744_v21  ;;  %v6998_v2 = vadd.f32 %v6672_v60, %v2926_v38  ;;  %v2950_v25 = vrot.slane %v2869_v55, %v6744_v21  ;;  %v7002_v58 = vadd.f32 %v2930_v42, %v6682_v1  ;;  %v7025_v44 = vld [vmem:[%s6347_s6] sm:$0xff] }
 0x1e7   : > { %8533 = vst [vmem:[#allocation41_spill] sm:$0xff] %v7005_v30  ;;  %v7008_v28 = vadd.f32 %v6688_v6, %v2942_v37  ;;  %v1710_v61 = vrot.slane %v6835_v62, %v6736_v31  ;;  %v7017_v16 = vadd.f32 %v2946_v63, %v8537_v23  ;;  %v1717_v1 = vrot.slane %v1703_v36, %v6736_v31 }
 0x1e8   : > { %v5674_v29 = vpop.eup %5673  ;;  %v7014_v60 = vadd.f32 %v8535_v43, %v2934_v19  ;;  %v7021_v7 = vadd.f32 %v8539_v41, %v2950_v25  ;;  %5681 = vpow2.f32 %v1367_v59  ;;  %v5191_v6 = vclamps-f32 %v6821_v27, 5.0  ;;  %v8541_v43 = vld [vmem:[#allocation16_spill] sm:$0xff] }
 0x1e9   : > { %8534 = vst [vmem:[#allocation42_spill] sm:$0xff] %v7008_v28  ;;  %8538 = vst [vmem:[#allocation18_spill] sm:$0xff] %v7017_v16  ;;  %v5676_v40 = vpop.eup %5675  ;;  %v7028_v22 = vmul.f32 %v5674_v29, %v6838_v4  ;;  %v1385_v38 = vmul.f32 1.442695, %v5190_v54  ;;  %v1718_v55 = vcombine.high %v1710_v61, %v1710_v61  ;;  %v1726_v42 = vrot.slane %v1710_v61, %v6736_v31 }
 0x1ea   : > { %8536 = vst [vmem:[#allocation14_spill] sm:$0xff] %v7014_v60  ;;  %8540 = vst [vmem:[#allocation17_spill] sm:$0xff] %v7021_v7  ;;  %v1719_v14 = vcombine.high %v1717_v1, %v1717_v1  ;;  %v1578_v36 = vmul.f32 %v6847_v50, %v7025_v44  ;;  %v1387_v59 = vmul.f32 1.442695, %v5191_v6  ;;  %v1579_v27 = vmul.f32 %v6844_v12, %v7025_v44 }
 0x1eb   : > { %v5678_v62 = vpop.eup %5677  ;;  %1439 = vadd.xlane.f32.xlu1 %v7028_v22  ;;  %5683 = vpow2.f32 %v1385_v38  ;;  %v1740_v19 = vrot.slane %v1718_v55, %v6736_v31  ;;  %v1804_v63 = vrot.slane %v1726_v42, %v6744_v21  ;;  %v1759_v25 = vrot.slane %v6827_v0, %v6736_v31 }
 0x1ec   : > { %3332 = vadd.xlane.f32.xlu0 %v1578_v36  ;;  %v1396_v29 = vmul.f32 %v5676_v40, %v6838_v4  ;;  %v1748_v54 = vcombine.high %v1726_v42, %v1726_v42  ;;  %v1747_v50 = vrot.slane %v1719_v14, %v6736_v31  ;;  %5685 = vpow2.f32 %v1387_v59  ;;  %v8542_v14 = vld [vmem:[#allocation15_spill] sm:$0xff] }
 0x1ed   : > { %v5680_v37 = vpop.eup %5679  ;;  %v1808_v61 = vrot.slane %v1740_v19, %v6744_v21  ;;  %v7044_v23 = vadd.f32 %v1804_v63, %v8541_v43  ;;  %v1750_v12 = vcombine.high %v1740_v19, %v1740_v19  ;;  %v5182_v41 = vclamps-f32 %v6792_v47, 5.0  ;;  %v8544_v63 = vld [vmem:[#allocation21_spill] sm:$0xff] }
 0x1ee   : > { %v7048_v6 = vmul.f32 %v5680_v37, %v6838_v4  ;;  %v1812_v38 = vrot.slane %v1748_v54, %v6744_v21  ;;  %v1824_v40 = vrot.slane %v1747_v50, %v6744_v21  ;;  %v1752_v42 = vcombine.high %v6827_v0, %v6827_v0  ;;  %v8543_v37 = vld [vmem:[#allocation20_spill] sm:$0xff] }
 0x1ef   : > { %3334 = vadd.xlane.f32.xlu1 %v1579_v27  ;;  %v7055_v36 = vadd.f32 %v8542_v14, %v1808_v61  ;;  %v1816_v59 = vrot.slane %v1750_v12, %v6744_v21  ;;  %v1733_v27 = vrot.slane %v1717_v1, %v6736_v31  ;;  %v7061_v47 = vmul.f32 %v5678_v62, %v6838_v4  ;;  %v8545_v14 = vld [vmem:[#allocation19_spill] sm:$0xff] }
 0x1f0   : > { %1415 = vadd.xlane.f32.xlu0 %v1396_v29  ;;  %v7064_v19 = vadd.f32 %v1812_v38, %v8543_v37  ;;  %v7067_v54 = vadd.f32 %v8544_v63, %v1824_v40  ;;  %v1751_v43 = vcombine.high %v1747_v50, %v1747_v50  ;;  %v5183_v0 = vclamps-f32 %v6797_v24, 5.0  ;;  %v8546_v24 = vld [vmem:[#allocation22_spill] sm:$0xff] }
 0x1f1   : > { %v1767_v61 = vcombine.high %v1759_v25, %v1759_v25  ;;  %v7071_v7 = vadd.f32 %v8545_v14, %v1816_v59  ;;  %v1820_v1 = vrot.slane %v1733_v27, %v6744_v21  ;;  %v1749_v38 = vcombine.high %v1733_v27, %v1733_v27  ;;  %v8547_v14 = vld [vmem:[#allocation23_spill] sm:$0xff] }
 0x1f2   : > { %v5682_v55 = vpop.eup %5681  ;;  %v1832_v12 = vrot.slane %v1751_v43, %v6744_v21  ;;  %v1369_v37 = vmul.f32 1.442695, %v5182_v41  ;;  %v1766_v40 = vrot.slane %v1752_v42, %v6736_v31  ;;  %v1775_v50 = vrot.slane %v1759_v25, %v6736_v31  ;;  %v8548_v25 = vld [vmem:[#allocation24_spill] sm:$0xff] }
 0x1f3   : > { %1419 = vadd.xlane.f32.xlu1 %v7048_v6  ;;  %v7076_v62 = vmul.f32 %v5682_v55, %v6838_v4  ;;  %v7082_v63 = vadd.f32 %v1820_v1, %v8546_v24  ;;  %v1570_v59 = vmul.f32 %v6861_v33, %v7025_v44  ;;  %v1828_v55 = vrot.slane %v1749_v38, %v6744_v21 }
 0x1f4   : > { %1421 = vadd.xlane.f32.xlu0 %v7061_v47  ;;  %v1888_v16 = vadd.f32 %v8547_v14, %v1832_v12  ;;  %v1371_v43 = vmul.f32 1.442695, %v5183_v0  ;;  %v1789_v41 = vrot.slane %v1767_v61, %v6736_v31  ;;  %v1571_v42 = vmul.f32 %v1396_v29, %v7025_v44  ;;  %v8549_v0 = vld [vmem:[#allocation26_spill] sm:$0xff] }
 0x1f5   : > { %v5684_v15 = vpop.eup %5683  ;;  %v1887_v27 = vadd.f32 %v1828_v55, %v8548_v25  ;;  %5687 = vpow2.f32 %v1369_v37  ;;  %v1768_v24 = vcombine.high %v1766_v40, %v1766_v40  ;;  %v1836_v33 = vrot.slane %v1775_v50, %v6744_v21 }
 0x1f6   : > { %v5686_v1 = vpop.eup %5685  ;;  %v1840_v8 = vrot.slane %v1789_v41, %v6744_v21  ;;  %v7095_v12 = vmul.f32 %v5684_v15, %v6838_v4  ;;  %v1799_v38 = vcombine.high %v1789_v41, %v1789_v41  ;;  %5689 = vpow2.f32 %v1371_v43  ;;  %v8551_v43 = vld [vmem:[#allocation28_spill] sm:$0xff] }
 0x1f7   : > { %1423 = vadd.xlane.f32.xlu1 %v7076_v62  ;;  %v7103_v37 = vmul.f32 %v5686_v1, %v6838_v4  ;;  %v1797_v55 = vcombine.high %v1775_v50, %v1775_v50  ;;  %v1580_v15 = vmul.f32 %v6906_v26, %v7025_v44  ;;  %v1782_v25 = vrot.slane %v1766_v40, %v6736_v31  ;;  %v8552_v26 = vld [vmem:[#allocation29_spill] sm:$0xff] }
 0x1f8   : > { %3316 = vadd.xlane.f32.xlu0 %v1570_v59  ;;  %v7098_v61 = vadd.f32 %v8549_v0, %v1840_v8  ;;  %v8550_v59 = vld [vmem:[#allocation27_spill] sm:$0xff]  ;;  %v1848_v14 = vrot.slane %v1799_v38, %v6744_v21  ;;  %v2269_v1 = vrot.slane %v6841_v34, %v6736_v31  ;;  %v5201_v0 = vclamps-f32 %v1887_v27, 5.0  ;;  %v8555_v27 = vld [vmem:[#allocation32_spill] sm:$0xff] }
 0x1f9   : > { %v1889_v29 = vadd.f32 %v1836_v33, %v8550_v59  ;;  %v1844_v41 = vrot.slane %v1797_v55, %v6744_v21  ;;  %v5202_v33 = vclamps-f32 %v1888_v16, 5.0  ;;  %v1798_v28 = vcombine.high %v1782_v25, %v1782_v25  ;;  %v8554_v16 = vld [vmem:[#allocation31_spill] sm:$0xff] }
 0x1fa   : > { %v7111_v8 = vadd.f32 %v8551_v43, %v1848_v14  ;;  %v1852_v14 = vrot.slane %v1782_v25, %v6744_v21  ;;  %v8553_v43 = vld [vmem:[#allocation30_spill] sm:$0xff]  ;;  %v1582_v34 = vmul.f32 %v6980_v46, %v7025_v44  ;;  %v1583_v25 = vmul.f32 %v7028_v22, %v7025_v44 }
 0x1fb   : > { %3318 = vadd.xlane.f32.xlu1 %v1571_v42  ;;  %v1796_v42 = vrot.slane %v1768_v24, %v6736_v31  ;;  %v1581_v24 = vmul.f32 %v6977_v56, %v7025_v44  ;;  %v1891_v59 = vadd.f32 %v1844_v41, %v8552_v26  ;;  %v1943_v30 = vmul.f32 1.442695, %v5202_v33 }
 0x1fc   : > { %1441 = vadd.xlane.f32.xlu0 %v7095_v12  ;;  %v5203_v56 = vclamps-f32 %v1889_v29, 5.0  ;;  %v1860_v41 = vrot.slane %v1798_v28, %v6744_v21  ;;  %v2277_v26 = vcombine.high %v2269_v1, %v2269_v1  ;;  %v5195_v46 = vclamps-f32 %v7044_v23, 5.0 }
 0x1fd   : > { %v1856_v50 = vrot.slane %v1796_v42, %v6744_v21  ;;  %v1800_v38 = vcombine.high %v1796_v42, %v1796_v42  ;;  %v1893_v42 = vadd.f32 %v1852_v14, %v8554_v16  ;;  %v8556_v14 = vld [vmem:[#allocation33_spill] sm:$0xff]  ;;  %5691 = vpow2.f32 %v1943_v30 }
 0x1fe   : > { %v7136_v16 = vadd.f32 %v1860_v41, %v8556_v14  ;;  %v1945_v28 = vmul.f32 1.442695, %v5203_v56  ;;  %v5205_v33 = vclamps-f32 %v1891_v59, 5.0  ;;  %v2299_v22 = vrot.slane %v2277_v26, %v6736_v31 }
 0x1ff   : > { %1443 = vadd.xlane.f32.xlu1 %v7103_v37  ;;  %v7123_v55 = vadd.f32 %v8553_v43, %v1856_v50  ;;  %v1864_v40 = vrot.slane %v1800_v38, %v6744_v21  ;;  %v2285_v50 = vrot.slane %v2269_v1, %v6736_v31  ;;  %v1941_v38 = vmul.f32 1.442695, %v5201_v0 }
 0x200   : > { %3336 = vadd.xlane.f32.xlu0 %v1580_v15  ;;  %v5688_v15 = vpop.eup %5687  ;;  %v1929_v23 = vmul.f32 1.442695, %v5195_v46  ;;  %v2367_v30 = vrot.slane %v2299_v22, %v6744_v21  ;;  %v2309_v56 = vcombine.high %v2299_v22, %v2299_v22  ;;  %v1949_v41 = vmul.f32 1.442695, %v5205_v33 }
 0x201   : > { %v1896_v60 = vadd.f32 %v8555_v27, %v1864_v40  ;;  %v1401_v29 = vmul.f32 %v5688_v15, %v6838_v4  ;;  %5693 = vpow2.f32 %v1941_v38  ;;  %v2363_v0 = vrot.slane %v2285_v50, %v6744_v21  ;;  %v8557_v15 = vld [vmem:[#allocation35_spill] sm:$0xff] }
 0x202   : > { %v5204_v27 = vclamps-f32 %v7098_v61, 5.0  ;;  %v1573_v26 = vmul.f32 %v7048_v6, %v7025_v44  ;;  %v5207_v38 = vclamps-f32 %v1893_v42, 5.0  ;;  %v1574_v61 = vmul.f32 %v7061_v47, %v7025_v44 }
 0x203   : > { %3338 = vadd.xlane.f32.xlu1 %v1581_v24  ;;  %v5690_v24 = vpop.eup %5689  ;;  %v5210_v43 = vclamps-f32 %v1896_v60, 5.0  ;;  %v2307_v60 = vcombine.high %v2285_v50, %v2285_v50  ;;  %v7146_v59 = vadd.f32 %v2363_v0, %v8557_v15  ;;  %v8558_v50 = vld [vmem:[#allocation34_spill] sm:$0xff]  ;;  %v5226_v6 = vclamps-f32 %v6894_v32, 5.0 }
 0x204   : > { %3340 = vadd.xlane.f32.xlu0 %v1582_v34  ;;  %v1402_v1 = vmul.f32 %v5690_v24, %v6838_v4  ;;  %v1572_v34 = vmul.f32 %v6865_v39, %v7025_v44  ;;  %v2375_v39 = vrot.slane %v2309_v56, %v6744_v21  ;;  %v8559_v24 = vld [vmem:[#allocation37_spill] sm:$0xff]  ;;  %v1575_v33 = vmul.f32 %v7076_v62, %v7025_v44  ;;  %v7181_v56 = vld [vmem:[%s6347_s6 + $0x8] sm:$0xff] }
 0x205   : > { %v1959_v40 = vmul.f32 1.442695, %v5210_v43  ;;  %v2371_v31 = vrot.slane %v2307_v60, %v6744_v21  ;;  %v8560_v43 = vld [vmem:[#allocation36_spill] sm:$0xff]  ;;  %v1584_v0 = vmul.f32 %v7095_v12, %v7025_v44  ;;  %v2514_v60 = vmul.f32 1.442695, %v5226_v6 }
 0x206   : > { %v7162_v14 = vadd.f32 %v8560_v43, %v2375_v39  ;;  %v1585_v32 = vmul.f32 %v7103_v37, %v7025_v44  ;;  %v1576_v12 = vmul.f32 %v1401_v29, %v7025_v44  ;;  %v5197_v39 = vclamps-f32 %v7064_v19, 5.0 }
 0x207   : > { %3342 = vadd.xlane.f32.xlu1 %v1583_v25  ;;  %5695 = vpow2.f32 %v1959_v40  ;;  %v7153_v25 = vadd.f32 %v8558_v50, %v2367_v30  ;;  %v7157_v46 = vadd.f32 %v2371_v31, %v8559_v24  ;;  %v5692_v42 = vpop.eup %5691  ;;  %v1953_v40 = vmul.f32 1.442695, %v5207_v38 }
 0x208   : > { %1425 = vadd.xlane.f32.xlu0 %v1401_v29  ;;  %5697 = vpow2.f32 %v1945_v28  ;;  %v1947_v28 = vmul.f32 1.442695, %v5204_v27  ;;  %v5196_v30 = vclamps-f32 %v7055_v36, 5.0  ;;  %v5208_v27 = vclamps-f32 %v7123_v55, 5.0 }
 0x209   : > { %5699 = vpow2.f32 %v1929_v23  ;;  %v5206_v23 = vclamps-f32 %v7111_v8, 5.0  ;;  %v7185_v37 = vmul.f32 %v5692_v42, %v6838_v4  ;;  %v1577_v31 = vmul.f32 %v1402_v1, %v7025_v44 }
 0x20a   : > { %5701 = vpow2.f32 %v1949_v41  ;;  %v1931_v50 = vmul.f32 1.442695, %v5196_v30  ;;  %v1955_v38 = vmul.f32 1.442695, %v5208_v27  ;;  %v1933_v19 = vmul.f32 1.442695, %v5197_v39 }
 0x20b   : > { %1427 = vadd.xlane.f32.xlu1 %v1402_v1  ;;  %v5694_v22 = vpop.eup %5693  ;;  %5703 = vpow2.f32 %v1947_v28  ;;  %v1951_v8 = vmul.f32 1.442695, %v5206_v23  ;;  %v7200_v24 = vmul.f32 %v7185_v37, %v7181_v56  ;;  %v5199_v43 = vclamps-f32 %v7082_v63, 5.0 }
 0x20c   : > { %3320 = vadd.xlane.f32.xlu0 %v1572_v34  ;;  %5705 = vpow2.f32 %v1953_v40  ;;  %v7177_v15 = vmul.f32 %v5694_v22, %v6838_v4  ;;  %v5198_v6 = vclamps-f32 %v7071_v7, 5.0  ;;  %v5209_v40 = vclamps-f32 %v7136_v16, 5.0 }
 0x20d   : > { %5707 = vpow2.f32 %v2514_v60  ;;  %v1937_v42 = vmul.f32 1.442695, %v5199_v43  ;;  %v6081_v23 = vmov 0.0   ;;  %v7230_v60 = vld [vmem:[%s6347_s6 + $0x10] sm:$0xff]  ;;  %v5213_v30 = vclamps-f32 %v7146_v59, 5.0 }
 0x20e   : > { %v7196_v55 = vmul.f32 %v7177_v15, %v7181_v56  ;;  %5709 = vpow2.f32 %v1951_v8  ;;  %v1935_v63 = vmul.f32 1.442695, %v5198_v6  ;;  %564 = vst.msk [vmem:[#allocation3 + $0x8] sm:$0xff] %vm562_vm0, %v6081_v23  ;;  %563 = vst.msk [vmem:[#allocation3] sm:$0xff] %vm562_vm0, %v6081_v23 }
 0x20f   : > { %3322 = vadd.xlane.f32.xlu1 %v1573_v26  ;;  %5711 = vpow2.f32 %v1931_v50  ;;  %565 = vst.msk [vmem:[#allocation3 + $0x10] sm:$0xff] %vm562_vm0, %v6081_v23  ;;  %566 = vst.msk [vmem:[#allocation3 + $0x18] sm:$0xff] %vm562_vm0, %v6081_v23  ;;  %v2488_v50 = vmul.f32 1.442695, %v5213_v30 }
 0x210   : > { %3324 = vadd.xlane.f32.xlu0 %v1574_v61  ;;  %5713 = vpow2.f32 %v1955_v38  ;;  %567 = vst.msk [vmem:[#allocation3 + $0x20] sm:$0xff] %vm562_vm0, %v6081_v23  ;;  %568 = vst.msk [vmem:[#allocation3 + $0x28] sm:$0xff] %vm562_vm0, %v6081_v23 }
 0x211   : > { %v5696_v47 = vpop.eup %5695  ;;  %5715 = vpow2.f32 %v1933_v19  ;;  %569 = vst.msk [vmem:[#allocation3 + $0x30] sm:$0xff] %vm562_vm0, %v6081_v23  ;;  %570 = vst.msk [vmem:[#allocation3 + $0x38] sm:$0xff] %vm562_vm0, %v6081_v23 }
 0x212   : > { %v7173_v34 = vmul.f32 %v5696_v47, %v6838_v4  ;;  %v5698_v62 = vpop.eup %5697  ;;  %v5200_v47 = vclamps-f32 %v7067_v54, 5.0  ;;  %v5221_v54 = vclamps-f32 %v6872_v10, 5.0  ;;  %5717 = vpow2.f32 %v1937_v42 }
 0x213   : > { %3326 = vadd.xlane.f32.xlu1 %v1575_v33  ;;  %v5700_v36 = vpop.eup %5699  ;;  %v1969_v26 = vmul.f32 %v5698_v62, %v6838_v4  ;;  %v1957_v62 = vmul.f32 1.442695, %v5209_v40  ;;  %5719 = vpow2.f32 %v1935_v63 }
 0x214   : > { %3344 = vadd.xlane.f32.xlu0 %v1584_v0  ;;  %v7189_v41 = vmul.f32 %v7173_v34, %v7181_v56  ;;  %v5702_v29 = vpop.eup %5701  ;;  %v1961_v44 = vmul.f32 %v5700_v36, %v6838_v4  ;;  %v1939_v10 = vmul.f32 1.442695, %v5200_v47  ;;  %v2504_v36 = vmul.f32 1.442695, %v5221_v54 }
 0x215   : > { %v7204_v1 = vmul.f32 %v5702_v29, %v6838_v4  ;;  %v5704_v61 = vpop.eup %5703  ;;  %v2137_v8 = vmul.f32 %v1969_v26, %v7181_v56  ;;  %5721 = vpow2.f32 %v1957_v62  ;;  %v5223_v62 = vclamps-f32 %v6884_v35, 5.0 }
 0x216   : > { %v5706_v28 = vpop.eup %5705  ;;  %v1970_v33 = vmul.f32 %v5704_v61, %v6838_v4  ;;  %v2129_v16 = vmul.f32 %v1961_v44, %v7181_v56  ;;  %5723 = vpow2.f32 %v1939_v10  ;;  %v5222_v61 = vclamps-f32 %v6881_v51, 5.0 }
 0x217   : > { %3346 = vadd.xlane.f32.xlu1 %v1585_v32  ;;  %v5708_v22 = vpop.eup %5707  ;;  %v7212_v0 = vmul.f32 %v5706_v28, %v6838_v4  ;;  %5725 = vpow2.f32 %v2504_v36  ;;  %v5225_v10 = vclamps-f32 %v6887_v45, 5.0  ;;  %v2508_v36 = vmul.f32 1.442695, %v5223_v62 }
 0x218   : > { %3328 = vadd.xlane.f32.xlu0 %v1576_v12  ;;  %v7216_v7 = vmul.f32 %v5708_v22, %v6838_v4  ;;  %v5710_v32 = vpop.eup %5709  ;;  %5727 = vpow2.f32 %v2488_v50  ;;  %v2138_v19 = vmul.f32 %v1970_v33, %v7181_v56  ;;  %v2506_v42 = vmul.f32 1.442695, %v5222_v61 }
 0x219   : > { %v5712_v27 = vpop.eup %5711  ;;  %v2141_v30 = vmul.f32 %v7212_v0, %v7181_v56  ;;  %v5214_v45 = vclamps-f32 %v7153_v25, 5.0  ;;  %v5217_v25 = vclamps-f32 %v6918_v11, 5.0  ;;  %v5228_v62 = vclamps-f32 %v6900_v49, 5.0 }
 0x21a   : > { %v7235_v12 = vmul.f32 %v7216_v7, %v7230_v60  ;;  %v5714_v29 = vpop.eup %5713  ;;  %v1962_v59 = vmul.f32 %v5712_v27, %v6838_v4  ;;  %5729 = vpow2.f32 %v2506_v42  ;;  %v5231_v42 = vclamps-f32 %v6995_v18, 5.0 }
 0x21b   : > { %3330 = vadd.xlane.f32.xlu1 %v1577_v31  ;;  %v1972_v31 = vmul.f32 %v5710_v32, %v6838_v4  ;;  %v5716_v39 = vpop.eup %5715  ;;  %v1974_v38 = vmul.f32 %v5714_v29, %v6838_v4  ;;  %5731 = vpow2.f32 %v2508_v36  ;;  %v5239_v18 = vclamps-f32 %v6945_v53, 5.0 }
 0x21c   : > { %1996 = vadd.xlane.f32.xlu0 %v1969_v26  ;;  %v1963_v26 = vmul.f32 %v5716_v39, %v6838_v4  ;;  %v2518_v49 = vmul.f32 1.442695, %v5228_v62 }
 0x21d   : > { %v2140_v35 = vmul.f32 %v1972_v31, %v7181_v56  ;;  %v2142_v50 = vmul.f32 %v1974_v38, %v7181_v56 }
 0x21e   : > { %v2131_v39 = vmul.f32 %v1963_v26, %v7181_v56 }
 0x21f   : > { %1980 = vadd.xlane.f32.xlu1 %v1961_v44  ;;  %v5718_v44 = vpop.eup %5717 }
 0x220   : > { %2000 = vadd.xlane.f32.xlu0 %v7204_v1  ;;  %v5720_v43 = vpop.eup %5719  ;;  %v1965_v28 = vmul.f32 %v5718_v44, %v6838_v4  ;;  %v5216_v44 = vclamps-f32 %v7162_v14, 5.0 }
 0x221   : > { %v5722_v6 = vpop.eup %5721  ;;  %v1964_v40 = vmul.f32 %v5720_v43, %v6838_v4 }
 0x222   : > { %v5724_v22 = vpop.eup %5723  ;;  %v7247_v47 = vmul.f32 %v5722_v6, %v6838_v4 }
 0x223   : > { %1998 = vadd.xlane.f32.xlu1 %v1970_v33  ;;  %v5726_v63 = vpop.eup %5725  ;;  %v1966_v51 = vmul.f32 %v5724_v22, %v6838_v4 }
 0x224   : > { %2004 = vadd.xlane.f32.xlu0 %v7212_v0  ;;  %v5728_v23 = vpop.eup %5727  ;;  %v7252_v33 = vmul.f32 %v5726_v63, %v6838_v4  ;;  %v2130_v0 = vmul.f32 %v1962_v59, %v7181_v56  ;;  %v2143_v22 = vmul.f32 %v7247_v47, %v7181_v56 }
 0x225   : > { %v7255_v54 = vmul.f32 %v5728_v23, %v6838_v4  ;;  %v5730_v32 = vpop.eup %5729  ;;  %v2134_v43 = vmul.f32 %v1966_v51, %v7181_v56  ;;  %v3047_v23 = vmul.f32 1.442695, %v5231_v42  ;;  %v8562_v42 = vlaneseq }
 0x226   : > { %v7266_v27 = vmul.f32 %v5730_v32, %v6838_v4 }
 0x227   : > { %3784 = vadd.xlane.f32.xlu1 %v2129_v16  ;;  %v2139_v16 = vmul.f32 %v7204_v1, %v7181_v56  ;;  %v5224_v1 = vclamps-f32 %v6891_v5, 5.0  ;;  %v2490_v5 = vmul.f32 1.442695, %v5214_v45 }
 0x228   : > { %3800 = vadd.xlane.f32.xlu0 %v2137_v8  ;;  %v6082_v8 = vmov 0  }
 0x229   : > { %5657 = vset.pattern.permute.xlu1 %v6082_v8  ;;  %5658 = vset.pattern.permute.xlu0 %v6082_v8  ;;  %v2510_v29 = vmul.f32 1.442695, %v5224_v1  ;;  %v7322_v1 = vld [vmem:[%s6833_s27] ss:$0 sm:$0xff] }
 0x22b   : > { %2002 = vadd.xlane.f32.xlu1 %v1972_v31  ;;  %v2133_v31 = vmul.f32 %v1965_v28, %v7181_v56 }
 0x22c   : > { %1982 = vadd.xlane.f32.xlu0 %v1962_v59  ;;  %v5732_v59 = vpop.eup %5731 }
 0x22f   : > { %2006 = vadd.xlane.f32.xlu1 %v1974_v38  ;;  %v2132_v38 = vmul.f32 %v1964_v40, %v7181_v56 }
 0x230   : > { %1984 = vadd.xlane.f32.xlu0 %v1963_v26  ;;  %v7284_v26 = vmul.f32 %v5732_v59, %v6838_v4  ;;  %v5242_v59 = vclamps-f32 %v6954_v13, 5.0  ;;  %v5244_v13 = vclamps-f32 %v6960_v9, 5.0 }
 0x232   : > { %v3073_v9 = vmul.f32 1.442695, %v5244_v13 }
 0x233   : > { %3802 = vadd.xlane.f32.xlu1 %v2138_v19 }
 0x234   : > { %1988 = vadd.xlane.f32.xlu0 %v1965_v28  ;;  %v2496_v28 = vmul.f32 1.442695, %v5217_v25 }
 0x237   : > { %1986 = vadd.xlane.f32.xlu1 %v1964_v40  ;;  %v5227_v40 = vclamps-f32 %v6897_v17, 5.0 }
 0x238   : > { %2008 = vadd.xlane.f32.xlu0 %v7247_v47  ;;  %v5219_v47 = vclamps-f32 %v6927_v57, 5.0 }
 0x23b   : > { %1990 = vadd.xlane.f32.xlu1 %v1966_v51  ;;  %v2516_v51 = vmul.f32 1.442695, %v5227_v40  ;;  %v1462_v40 = vand.u32 127, %v8562_v42 }
 0x23c   : > { %2555 = vadd.xlane.f32.xlu0 %v7252_v33 }
 0x23f   : > { %2539 = vadd.xlane.f32.xlu1 %v7255_v54 }
 0x240   : > { %3804 = vadd.xlane.f32.xlu0 %v2139_v16 }
 0x243   : > { %2010 = vadd.xlane.f32.xlu1 %v7173_v34  ;;  %v2512_v34 = vmul.f32 1.442695, %v5225_v10  ;;  %v5240_v10 = vclamps-f32 %v6948_v20, 5.0 }
 0x244   : > { %3808 = vadd.xlane.f32.xlu0 %v2141_v30  ;;  %v3063_v30 = vmul.f32 1.442695, %v5239_v18  ;;  %v8564_v18 = vld [vmem:[#allocation41_spill] sm:$0xff] }
 0x245   : > { %5733 = vpow2.f32 %v2512_v34  ;;  %v2500_v34 = vmul.f32 1.442695, %v5219_v47  ;;  %v3065_v20 = vmul.f32 1.442695, %v5240_v10  ;;  %v8567_v10 = vld [vmem:[#allocation42_spill] sm:$0xff] }
 0x246   : > { %5735 = vpow2.f32 %v2510_v29  ;;  %v8561_v29 = vld [vmem:[#allocation38_spill] sm:$0xff] }
 0x247   : > { %2557 = vadd.xlane.f32.xlu1 %v7266_v27  ;;  %5737 = vpow2.f32 %v2490_v5 }
 0x248   : > { %1992 = vadd.xlane.f32.xlu0 %v7177_v15  ;;  %v5215_v15 = vclamps-f32 %v7157_v46, 5.0  ;;  %v5218_v46 = vclamps-f32 %v6922_v3, 5.0 }
 0x24a   : > { %v2492_v61 = vmul.f32 1.442695, %v5215_v15  ;;  %v2498_v6 = vmul.f32 1.442695, %v5218_v46  ;;  %v7311_v8 = vpop.xlane.xlu1 %1431 }
 0x24b   : > { %3806 = vadd.xlane.f32.xlu1 %v2140_v35  ;;  %v7302_v16 = vpop.xlane.xlu0 %1429 }
 0x24c   : > { %3786 = vadd.xlane.f32.xlu0 %v2130_v0  ;;  %5739 = vpow2.f32 %v2492_v61 }
 0x24e   : > { %v7332_v0 = vpop.xlane.xlu1 %1417 }
 0x24f   : > { %3810 = vadd.xlane.f32.xlu1 %v2142_v50  ;;  %v5734_v19 = vpop.eup %5733  ;;  %v7318_v36 = vpop.xlane.xlu0 %1413  ;;  %v5220_v50 = vclamps-f32 %v8561_v29, 5.0 }
 0x250   : > { %3788 = vadd.xlane.f32.xlu0 %v2131_v39  ;;  %v5736_v14 = vpop.eup %5735  ;;  %v7290_v11 = vmul.f32 %v5734_v19, %v6838_v4 }
 0x251   : > { %v7295_v3 = vmul.f32 %v5736_v14, %v6838_v4  ;;  %v5738_v63 = vpop.eup %5737 }
 0x252   : > { %v7306_v32 = vmul.f32 %v5738_v63, %v6838_v4 }
 0x253   : > { %1994 = vadd.xlane.f32.xlu1 %v7185_v37  ;;  %v2494_v37 = vmul.f32 1.442695, %v5216_v44  ;;  %v2502_v44 = vmul.f32 1.442695, %v5220_v50 }
 0x254   : > { %3792 = vadd.xlane.f32.xlu0 %v2133_v31 }
 0x255   : > { %5741 = vpow2.f32 %v2494_v37  ;;  %v3069_v37 = vmul.f32 1.442695, %v5242_v59 }
 0x256   : > { %5743 = vpow2.f32 %v2496_v28  ;;  %v5740_v17 = vpop.eup %5739 }
 0x257   : > { %3790 = vadd.xlane.f32.xlu1 %v2132_v38  ;;  %5745 = vpow2.f32 %v2498_v6  ;;  %v7315_v53 = vmul.f32 %v5740_v17, %v6838_v4 }
 0x258   : > { %2559 = vadd.xlane.f32.xlu0 %v7284_v26  ;;  %5747 = vpow2.f32 %v3047_v23 }
 0x259   : > { %5749 = vpow2.f32 %v2516_v51 }
 0x25a   : > { %5751 = vpow2.f32 %v3063_v30  ;;  %v8565_v30 = vld [vmem:[#allocation25_spill] sm:$0xff] }
 0x25b   : > { %3794 = vadd.xlane.f32.xlu1 %v2134_v43  ;;  %5753 = vpow2.f32 %v2518_v49  ;;  %v5236_v49 = vclamps-f32 %v8567_v10, 5.0 }
 0x25c   : > { %2563 = vadd.xlane.f32.xlu0 %v7290_v11  ;;  %5755 = vpow2.f32 %v2500_v34 }
 0x25d   : > { %5757 = vpow2.f32 %v3065_v20 }
 0x25f   : > { %2561 = vadd.xlane.f32.xlu1 %v7295_v3  ;;  %v5742_v56 = vpop.eup %5741 }
 0x260   : > { %3812 = vadd.xlane.f32.xlu0 %v2143_v22  ;;  %v7325_v57 = vmul.f32 %v7322_v1, %v5742_v56  ;;  %v7340_v15 = vpop.xlane.xlu0 %1433  ;;  %v8563_v22 = vld [vmem:[#allocation14_spill] sm:$0xff] }
 0x261   : > { %v5234_v63 = vclamps-f32 %v8563_v22, 5.0 }
 0x263   : > { %2565 = vadd.xlane.f32.xlu1 %v7216_v7  ;;  %v5744_v7 = vpop.eup %5743 }
 0x264   : > { %2541 = vadd.xlane.f32.xlu0 %v7306_v32  ;;  %v5746_v35 = vpop.eup %5745  ;;  %v7330_v4 = vmul.f32 %v7322_v1, %v5744_v7  ;;  %v7380_v7 = vsub.s32 %v1462_v40, %v8565_v30 }
 0x265   : > { %v7337_v45 = vmul.f32 %v7322_v1, %v5746_v35  ;;  %v5748_v39 = vpop.eup %5747  ;;  %v3053_v35 = vmul.f32 1.442695, %v5234_v63 }
 0x266   : > { %v5750_v31 = vpop.eup %5749  ;;  %v7346_v38 = vmul.f32 %v7322_v1, %v5748_v39  ;;  %8566 = vst [vmem:[#allocation16_spill] sm:$0xff] %v7380_v7  ;;  %v1498_v13 = vrot.slane %v7302_v16, %v7380_v7 }
 0x267   : > { %3814 = vadd.xlane.f32.xlu1 %v7189_v41  ;;  %v5241_v41 = vclamps-f32 %v6951_v48, 5.0  ;;  %v5243_v48 = vclamps-f32 %v6957_v52, 5.0  ;;  %v5232_v52 = vclamps-f32 %v6998_v2, 5.0  ;;  %v7353_v19 = vmul.f32 %v7322_v1, %v5750_v31  ;;  %v5752_v46 = vpop.eup %5751  ;;  %v8569_v31 = vld [vmem:[#allocation40_spill] sm:$0xff] }
 0x268   : > { %2543 = vadd.xlane.f32.xlu0 %v7315_v53  ;;  %v5233_v2 = vclamps-f32 %v7002_v58, 5.0  ;;  %v7362_v28 = vmul.f32 %v7322_v1, %v5752_v46  ;;  %v5246_v59 = vclamps-f32 %v8569_v31, 5.0  ;;  %v3057_v46 = vmul.f32 1.442695, %v5236_v49 }
 0x269   : > { %v3067_v5 = vmul.f32 1.442695, %v5241_v41  ;;  %v3071_v25 = vmul.f32 1.442695, %v5243_v48  ;;  %v3049_v14 = vmul.f32 1.442695, %v5232_v52  ;;  %v1502_v48 = vrot.slane %v7311_v8, %v7380_v7 }
 0x26a   : > { %v3051_v17 = vmul.f32 1.442695, %v5233_v2  ;;  %v8568_v41 = vld [vmem:[#allocation39_spill] sm:$0xff]  ;;  %v8570_v2 = vld [vmem:[#allocation18_spill] sm:$0xff]  ;;  %v3077_v63 = vmul.f32 1.442695, %v5246_v59 }
 0x26b   : > { %2545 = vadd.xlane.f32.xlu1 %v7325_v57  ;;  %5759 = vpow2.f32 %v3067_v5  ;;  %v5245_v20 = vclamps-f32 %v8568_v41, 5.0 }
 0x26c   : > { %2547 = vadd.xlane.f32.xlu0 %v7330_v4  ;;  %5761 = vpow2.f32 %v2502_v44  ;;  %v1506_v44 = vrot.slane %v7340_v15, %v7380_v7 }
 0x26d   : > { %5763 = vpow2.f32 %v3071_v25 }
 0x26e   : > { %v7349_v61 = vpop.xlane.xlu1 %1435  ;;  %5765 = vpow2.f32 %v3069_v37  ;;  %v3075_v37 = vmul.f32 1.442695, %v5245_v20 }
 0x26f   : > { %2549 = vadd.xlane.f32.xlu1 %v7337_v45  ;;  %5767 = vpow2.f32 %v3049_v14  ;;  %v5237_v14 = vclamps-f32 %v8570_v2, 5.0  ;;  %v1510_v42 = vrot.slane %v7349_v61, %v7380_v7 }
 0x270   : > { %3796 = vadd.xlane.f32.xlu0 %v7196_v55  ;;  %v7356_v43 = vpop.xlane.xlu0 %1437  ;;  %v5754_v55 = vpop.eup %5753  ;;  %5769 = vpow2.f32 %v3073_v9 }
 0x271   : > { %v5756_v6 = vpop.eup %5755  ;;  %v7370_v51 = vmul.f32 %v7322_v1, %v5754_v55  ;;  %5771 = vpow2.f32 %v3051_v17  ;;  %v1514_v61 = vrot.slane %v7356_v43, %v7380_v7  ;;  %v3059_v10 = vmul.f32 1.442695, %v5237_v14 }
 0x272   : > { %v5758_v58 = vpop.eup %5757  ;;  %v7377_v56 = vmul.f32 %v7322_v1, %v5756_v6  ;;  %5773 = vpow2.f32 %v3053_v35  ;;  %v1541_v6 = vsel %vm1527_vm1, %v1502_v48, %v1498_v13 }
 0x273   : > { %3098 = vadd.xlane.f32.xlu1 %v7346_v38  ;;  %v7388_v29 = vmul.f32 %v7322_v1, %v5758_v58  ;;  %v1542_v16 = vsel %vm1529_vm2, %v1506_v44, %v1541_v6  ;;  %v8571_v58 = vld [vmem:[#allocation17_spill] sm:$0xff]  ;;  %v1412_v6 = vld [vmem:[#allocation3 + $0x8] sm:$0xff] }
 0x274   : > { %2567 = vadd.xlane.f32.xlu0 %v7353_v19  ;;  %v1543_v49 = vsel %vm1531_vm3, %v1510_v42, %v1542_v16 }
 0x275   : > { %v5760_v47 = vpop.eup %5759  ;;  %v1544_v31 = vsel %vm1533_vm4, %v1514_v61, %v1543_v49 }
 0x276   : > { %v5762_v50 = vpop.eup %5761  ;;  %v7399_v25 = vmul.f32 %v7322_v1, %v5760_v47 }
 0x277   : > { %3798 = vadd.xlane.f32.xlu1 %v7200_v24  ;;  %v5235_v24 = vclamps-f32 %v8564_v18, 5.0  ;;  %v5764_v52 = vpop.eup %5763  ;;  %v7407_v55 = vmul.f32 %v7322_v1, %v5762_v50  ;;  %v5238_v18 = vclamps-f32 %v8571_v58, 5.0 }
 0x278   : > { %v7366_v23 = vpop.xlane.xlu1 %1439  ;;  %3114 = vadd.xlane.f32.xlu0 %v7362_v28  ;;  %v5766_v15 = vpop.eup %5765  ;;  %v7418_v9 = vmul.f32 %v7322_v1, %v5764_v52  ;;  %v1466_v52 = vrot.slane %v7318_v36, %v7380_v7  ;;  %v1474_v36 = vrot.slane %v7332_v0, %v7380_v7 }
 0x279   : > { %v7373_v62 = vpop.xlane.xlu0 %3332  ;;  %v3055_v39 = vmul.f32 1.442695, %v5235_v24  ;;  %v5768_v22 = vpop.eup %5767  ;;  %v7427_v17 = vmul.f32 %v7322_v1, %v5766_v15  ;;  %v3061_v43 = vmul.f32 1.442695, %v5238_v18  ;;  %v1518_v50 = vrot.slane %v7366_v23, %v7380_v7 }
 0x27a   : > { %v5770_v47 = vpop.eup %5769  ;;  %v7434_v41 = vmul.f32 %v7322_v1, %v5768_v22 }
 0x27b   : > { %2569 = vadd.xlane.f32.xlu1 %v7370_v51  ;;  %5775 = vpow2.f32 %v3055_v39  ;;  %v5772_v20 = vpop.eup %5771  ;;  %v7445_v59 = vmul.f32 %v7322_v1, %v5770_v47 }
 0x27c   : > { %v7383_v34 = vpop.xlane.xlu1 %3334  ;;  %2551 = vadd.xlane.f32.xlu0 %v7377_v56  ;;  %5777 = vpow2.f32 %v3057_v46  ;;  %v5774_v44 = vpop.eup %5773  ;;  %v7452_v46 = vmul.f32 %v7322_v1, %v5772_v20 }
 0x27d   : > { %v7392_v5 = vpop.xlane.xlu0 %1415  ;;  %5779 = vpow2.f32 %v3075_v37  ;;  %v1545_v37 = vsel %vm1535_vm5, %v1518_v50, %v1544_v31  ;;  %v7462_v16 = vmul.f32 %v7322_v1, %v5774_v44 }
 0x27e   : > { %v1470_v39 = vrot.slane %v7392_v5, %v7380_v7  ;;  %5781 = vpow2.f32 %v3077_v63 }
 0x27f   : > { %3116 = vadd.xlane.f32.xlu1 %v7388_v29  ;;  %5783 = vpow2.f32 %v3059_v10 }
 0x280   : > { %v7403_v8 = vpop.xlane.xlu1 %1419  ;;  %3118 = vadd.xlane.f32.xlu0 %v7399_v25  ;;  %5785 = vpow2.f32 %v3061_v43  ;;  %v1528_v15 = vsel %vm1527_vm1, %v1470_v39, %v1466_v52 }
 0x281   : > { %v7413_v40 = vpop.xlane.xlu0 %1421  ;;  %v1478_v63 = vrot.slane %v7403_v8, %v7380_v7  ;;  %v1530_v18 = vsel %vm1529_vm2, %v1474_v36, %v1528_v15 }
 0x282   : > { %v1482_v20 = vrot.slane %v7413_v40, %v7380_v7 }
 0x283   : > { %2553 = vadd.xlane.f32.xlu1 %v7407_v55  ;;  %v1532_v50 = vsel %vm1531_vm3, %v1478_v63, %v1530_v18  ;;  %v2689_v18 = vmul.f32 %v7306_v32, %v7230_v60 }
 0x284   : > { %v7421_v24 = vpop.xlane.xlu1 %1423  ;;  %3122 = vadd.xlane.f32.xlu0 %v7418_v9 }
 0x285   : > { %v7430_v35 = vpop.xlane.xlu0 %3316  ;;  %v5776_v13 = vpop.eup %5775  ;;  %v1486_v40 = vrot.slane %v7421_v24, %v7380_v7 }
 0x286   : > { %v5778_v22 = vpop.eup %5777  ;;  %v7472_v61 = vmul.f32 %v7322_v1, %v5776_v13 }
 0x287   : > { %3120 = vadd.xlane.f32.xlu1 %v7427_v17  ;;  %v5780_v47 = vpop.eup %5779  ;;  %v7480_v8 = vmul.f32 %v7322_v1, %v5778_v22 }
 0x288   : > { %v7440_v48 = vpop.xlane.xlu1 %3318  ;;  %3100 = vadd.xlane.f32.xlu0 %v7434_v41  ;;  %v5782_v43 = vpop.eup %5781  ;;  %v7488_v31 = vmul.f32 %v7322_v1, %v5780_v47 }
 0x289   : > { %v1442_v23 = vpop.xlane.xlu0 %1441  ;;  %v5784_v44 = vpop.eup %5783 }
 0x28a   : > { %v1522_v5 = vrot.slane %v1442_v23, %v7380_v7  ;;  %v1534_v23 = vsel %vm1533_vm4, %v1482_v20, %v1532_v50  ;;  %v5786_v13 = vpop.eup %5785  ;;  %v2688_v20 = vmul.f32 %v7255_v54, %v7230_v60  ;;  %v2691_v50 = vmul.f32 %v7325_v57, %v7230_v60 }
 0x28b   : > { %3124 = vadd.xlane.f32.xlu1 %v7445_v59  ;;  %v1536_v24 = vsel %vm1535_vm5, %v1486_v40, %v1534_v23  ;;  %v7509_v22 = vmul.f32 %v7322_v1, %v5786_v13  ;;  %v2692_v54 = vmul.f32 %v7330_v4, %v7230_v60  ;;  %v2693_v23 = vmul.f32 %v7337_v45, %v7230_v60 }
 0x28c   : > { %v1444_v2 = vpop.xlane.xlu1 %1443  ;;  %v1546_v14 = vsel %vm1537_vm6, %v1522_v5, %v1545_v37  ;;  %3102 = vadd.xlane.f32.xlu0 %v7452_v46  ;;  %v7497_v5 = vmul.f32 %v7322_v1, %v5782_v43  ;;  %v2690_v43 = vmul.f32 %v7315_v53, %v7230_v60  ;;  %v2694_v13 = vmul.f32 %v7377_v56, %v7230_v60 }
 0x28d   : > { %v1526_v42 = vrot.slane %v1444_v2, %v7380_v7  ;;  %v7466_v58 = vpop.xlane.xlu0 %3336  ;;  %v7502_v2 = vmul.f32 %v7322_v1, %v5784_v44  ;;  %v2697_v45 = vmul.f32 %v7266_v27, %v7230_v60  ;;  %v2698_v56 = vmul.f32 %v7284_v26, %v7230_v60 }
 0x28f   : > { %v1547_v0 = vsel %vm1539_vm7, %v1526_v42, %v1546_v14  ;;  %3104 = vadd.xlane.f32.xlu1 %v7462_v16 }
 0x290   : > { %v1551_v10 = vadd.f32 %v1547_v0, %v1412_v6  ;;  %v7474_v49 = vpop.xlane.xlu1 %3338  ;;  %3106 = vadd.xlane.f32.xlu0 %v7472_v61  ;;  %v1411_v6 = vld [vmem:[#allocation3] sm:$0xff] }
 0x291   : > { %v7484_v39 = vpop.xlane.xlu0 %3340 }
 0x292   : > { %1553 = vst.msk [vmem:[#allocation3 + $0x8] sm:$0xff] %vm562_vm0, %v1551_v10  ;;  %8572 = vst [vmem:[#allocation15_spill] sm:$0xff] %v7484_v39 }
 0x293   : > { %3108 = vadd.xlane.f32.xlu1 %v7480_v8 }
 0x294   : > { %v7492_v52 = vpop.xlane.xlu1 %3342  ;;  %3126 = vadd.xlane.f32.xlu0 %v7488_v31 }
 0x295   : > { %v1426_v37 = vpop.xlane.xlu0 %1425 }
 0x296   : > { %v1490_v15 = vrot.slane %v1426_v37, %v7380_v7  ;;  %v2695_v37 = vmul.f32 %v7407_v55, %v7230_v60  ;;  %v2699_v55 = vmul.f32 %v7295_v3, %v7230_v60 }
 0x297   : > { %3128 = vadd.xlane.f32.xlu1 %v7497_v5 }
 0x298   : > { %v1428_v36 = vpop.xlane.xlu1 %1427  ;;  %v1538_v14 = vsel %vm1537_vm6, %v1490_v15, %v1536_v24  ;;  %3110 = vadd.xlane.f32.xlu0 %v7502_v2  ;;  %v2696_v15 = vmul.f32 %v7252_v33, %v7230_v60  ;;  %v2700_v33 = vmul.f32 %v7290_v11, %v7230_v60 }
 0x299   : > { %v1494_v42 = vrot.slane %v1428_v36, %v7380_v7  ;;  %v7511_v63 = vpop.xlane.xlu0 %3320 }
 0x29b   : > { %v1540_v0 = vsel %vm1539_vm7, %v1494_v42, %v1538_v14  ;;  %3112 = vadd.xlane.f32.xlu1 %v7509_v22 }
 0x29c   : > { %v1550_v47 = vadd.f32 %v1540_v0, %v1411_v6  ;;  %v7517_v10 = vpop.xlane.xlu1 %3322  ;;  %4165 = vadd.xlane.f32.xlu0 %v2689_v18 }
 0x29d   : > { %v7522_v1 = vpop.xlane.xlu0 %3324 }
 0x29e   : > { %1552 = vst.msk [vmem:[#allocation3] sm:$0xff] %vm562_vm0, %v1550_v47 }
 0x29f   : > { %4163 = vadd.xlane.f32.xlu1 %v2688_v20  ;;  %v3299_v20 = vld [vmem:[%s485_s30 + $0x8] sm:$0xff] }
 0x2a0   : > { %v7526_v32 = vpop.xlane.xlu1 %3326  ;;  %4167 = vadd.xlane.f32.xlu0 %v2690_v43 }
 0x2a1   : > { %v7530_v44 = vpop.xlane.xlu0 %3344 }
 0x2a2   : > { %8573 = vst [vmem:[#allocation20_spill] sm:$0xff] %v7530_v44 }
 0x2a3   : > { %4169 = vadd.xlane.f32.xlu1 %v2691_v50 }
 0x2a4   : > { %v7534_v40 = vpop.xlane.xlu1 %3346  ;;  %4171 = vadd.xlane.f32.xlu0 %v2692_v54 }
 0x2a5   : > { %v7538_v53 = vpop.xlane.xlu0 %3328 }
 0x2a7   : > { %4173 = vadd.xlane.f32.xlu1 %v2693_v23 }
 0x2a8   : > { %v7542_v57 = vpop.xlane.xlu1 %3330  ;;  %4175 = vadd.xlane.f32.xlu0 %v2694_v13  ;;  %v3298_v13 = vld [vmem:[%s485_s30] sm:$0xff] }
 0x2a9   : > { %v1997_v4 = vpop.xlane.xlu0 %1996 }
 0x2aa   : > { %v2063_v54 = vrot.slane %v1997_v4, %v7380_v7 }
 0x2ab   : > { %4177 = vadd.xlane.f32.xlu1 %v2695_v37 }
 0x2ac   : > { %v1981_v24 = vpop.xlane.xlu1 %1980  ;;  %4179 = vadd.xlane.f32.xlu0 %v2696_v15 }
 0x2ad   : > { %v2001_v36 = vpop.xlane.xlu0 %2000 }
 0x2af   : > { %4181 = vadd.xlane.f32.xlu1 %v2697_v45  ;;  %v2071_v45 = vrot.slane %v2001_v36, %v7380_v7 }
 0x2b0   : > { %v1999_v14 = vpop.xlane.xlu1 %1998  ;;  %4183 = vadd.xlane.f32.xlu0 %v2698_v56 }
 0x2b1   : > { %v2005_v6 = vpop.xlane.xlu0 %2004  ;;  %v2067_v11 = vrot.slane %v1999_v14, %v7380_v7 }
 0x2b2   : > { %v2079_v4 = vrot.slane %v2005_v6, %v7380_v7 }
 0x2b3   : > { %4185 = vadd.xlane.f32.xlu1 %v2699_v55  ;;  %v2099_v37 = vsel %vm1527_vm1, %v2067_v11, %v2063_v54 }
 0x2b4   : > { %v7556_v42 = vpop.xlane.xlu1 %3784  ;;  %4187 = vadd.xlane.f32.xlu0 %v2700_v33  ;;  %v2100_v55 = vsel %vm1529_vm2, %v2071_v45, %v2099_v37 }
 0x2b5   : > { %8574 = vst [vmem:[#allocation21_spill] sm:$0xff] %v7556_v42  ;;  %v7558_v27 = vpop.xlane.xlu0 %3800 }
 0x2b6   : > { %8575 = vst [vmem:[#allocation19_spill] sm:$0xff] %v7558_v27 }
 0x2b8   : > { %v2003_v18 = vpop.xlane.xlu1 %2002 }
 0x2b9   : > { %v1983_v0 = vpop.xlane.xlu0 %1982  ;;  %v2075_v15 = vrot.slane %v2003_v18, %v7380_v7 }
 0x2bb   : > { %v2101_v14 = vsel %vm1531_vm3, %v2075_v15, %v2100_v55  ;;  %v2035_v55 = vrot.slane %v1983_v0, %v7380_v7 }
 0x2bc   : > { %v2007_v47 = vpop.xlane.xlu1 %2006  ;;  %v2102_v18 = vsel %vm1533_vm4, %v2079_v4, %v2101_v14 }
 0x2bd   : > { %v1985_v26 = vpop.xlane.xlu0 %1984 }
 0x2be   : > { %v2039_v14 = vrot.slane %v1985_v26, %v7380_v7 }
 0x2c0   : > { %v7565_v3 = vpop.xlane.xlu1 %3802 }
 0x2c1   : > { %8577 = vst [vmem:[#allocation22_spill] sm:$0xff] %v7565_v3  ;;  %v1989_v43 = vpop.xlane.xlu0 %1988  ;;  %v2538_v3 = vld [vmem:[#allocation3 + $0x28] sm:$0xff] }
 0x2c2   : > { %v2047_v26 = vrot.slane %v1989_v43, %v7380_v7 }
 0x2c4   : > { %v1987_v60 = vpop.xlane.xlu1 %1986  ;;  %3355 = vperm.xlu1 %5657, %v3299_v20   ;;  %v2083_v20 = vrot.slane %v2007_v47, %v7380_v7 }
 0x2c5   : > { %v2009_v50 = vpop.xlane.xlu0 %2008 }
 0x2c6   : > { %v2087_v27 = vrot.slane %v2009_v50, %v7380_v7  ;;  %v2103_v54 = vsel %vm1535_vm5, %v2083_v20, %v2102_v18  ;;  %v2031_v20 = vrot.slane %v1981_v24, %v7380_v7  ;;  %v2043_v18 = vrot.slane %v1987_v60, %v7380_v7 }
 0x2c8   : > { %v1991_v23 = vpop.xlane.xlu1 %1990  ;;  %v2104_v45 = vsel %vm1537_vm6, %v2087_v27, %v2103_v54 }
 0x2c9   : > { %v7572_v56 = vpop.xlane.xlu0 %2555  ;;  %v2051_v0 = vrot.slane %v1991_v23, %v7380_v7 }
 0x2ca   : > { %3350 = vperm.xlu0 %5658, %v3298_v13   ;;  %v1979_v13 = vld [vmem:[#allocation3 + $0x18] sm:$0xff] }
 0x2cc   : > { %v7575_v33 = vpop.xlane.xlu1 %2539 }
 0x2cd   : > { %v7581_v11 = vpop.xlane.xlu0 %3804 }
 0x2ce   : > { %8578 = vst [vmem:[#allocation23_spill] sm:$0xff] %v7581_v11 }
 0x2d0   : > { %v2011_v36 = vpop.xlane.xlu1 %2010 }
 0x2d1   : > { %v2091_v37 = vrot.slane %v2011_v36, %v7380_v7  ;;  %v7587_v42 = vpop.xlane.xlu0 %3808  ;;  %v2092_v36 = vsel %vm1527_vm1, %v2035_v55, %v2031_v20  ;;  %v1978_v55 = vld [vmem:[#allocation3 + $0x10] sm:$0xff] }
 0x2d2   : > { %8579 = vst [vmem:[#allocation24_spill] sm:$0xff] %v7587_v42  ;;  %v2093_v54 = vsel %vm1529_vm2, %v2039_v14, %v2092_v36 }
 0x2d3   : > { %v2105_v47 = vsel %vm1539_vm7, %v2091_v37, %v2104_v45  ;;  %v2094_v37 = vsel %vm1531_vm3, %v2043_v18, %v2093_v54 }
 0x2d4   : > { %v2109_v15 = vadd.f32 %v2105_v47, %v1979_v13  ;;  %v2558_v6 = vpop.xlane.xlu1 %2557  ;;  %v2095_v24 = vsel %vm1533_vm4, %v2047_v26, %v2094_v37 }
 0x2d5   : > { %v1993_v50 = vpop.xlane.xlu0 %1992 }
 0x2d6   : > { %2111 = vst.msk [vmem:[#allocation3 + $0x18] sm:$0xff] %vm562_vm0, %v2109_v15  ;;  %v2055_v45 = vrot.slane %v1993_v50, %v7380_v7  ;;  %v2096_v15 = vsel %vm1535_vm5, %v2051_v0, %v2095_v24 }
 0x2d8   : > { %v7593_v4 = vpop.xlane.xlu1 %3806  ;;  %v2097_v20 = vsel %vm1537_vm6, %v2055_v45, %v2096_v15 }
 0x2d9   : > { %8580 = vst [vmem:[#allocation26_spill] sm:$0xff] %v7593_v4  ;;  %v7597_v27 = vpop.xlane.xlu0 %3786 }
 0x2dc   : > { %v7601_v13 = vpop.xlane.xlu1 %3810 }
 0x2dd   : > { %8581 = vst [vmem:[#allocation27_spill] sm:$0xff] %v7601_v13  ;;  %v7607_v47 = vpop.xlane.xlu0 %3788 }
 0x2de   : > { %8582 = vst [vmem:[#allocation28_spill] sm:$0xff] %v7607_v47 }
 0x2e0   : > { %v1995_v60 = vpop.xlane.xlu1 %1994 }
 0x2e1   : > { %v2059_v14 = vrot.slane %v1995_v60, %v7380_v7  ;;  %v7613_v36 = vpop.xlane.xlu0 %3792 }
 0x2e2   : > { %8583 = vst [vmem:[#allocation29_spill] sm:$0xff] %v7613_v36  ;;  %v2622_v36 = vrot.slane %v7572_v56, %v7380_v7 }
 0x2e3   : > { %v2098_v23 = vsel %vm1539_vm7, %v2059_v14, %v2097_v20  ;;  %v2626_v20 = vrot.slane %v2558_v6, %v7380_v7  ;;  %v2590_v6 = vrot.slane %v7575_v33, %v7380_v7 }
 0x2e4   : > { %v2108_v18 = vadd.f32 %v2098_v23, %v1978_v55  ;;  %v7616_v43 = vpop.xlane.xlu1 %3790 }
 0x2e5   : > { %v2560_v50 = vpop.xlane.xlu0 %2559  ;;  %v2658_v13 = vsel %vm1527_vm1, %v2626_v20, %v2622_v36 }
 0x2e6   : > { %2110 = vst.msk [vmem:[#allocation3 + $0x10] sm:$0xff] %vm562_vm0, %v2108_v18  ;;  %v2630_v23 = vrot.slane %v2560_v50, %v7380_v7 }
 0x2e8   : > { %v7619_v54 = vpop.xlane.xlu1 %3794  ;;  %v2659_v44 = vsel %vm1529_vm2, %v2630_v23, %v2658_v13 }
 0x2e9   : > { %v2564_v37 = vpop.xlane.xlu0 %2563 }
 0x2ec   : > { %v2562_v26 = vpop.xlane.xlu1 %2561 }
 0x2ed   : > { %v7621_v0 = vpop.xlane.xlu0 %3812 }
 0x2ee   : > { %8584 = vst [vmem:[#allocation30_spill] sm:$0xff] %v7621_v0  ;;  %v2634_v0 = vrot.slane %v2562_v26, %v7380_v7  ;;  %v2638_v26 = vrot.slane %v2564_v37, %v7380_v7 }
 0x2f0   : > { %v2566_v24 = vpop.xlane.xlu1 %2565  ;;  %v2660_v50 = vsel %vm1531_vm3, %v2634_v0, %v2659_v44 }
 0x2f1   : > { %v2542_v60 = vpop.xlane.xlu0 %2541  ;;  %v2642_v56 = vrot.slane %v2566_v24, %v7380_v7 }
 0x2f4   : > { %v7623_v42 = vpop.xlane.xlu1 %3814 }
 0x2f5   : > { %8585 = vst [vmem:[#allocation31_spill] sm:$0xff] %v7623_v42  ;;  %v2544_v45 = vpop.xlane.xlu0 %2543  ;;  %v2594_v42 = vrot.slane %v2542_v60, %v7380_v7 }
 0x2f6   : > { %v2598_v4 = vrot.slane %v2544_v45, %v7380_v7  ;;  %v2661_v45 = vsel %vm1533_vm4, %v2638_v26, %v2660_v50 }
 0x2f7   : > { %v2651_v60 = vsel %vm1527_vm1, %v2594_v42, %v2590_v6  ;;  %v2662_v33 = vsel %vm1535_vm5, %v2642_v56, %v2661_v45 }
 0x2f8   : > { %v2546_v15 = vpop.xlane.xlu1 %2545  ;;  %v2652_v20 = vsel %vm1529_vm2, %v2598_v4, %v2651_v60 }
 0x2f9   : > { %v2548_v11 = vpop.xlane.xlu0 %2547  ;;  %v2602_v13 = vrot.slane %v2546_v15, %v7380_v7 }
 0x2fa   : > { %v2606_v0 = vrot.slane %v2548_v11, %v7380_v7 }
 0x2fb   : > { %v2653_v24 = vsel %vm1531_vm3, %v2602_v13, %v2652_v20 }
 0x2fc   : > { %v2550_v14 = vpop.xlane.xlu1 %2549  ;;  %v2654_v4 = vsel %vm1533_vm4, %v2606_v0, %v2653_v24 }
 0x2fd   : > { %v7625_v55 = vpop.xlane.xlu0 %3796  ;;  %v2610_v50 = vrot.slane %v2550_v14, %v7380_v7 }
 0x2fe   : > { %8586 = vst [vmem:[#allocation32_spill] sm:$0xff] %v7625_v55 }
 0x2ff   : > { %v2655_v11 = vsel %vm1535_vm5, %v2610_v50, %v2654_v4 }
 0x300   : > { %v3099_v18 = vpop.xlane.xlu1 %3098 }
 0x301   : > { %v2568_v47 = vpop.xlane.xlu0 %2567  ;;  %v3149_v50 = vrot.slane %v3099_v18, %v7380_v7 }
 0x302   : > { %v2646_v39 = vrot.slane %v2568_v47, %v7380_v7 }
 0x304   : > { %v7636_v55 = vpop.xlane.xlu1 %3798  ;;  %v2663_v37 = vsel %vm1537_vm6, %v2646_v39, %v2662_v33  ;;  %v2537_v39 = vld [vmem:[#allocation3 + $0x20] sm:$0xff] }
 0x305   : > { %v3115_v36 = vpop.xlane.xlu0 %3114 }
 0x308   : > { %v2570_v23 = vpop.xlane.xlu1 %2569 }
 0x309   : > { %v2650_v44 = vrot.slane %v2570_v23, %v7380_v7  ;;  %v2552_v47 = vpop.xlane.xlu0 %2551 }
 0x30a   : > { %v2614_v56 = vrot.slane %v2552_v47, %v7380_v7 }
 0x30b   : > { %v2664_v42 = vsel %vm1539_vm7, %v2650_v44, %v2663_v37  ;;  %v3181_v37 = vrot.slane %v3115_v36, %v7380_v7 }
 0x30c   : > { %v2668_v15 = vadd.f32 %v2664_v42, %v2538_v3  ;;  %v3117_v6 = vpop.xlane.xlu1 %3116  ;;  %v2656_v13 = vsel %vm1537_vm6, %v2614_v56, %v2655_v11 }
 0x30d   : > { %v3119_v26 = vpop.xlane.xlu0 %3118  ;;  %v3185_v44 = vrot.slane %v3117_v6, %v7380_v7 }
 0x30e   : > { %2670 = vst.msk [vmem:[#allocation3 + $0x28] sm:$0xff] %vm562_vm0, %v2668_v15  ;;  %v3189_v42 = vrot.slane %v3119_v26, %v7380_v7 }
 0x30f   : > { %v3217_v4 = vsel %vm1527_vm1, %v3185_v44, %v3181_v37 }
 0x310   : > { %v2554_v60 = vpop.xlane.xlu1 %2553  ;;  %v3218_v36 = vsel %vm1529_vm2, %v3189_v42, %v3217_v4 }
 0x311   : > { %v2618_v45 = vrot.slane %v2554_v60, %v7380_v7  ;;  %v3123_v20 = vpop.xlane.xlu0 %3122 }
 0x312   : > { %v3197_v18 = vrot.slane %v3123_v20, %v7380_v7 }
 0x313   : > { %v2657_v3 = vsel %vm1539_vm7, %v2618_v45, %v2656_v13 }
 0x314   : > { %v2667_v23 = vadd.f32 %v2657_v3, %v2537_v39  ;;  %v3121_v14 = vpop.xlane.xlu1 %3120 }
 0x315   : > { %v3101_v33 = vpop.xlane.xlu0 %3100  ;;  %v3193_v56 = vrot.slane %v3121_v14, %v7380_v7 }
 0x316   : > { %2669 = vst.msk [vmem:[#allocation3 + $0x20] sm:$0xff] %vm562_vm0, %v2667_v23  ;;  %v3153_v47 = vrot.slane %v3101_v33, %v7380_v7 }
 0x317   : > { %v3219_v26 = vsel %vm1531_vm3, %v3193_v56, %v3218_v36 }
 0x318   : > { %v3125_v0 = vpop.xlane.xlu1 %3124  ;;  %v3210_v11 = vsel %vm1527_vm1, %v3153_v47, %v3149_v50  ;;  %v3220_v44 = vsel %vm1533_vm4, %v3197_v18, %v3219_v26  ;;  %v3097_v50 = vld [vmem:[#allocation3 + $0x38] sm:$0xff] }
 0x319   : > { %v3103_v24 = vpop.xlane.xlu0 %3102  ;;  %v3201_v13 = vrot.slane %v3125_v0, %v7380_v7 }
 0x31a   : > { %v3157_v15 = vrot.slane %v3103_v24, %v7380_v7 }
 0x31b   : > { %v3221_v47 = vsel %vm1535_vm5, %v3201_v13, %v3220_v44 }
 0x31c   : > { %v3105_v60 = vpop.xlane.xlu1 %3104  ;;  %v3211_v45 = vsel %vm1529_vm2, %v3157_v15, %v3210_v11 }
 0x31d   : > { %v3161_v6 = vrot.slane %v3105_v60, %v7380_v7  ;;  %v3107_v39 = vpop.xlane.xlu0 %3106 }
 0x31e   : > { %v3165_v23 = vrot.slane %v3107_v39, %v7380_v7 }
 0x31f   : > { %v3212_v14 = vsel %vm1531_vm3, %v3161_v6, %v3211_v45  ;;  %v3096_v45 = vld [vmem:[#allocation3 + $0x30] sm:$0xff] }
 0x320   : > { %v3109_v3 = vpop.xlane.xlu1 %3108  ;;  %v3213_v15 = vsel %vm1533_vm4, %v3165_v23, %v3212_v14 }
 0x321   : > { %v3127_v33 = vpop.xlane.xlu0 %3126  ;;  %v3169_v24 = vrot.slane %v3109_v3, %v7380_v7 }
 0x322   : > { %v3205_v37 = vrot.slane %v3127_v33, %v7380_v7 }
 0x323   : > { %v3214_v11 = vsel %vm1535_vm5, %v3169_v24, %v3213_v15 }
 0x324   : > { %v3129_v42 = vpop.xlane.xlu1 %3128  ;;  %v3222_v0 = vsel %vm1537_vm6, %v3205_v37, %v3221_v47 }
 0x325   : > { %v3209_v20 = vrot.slane %v3129_v42, %v7380_v7  ;;  %v3111_v4 = vpop.xlane.xlu0 %3110 }
 0x326   : > { %v3173_v60 = vrot.slane %v3111_v4, %v7380_v7  ;;  %v3455_v4 = vld [vmem:[#allocation3 + $0x8] sm:$0xff] }
 0x327   : > { %v3223_v56 = vsel %vm1539_vm7, %v3209_v20, %v3222_v0 }
 0x328   : > { %v3227_v6 = vadd.f32 %v3223_v56, %v3097_v50  ;;  %v3113_v39 = vpop.xlane.xlu1 %3112  ;;  %v3215_v36 = vsel %vm1537_vm6, %v3173_v60, %v3214_v11  ;;  %v7723_v60 = vsub.s32 1, %v8565_v30 }
 0x329   : > { %v3177_v26 = vrot.slane %v3113_v39, %v7380_v7  ;;  %v7693_v13 = vpop.xlane.xlu0 %4165 }
 0x32a   : > { %3229 = vst.msk [vmem:[#allocation3 + $0x38] sm:$0xff] %vm562_vm0, %v3227_v6  ;;  %8587 = vst [vmem:[#allocation33_spill] sm:$0xff] %v7693_v13 }
 0x32b   : > { %v3216_v3 = vsel %vm1539_vm7, %v3177_v26, %v3215_v36  ;;  %v7733_v26 = vsub.s32 2, %v8565_v30 }
 0x32c   : > { %v3226_v18 = vadd.f32 %v3216_v3, %v3096_v45  ;;  %v7696_v23 = vpop.xlane.xlu1 %4163  ;;  %v7730_v45 = vsub.s32 3, %v8565_v30 }
 0x32d   : > { %8588 = vst [vmem:[#allocation35_spill] sm:$0xff] %v7696_v23  ;;  %v7699_v14 = vpop.xlane.xlu0 %4167 }
 0x32e   : > { %3228 = vst.msk [vmem:[#allocation3 + $0x30] sm:$0xff] %vm562_vm0, %v3226_v18  ;;  %8589 = vst [vmem:[#allocation34_spill] sm:$0xff] %v7699_v14 }
 0x330   : > { %v7701_v33 = vpop.xlane.xlu1 %4169 }
 0x331   : > { %8590 = vst [vmem:[#allocation37_spill] sm:$0xff] %v7701_v33  ;;  %v7703_v44 = vpop.xlane.xlu0 %4171 }
 0x332   : > { %8591 = vst [vmem:[#allocation36_spill] sm:$0xff] %v7703_v44 }
 0x334   : > { %v7705_v37 = vpop.xlane.xlu1 %4173 }
 0x335   : > { %8592 = vst [vmem:[#allocation38_spill] sm:$0xff] %v7705_v37  ;;  %v7707_v47 = vpop.xlane.xlu0 %4175 }
 0x336   : > { %8593 = vst [vmem:[#allocation14_spill] sm:$0xff] %v7707_v47 }
 0x338   : > { %v7709_v24 = vpop.xlane.xlu1 %4177 }
 0x339   : > { %8594 = vst [vmem:[#allocation41_spill] sm:$0xff] %v7709_v24  ;;  %v7713_v15 = vpop.xlane.xlu0 %4179 }
 0x33a   : > { %8596 = vst [vmem:[#allocation42_spill] sm:$0xff] %v7713_v15  ;;  %v7749_v15 = vsub.s32 7, %v8565_v30 }
 0x33c   : > { %v7711_v42 = vpop.xlane.xlu1 %4181 }
 0x33d   : > { %8595 = vst [vmem:[#allocation25_spill] sm:$0xff] %v7711_v42  ;;  %v7717_v50 = vpop.xlane.xlu0 %4183 }
 0x33e   : > { %8598 = vst [vmem:[#allocation40_spill] sm:$0xff] %v7717_v50 }
 0x340   : > { %v7715_v0 = vpop.xlane.xlu1 %4185 }
 0x341   : > { %8597 = vst [vmem:[#allocation39_spill] sm:$0xff] %v7715_v0  ;;  %v7727_v36 = vpop.xlane.xlu0 %4187  ;;  %v4590_v0 = vld [vmem:[#allocation3 + $0x30] sm:$0xff] }
 0x342   : > { %8599 = vst [vmem:[#allocation18_spill] sm:$0xff] %v7727_v36 }
 0x344   : > { %v7719_v20 = vpop.permute.xlu1 %3355 }
 0x345   : > { %v3457_v56 = vmul.f32 %v3455_v4, %v7719_v20 }
 0x347   : > { %v3459_v11 = vmax.f32 %v3457_v56, 1e-06  ;;  %v7740_v56 = vsub.s32 5, %v8565_v30 }
 0x349   : > { %v3528_v6 = vrot.slane %v3459_v11, %v7723_v60  ;;  %v3521_v39 = vrot.slane %v3459_v11, %v6744_v21  ;;  %v3542_v3 = vrot.slane %v3459_v11, %v7730_v45  ;;  %v3535_v18 = vrot.slane %v3459_v11, %v7733_v26  ;;  %v7737_v4 = vpop.permute.xlu0 %3350 }
 0x34a   : > { %v3556_v7 = vrot.slane %v3459_v11, %v7740_v56  ;;  %v3570_v47 = vrot.slane %v3459_v11, %v7749_v15 }
 0x34b   : > { %3530 = vbcast.lane.b32.xlu0 %v3528_v6, 256  ;;  %3523 = vbcast.lane.b32.xlu1 %v3521_v39, 256  ;;  %v7743_v6 = vsub.s32 4, %v8565_v30  ;;  %v3454_v39 = vld [vmem:[#allocation3] sm:$0xff] }
 0x34c   : > { %v3456_v50 = vmul.f32 %v3454_v39, %v7737_v4 }
 0x34d   : > { %v3549_v36 = vrot.slane %v3459_v11, %v7743_v6 }
 0x34e   : > { %v3458_v14 = vmax.f32 %v3456_v50, 1e-06 }
 0x34f   : > { %3544 = vbcast.lane.b32.xlu0 %v3542_v3, 256  ;;  %3537 = vbcast.lane.b32.xlu1 %v3535_v18, 256  ;;  %v7752_v3 = vsub.s32 6, %v8565_v30  ;;  %v3833_v18 = vld [vmem:[#allocation3 + $0x18] sm:$0xff] }
 0x350   : > { %v3835_v23 = vmul.f32 %v3833_v18, %v7719_v20  ;;  %v3514_v39 = vrot.slane %v3458_v14, %v7749_v15  ;;  %v4591_v30 = vld [vmem:[#allocation3 + $0x38] sm:$0xff]  ;;  %v3472_v24 = vrot.slane %v3458_v14, %v7723_v60 }
 0x351   : > { %v3563_v44 = vrot.slane %v3459_v11, %v7752_v3  ;;  %v4592_v11 = vmul.f32 %v4590_v0, %v7737_v4  ;;  %v4593_v50 = vmul.f32 %v4591_v30, %v7719_v20  ;;  %v3486_v0 = vrot.slane %v3458_v14, %v7730_v45 }
 0x353   : > { %3558 = vbcast.lane.b32.xlu0 %v3556_v7, 256  ;;  %3551 = vbcast.lane.b32.xlu1 %v3549_v36, 256  ;;  %v3465_v7 = vrot.slane %v3458_v14, %v6744_v21  ;;  %v3837_v36 = vmax.f32 %v3835_v23, 1e-06  ;;  %v7765_v18 = vmax.f32 %v4592_v11, 1e-06 }
 0x354   : > { %v7767_v23 = vmax.f32 %v4593_v50, 1e-06 }
 0x355   : > { %v3906_v42 = vrot.slane %v3837_v36, %v7723_v60  ;;  %8600 = vst [vmem:[#allocation17_spill] sm:$0xff] %v7765_v18  ;;  %v3934_v37 = vrot.slane %v3837_v36, %v7740_v56  ;;  %v3948_v50 = vrot.slane %v3837_v36, %v7749_v15 }
 0x356   : > { %8601 = vst [vmem:[#allocation43_spill] sm:$0xff] %v7767_v23 }
 0x357   : > { %3572 = vbcast.lane.b32.xlu0 %v3570_v47, 256  ;;  %3565 = vbcast.lane.b32.xlu1 %v3563_v44, 256  ;;  %v3920_v44 = vrot.slane %v3837_v36, %v7730_v45  ;;  %v3479_v47 = vrot.slane %v3458_v14, %v7733_v26 }
 0x35b   : > { %3516 = vbcast.lane.b32.xlu0 %v3514_v39, 256  ;;  %3467 = vbcast.lane.b32.xlu1 %v3465_v7, 256  ;;  %v3832_v39 = vld [vmem:[#allocation3 + $0x10] sm:$0xff] }
 0x35c   : > { %v3834_v7 = vmul.f32 %v3832_v39, %v7737_v4  ;;  %v3493_v39 = vrot.slane %v3458_v14, %v7743_v6 }
 0x35f   : > { %3908 = vbcast.lane.b32.xlu0 %v3906_v42, 256  ;;  %3474 = vbcast.lane.b32.xlu1 %v3472_v24, 256  ;;  %v3500_v42 = vrot.slane %v3458_v14, %v7740_v56 }
 0x363   : > { %3922 = vbcast.lane.b32.xlu0 %v3920_v44, 256  ;;  %3481 = vbcast.lane.b32.xlu1 %v3479_v47, 256  ;;  %v3836_v44 = vmax.f32 %v3834_v7, 1e-06 }
 0x365   : > { %v3843_v24 = vrot.slane %v3836_v44, %v6744_v21  ;;  %v3864_v30 = vrot.slane %v3836_v44, %v7730_v45  ;;  %v3878_v7 = vrot.slane %v3836_v44, %v7740_v56 }
 0x367   : > { %3936 = vbcast.lane.b32.xlu0 %v3934_v37, 256  ;;  %3488 = vbcast.lane.b32.xlu1 %v3486_v0, 256  ;;  %v3507_v37 = vrot.slane %v3458_v14, %v7752_v3  ;;  %v3899_v0 = vrot.slane %v3837_v36, %v6744_v21  ;;  %v3941_v14 = vrot.slane %v3837_v36, %v7752_v3 }
 0x36b   : > { %3950 = vbcast.lane.b32.xlu0 %v3948_v50, 256  ;;  %3495 = vbcast.lane.b32.xlu1 %v3493_v39, 256  ;;  %v3892_v50 = vrot.slane %v3836_v44, %v7749_v15  ;;  %v3913_v39 = vrot.slane %v3837_v36, %v7733_v26 }
 0x36f   : > { %3845 = vbcast.lane.b32.xlu0 %v3843_v24, 256  ;;  %3502 = vbcast.lane.b32.xlu1 %v3500_v42, 256  ;;  %v3927_v24 = vrot.slane %v3837_v36, %v7743_v6  ;;  %v3850_v42 = vrot.slane %v3836_v44, %v7723_v60 }
 0x373   : > { %3866 = vbcast.lane.b32.xlu0 %v3864_v30, 256  ;;  %3509 = vbcast.lane.b32.xlu1 %v3507_v37, 256  ;;  %v3857_v30 = vrot.slane %v3836_v44, %v7733_v26  ;;  %v3871_v37 = vrot.slane %v3836_v44, %v7743_v6 }
 0x377   : > { %3880 = vbcast.lane.b32.xlu0 %v3878_v7, 256  ;;  %3901 = vbcast.lane.b32.xlu1 %v3899_v0, 256  ;;  %v3885_v7 = vrot.slane %v3836_v44, %v7752_v3  ;;  %v5916_v0 = vld [vmem:[%s6347_s6 + $0x10] sm:$0xff] }
 0x37b   : > { %3894 = vbcast.lane.b32.xlu0 %v3892_v50, 256  ;;  %3915 = vbcast.lane.b32.xlu1 %v3913_v39, 256  ;;  %v2702_v50 = vmul.f32 %v5916_v0, %v7353_v19  ;;  %v4211_v39 = vld [vmem:[#allocation3 + $0x20] sm:$0xff]  ;;  %v2703_v19 = vmul.f32 %v5916_v0, %v7370_v51 }
 0x37c   : > { %v4213_v36 = vmul.f32 %v4211_v39, %v7737_v4 }
 0x37f   : > { %3929 = vbcast.lane.b32.xlu1 %v3927_v24, 256  ;;  %v4215_v24 = vmax.f32 %v4213_v36, 1e-06 }
 0x381   : > { %v4236_v51 = vrot.slane %v4215_v24, %v7733_v26  ;;  %v4250_v0 = vrot.slane %v4215_v24, %v7743_v6 }
 0x383   : > { %3943 = vbcast.lane.b32.xlu1 %v3941_v14, 256  ;;  %v4222_v14 = vrot.slane %v4215_v24, %v6744_v21 }
 0x387   : > { %3852 = vbcast.lane.b32.xlu1 %v3850_v42, 256  ;;  %v4243_v42 = vrot.slane %v4215_v24, %v7730_v45 }
 0x38b   : > { %3859 = vbcast.lane.b32.xlu1 %v3857_v30, 256  ;;  %v4212_v30 = vld [vmem:[#allocation3 + $0x28] sm:$0xff] }
 0x38c   : > { %v4214_v44 = vmul.f32 %v4212_v30, %v7719_v20  ;;  %v4264_v30 = vrot.slane %v4215_v24, %v7752_v3 }
 0x38f   : > { %3873 = vbcast.lane.b32.xlu1 %v3871_v37, 256  ;;  %v4257_v37 = vrot.slane %v4215_v24, %v7740_v56 }
 0x393   : > { %3887 = vbcast.lane.b32.xlu1 %v3885_v7, 256  ;;  %v4271_v7 = vrot.slane %v4215_v24, %v7749_v15 }
 0x39a   : > { %4191 = vadd.xlane.f32.xlu0 %v2702_v50  ;;  %v4216_v50 = vmax.f32 %v4214_v44, 1e-06 }
 0x39c   : > { %v4285_v39 = vrot.slane %v4216_v50, %v7723_v60  ;;  %v4299_v36 = vrot.slane %v4216_v50, %v7730_v45  ;;  %v4292_v44 = vrot.slane %v4216_v50, %v7733_v26 }
 0x3b0   : > { %4224 = vbcast.lane.b32.xlu0 %v4222_v14, 256  ;;  %v4313_v14 = vrot.slane %v4216_v50, %v7740_v56 }
 0x3b4   : > { %4245 = vbcast.lane.b32.xlu0 %v4243_v42, 256  ;;  %v4327_v42 = vrot.slane %v4216_v50, %v7749_v15 }
 0x3b7   : > { %4189 = vadd.xlane.f32.xlu1 %v7235_v12  ;;  %v4229_v12 = vrot.slane %v4215_v24, %v7723_v60 }
 0x3b8   : > { %4259 = vbcast.lane.b32.xlu0 %v4257_v37, 256  ;;  %v4278_v37 = vrot.slane %v4216_v50, %v6744_v21 }
 0x3bb   : > { %4193 = vadd.xlane.f32.xlu1 %v2703_v19  ;;  %v4306_v19 = vrot.slane %v4216_v50, %v7743_v6 }
 0x3bc   : > { %4273 = vbcast.lane.b32.xlu0 %v4271_v7, 256  ;;  %v4320_v7 = vrot.slane %v4216_v50, %v7752_v3 }
 0x3c0   : > { %4287 = vbcast.lane.b32.xlu0 %v4285_v39, 256  ;;  %v7835_v39 = vld [vmem:[%s6347_s6 + $0x18] sm:$0xff]  ;;  %s5165_s6 = sshll.u32 %s6354_s13, 6  ;;  %s8650_s13 = sld [smem:[#allocation12_spill]] }
 0x3c1   : > { %v3255_v24 = vmul.f32 %v7362_v28, %v7835_v39  ;;  %v3250_v50 = vmul.f32 %v7462_v16, %v7835_v39  ;;  %v3252_v28 = vmul.f32 %v7480_v8, %v7835_v39  ;;  %v3257_v8 = vmul.f32 %v7399_v25, %v7835_v39  ;;  %s8252_s12 = scalar_lea.vmem [#allocation8], %s5165_s6 }
 0x3c2   : > { %v4664_v25 = vrot.slane %v7767_v23, %v7723_v60 }
 0x3c4   : > { %4301 = vbcast.lane.b32.xlu0 %v4299_v36, 256  ;;  %v3248_v36 = vmul.f32 %v7434_v41, %v7835_v39  ;;  %v3251_v41 = vmul.f32 %v7472_v61, %v7835_v39 }
 0x3c6   : > { %p8651_p10 = scmp.ne.s32.totalorder %s8650_s13, 0 }
 0x3c7   : > { %s5255_s20 = sshll.u32 (%p8651_p10), %s6059_s8, 6  ;;  %s8652_s5 = sld [smem:[#allocation52_spill]] (%p8651_p10) }
 0x3c8   : > { %4315 = vbcast.lane.b32.xlu0 %v4313_v14, 256  ;;  %v7841_v14 = vpop.permute.xlu1 %3523  ;;  %s4914_s15 = sadd.s32 (%p8651_p10), %s5255_s20, %s6365_s16 }
 0x3c9   : > { %s5256_s19 = sshll.u32 (%p8651_p10), %s4914_s15, 3 }
 0x3cc   : > { %4329 = vbcast.lane.b32.xlu0 %v4327_v42, 256  ;;  %4231 = vbcast.lane.b32.xlu1 %v4229_v12, 256  ;;  %v3249_v42 = vmul.f32 %v7452_v46, %v7835_v39  ;;  %v7847_v12 = vpop.permute.xlu1 %3537  ;;  %v3253_v46 = vmul.f32 %v7502_v2, %v7835_v39  ;;  %v3258_v2 = vmul.f32 %v7427_v17, %v7835_v39 }
 0x3cd   : > { %s4916_s21 = scalar_lea.vmem (%p8651_p10), %s8652_s5, %s5256_s19 }
 0x3d0   : > { %4238 = vbcast.lane.b32.xlu1 %v4236_v51, 256  ;;  %v7851_v51 = vpop.permute.xlu1 %3551 }
 0x3d4   : > { %4252 = vbcast.lane.b32.xlu1 %v4250_v0, 256  ;;  %v7855_v0 = vpop.permute.xlu1 %3565 }
 0x3d8   : > { %4266 = vbcast.lane.b32.xlu1 %v4264_v30, 256  ;;  %v7859_v16 = vpop.permute.xlu1 %3467  ;;  %v3247_v30 = vmul.f32 %v7346_v38, %v7835_v39  ;;  %v4601_v38 = vrot.slane %v7765_v18, %v6744_v21 }
 0x3dc   : > { %4280 = vbcast.lane.b32.xlu1 %v4278_v37, 256  ;;  %v3531_v37 = vpop.permute.xlu0 %3530  ;;  %v3475_v61 = vpop.permute.xlu1 %3474 }
 0x3dd   : > { %5787 = vrcp.f32 %v3475_v61 }
 0x3e0   : > { %4294 = vbcast.lane.b32.xlu1 %v4292_v44, 256  ;;  %v3256_v44 = vmul.f32 %v7388_v29, %v7835_v39  ;;  %v3259_v29 = vmul.f32 %v7418_v9, %v7835_v39 }
 0x3e4   : > { %4308 = vbcast.lane.b32.xlu1 %v4306_v19, 256  ;;  %v3545_v19 = vpop.permute.xlu0 %3544 }
 0x3e8   : > { %4322 = vbcast.lane.b32.xlu1 %v4320_v7, 256  ;;  %v7867_v7 = vpop.permute.xlu1 %3481 }
 0x3eb   : > { %4544 = vadd.xlane.f32.xlu0 %v3248_v36  ;;  %v7873_v36 = vpop.permute.xlu0 %3558 }
 0x3ef   : > { %4558 = vadd.xlane.f32.xlu0 %v3255_v24  ;;  %v3489_v24 = vpop.permute.xlu1 %3488  ;;  %v3573_v17 = vpop.permute.xlu0 %3572 }
 0x3f0   : > { %5789 = vrcp.f32 %v3489_v24 }
 0x3f3   : > { %4546 = vadd.xlane.f32.xlu0 %v3249_v42  ;;  %v3260_v42 = vmul.f32 %v7445_v59, %v7835_v39  ;;  %v4608_v59 = vrot.slane %v7765_v18, %v7723_v60  ;;  %v7921_v18 = vrot.slane %v7737_v4, %v7730_v45 }
 0x3f7   : > { %4548 = vadd.xlane.f32.xlu0 %v3250_v50  ;;  %v7881_v50 = vpop.permute.xlu1 %3495 }
 0x3fb   : > { %4550 = vadd.xlane.f32.xlu0 %v3251_v41  ;;  %v3261_v41 = vmul.f32 %v7488_v31, %v7835_v39  ;;  %v4657_v31 = vrot.slane %v7767_v23, %v6744_v21  ;;  %v7913_v23 = vrot.slane %v7737_v4, %v7723_v60 }
 0x3ff   : > { %4552 = vadd.xlane.f32.xlu0 %v3252_v28  ;;  %v3517_v28 = vpop.permute.xlu0 %3516 }
 0x403   : > { %4554 = vadd.xlane.f32.xlu0 %v3253_v46  ;;  %v3503_v46 = vpop.permute.xlu1 %3502 }
 0x404   : > { %5791 = vrcp.f32 %v3503_v46  ;;  %v7929_v46 = vrot.slane %v7737_v4, %v7740_v56 }
 0x405   : > { %5793 = vrcp.f32 %v3517_v28 }
 0x406   : > { %5795 = vrcp.f32 %v3531_v37  ;;  %v3443_v28 = vmul.f32 %v7929_v46, %v7526_v32 }
 0x407   : > { %v7887_v9 = vpop.permute.xlu1 %3509  ;;  %5797 = vrcp.f32 %v3545_v19 }
 0x408   : > { %5799 = vrcp.f32 %v7873_v36 }
 0x409   : > { %5801 = vrcp.f32 %v3573_v17 }
 0x40a   : > { %5803 = vrcp.f32 %v7859_v16 }
 0x40b   : > { %5805 = vrcp.f32 %v7867_v7  ;;  %v7979_v7 = vrot.slane %v7719_v20, %v7749_v15 }
 0x40c   : > { %4542 = vadd.xlane.f32.xlu1 %v3247_v30  ;;  %v7885_v30 = vpop.permute.xlu0 %3908 }
 0x410   : > { %4560 = vadd.xlane.f32.xlu1 %v3256_v44  ;;  %v7889_v44 = vpop.permute.xlu0 %3922 }
 0x414   : > { %4562 = vadd.xlane.f32.xlu1 %v3257_v8  ;;  %v7891_v8 = vpop.permute.xlu1 %3901 }
 0x418   : > { %4564 = vadd.xlane.f32.xlu1 %v3258_v2  ;;  %v7895_v2 = vpop.permute.xlu0 %3936 }
 0x419   : > { %4603 = vbcast.lane.b32.xlu0 %v4601_v38, 256  ;;  %v7897_v38 = vpop.permute.xlu1 %3915 }
 0x41a   : > { %8602 = vst [vmem:[#allocation44_spill] sm:$0xff] %v7897_v38 }
 0x41c   : > { %4566 = vadd.xlane.f32.xlu1 %v3259_v29  ;;  %v3262_v29 = vmul.f32 %v7497_v5, %v7835_v39 }
 0x41d   : > { %4666 = vbcast.lane.b32.xlu0 %v4664_v25, 256  ;;  %v7903_v25 = vpop.permute.xlu0 %3950 }
 0x420   : > { %4568 = vadd.xlane.f32.xlu1 %v3260_v42  ;;  %v7905_v42 = vpop.permute.xlu1 %3929 }
 0x421   : > { %8603 = vst [vmem:[#allocation45_spill] sm:$0xff] %v7905_v42  ;;  %v3441_v42 = vmul.f32 %v7921_v18, %v7517_v10 }
 0x424   : > { %4570 = vadd.xlane.f32.xlu1 %v3261_v41  ;;  %v7907_v41 = vpop.permute.xlu0 %3845 }
 0x428   : > { %v3867_v47 = vpop.permute.xlu0 %3866 }
 0x42c   : > { %v7915_v5 = vpop.permute.xlu0 %3880 }
 0x430   : > { %v7931_v33 = vpop.permute.xlu0 %3894 }
 0x434   : > { %v7941_v10 = vpop.xlane.xlu0 %4191 }
 0x435   : > { %4610 = vbcast.lane.b32.xlu1 %v4608_v59, 256  ;;  %v7909_v59 = vpop.permute.xlu1 %3943 }
 0x436   : > { %8604 = vst [vmem:[#allocation46_spill] sm:$0xff] %v7909_v59 }
 0x439   : > { %4659 = vbcast.lane.b32.xlu1 %v4657_v31, 256  ;;  %v3853_v11 = vpop.permute.xlu1 %3852  ;;  %v5788_v31 = vpop.eup %5787 }
 0x43a   : > { %v5790_v59 = vpop.eup %5789  ;;  %5807 = vrcp.f32 %v3853_v11 }
 0x43b   : > { %v5792_v38 = vpop.eup %5791  ;;  %5809 = vrcp.f32 %v7881_v50 }
 0x43c   : > { %4572 = vadd.xlane.f32.xlu0 %v3262_v29  ;;  %v3439_v29 = vmul.f32 %v7913_v23, %v7440_v48  ;;  %v3597_v48 = vmul.f32 %v5790_v59, %v3441_v42  ;;  %v7947_v42 = vrot.slane %v7719_v20, %v7723_v60  ;;  %v3254_v59 = vmul.f32 %v7509_v22, %v7835_v39 }
 0x43d   : > { %v7923_v61 = vpop.permute.xlu1 %3859  ;;  %v7960_v60 = vrot.slane %v7719_v20, %v7730_v45  ;;  %v7968_v39 = vrot.slane %v7719_v20, %v7740_v56  ;;  %5811 = vrcp.f32 %v3867_v47 }
 0x43e   : > { %v3593_v24 = vmul.f32 %v5788_v31, %v3439_v29  ;;  %v7939_v31 = vrot.slane %v7737_v4, %v7749_v15  ;;  %v3601_v29 = vmul.f32 %v5792_v38, %v3443_v28  ;;  %v7954_v38 = vpop.permute.xlu0 %4224  ;;  %5813 = vrcp.f32 %v7887_v9 }
 0x43f   : > { %5815 = vrcp.f32 %v7915_v5 }
 0x440   : > { %v3445_v37 = vmul.f32 %v7939_v31, %v7542_v57  ;;  %v3447_v57 = vmul.f32 %v7947_v42, %v7383_v34  ;;  %v3449_v34 = vmul.f32 %v7960_v60, %v7474_v49  ;;  %v7985_v49 = vrot.slane %v7737_v4, %v6744_v21 }
 0x441   : > { %v7933_v13 = vpop.permute.xlu1 %3873  ;;  %5817 = vrcp.f32 %v7841_v14 }
 0x442   : > { %v7972_v17 = vpop.permute.xlu0 %4245  ;;  %v3438_v50 = vmul.f32 %v7985_v49, %v7430_v35  ;;  %5819 = vrcp.f32 %v7931_v33  ;;  %v8022_v33 = vrot.slane %v7737_v4, %v7752_v3 }
 0x443   : > { %5821 = vrcp.f32 %v7847_v12 }
 0x444   : > { %5823 = vrcp.f32 %v7885_v30 }
 0x445   : > { %v7950_v32 = vpop.permute.xlu1 %3887 }
 0x449   : > { %v7963_v36 = vpop.xlane.xlu1 %4189 }
 0x44d   : > { %v7974_v16 = vpop.xlane.xlu1 %4193 }
 0x451   : > { %v7999_v47 = vpop.permute.xlu1 %4231 }
 0x452   : > { %3642 = vperm.xlu0 %5658, %v3593_v24   ;;  %v5794_v24 = vpop.eup %5793  ;;  %5825 = vrcp.f32 %v7851_v51 }
 0x453   : > { %v3605_v19 = vmul.f32 %v5794_v24, %v3445_v37  ;;  %v3451_v37 = vmul.f32 %v7968_v39, %v7492_v52  ;;  %v7996_v52 = vrot.slane %v7737_v4, %v7733_v26 }
 0x455   : > { %v3440_v35 = vmul.f32 %v7996_v52, %v7511_v63 }
 0x456   : > { %3648 = vperm.xlu0 %5658, %v3597_v48   ;;  %v5796_v48 = vpop.eup %5795  ;;  %5827 = vrcp.f32 %v7889_v44 }
 0x457   : > { %v3609_v28 = vmul.f32 %v5796_v48, %v3447_v57  ;;  %v5798_v22 = vpop.eup %5797  ;;  %v7988_v48 = vpop.permute.xlu0 %4259  ;;  %v3453_v57 = vmul.f32 %v7979_v7, %v7534_v40  ;;  %v3817_v40 = vmul.f32 %v7597_v27, %v7913_v23  ;;  %v3819_v27 = vmul.f32 %v7616_v43, %v7921_v18 }
 0x458   : > { %v5800_v24 = vpop.eup %5799  ;;  %v3821_v43 = vmul.f32 %v7619_v54, %v7929_v46  ;;  %5829 = vrcp.f32 %v7855_v0  ;;  %v3823_v54 = vmul.f32 %v7636_v55, %v7939_v31  ;;  %v8605_v55 = vld [vmem:[#allocation22_spill] sm:$0xff] }
 0x459   : > { %v5802_v11 = vpop.eup %5801  ;;  %5831 = vrcp.f32 %v7895_v2  ;;  %v8060_v2 = vrot.slane %v7719_v20, %v7743_v6 }
 0x45a   : > { %3654 = vperm.xlu0 %5658, %v3601_v29   ;;  %v3613_v29 = vmul.f32 %v5798_v22, %v3449_v34  ;;  %v3621_v9 = vmul.f32 %v5802_v11, %v3453_v57  ;;  %5833 = vrcp.f32 %v7903_v25  ;;  %v8066_v25 = vrot.slane %v7719_v20, %v7752_v3 }
 0x45d   : > { %4556 = vadd.xlane.f32.xlu1 %v3254_v59  ;;  %v3617_v59 = vmul.f32 %v5800_v24, %v3451_v37  ;;  %v8011_v24 = vpop.permute.xlu0 %4273 }
 0x45e   : > { %3660 = vperm.xlu0 %5658, %v3605_v19   ;;  %v5804_v19 = vpop.eup %5803  ;;  %5835 = vrcp.f32 %v7907_v41 }
 0x45f   : > { %v3591_v22 = vmul.f32 %v5804_v19, %v3438_v50 }
 0x461   : > { %v8026_v12 = vpop.permute.xlu0 %4287 }
 0x462   : > { %3666 = vperm.xlu0 %5658, %v3609_v28   ;;  %v5806_v28 = vpop.eup %5805  ;;  %5837 = vrcp.f32 %v7923_v61 }
 0x463   : > { %v5808_v34 = vpop.eup %5807  ;;  %v3595_v37 = vmul.f32 %v5806_v28, %v3440_v35  ;;  %5839 = vrcp.f32 %v7999_v47 }
 0x464   : > { %v5810_v5 = vpop.eup %5809  ;;  %v3971_v11 = vmul.f32 %v5808_v34, %v3817_v40  ;;  %5841 = vrcp.f32 %v7933_v13  ;;  %v8610_v13 = vld [vmem:[#allocation21_spill] sm:$0xff] }
 0x465   : > { %v5812_v14 = vpop.eup %5811  ;;  %v8049_v35 = vpop.permute.xlu0 %4301  ;;  %5843 = vrcp.f32 %v7972_v17 }
 0x466   : > { %3672 = vperm.xlu0 %5658, %v3613_v29   ;;  %v8008_v29 = vrot.slane %v7737_v4, %v7743_v6  ;;  %v5814_v19 = vpop.eup %5813  ;;  %v3975_v57 = vmul.f32 %v5812_v14, %v3819_v27  ;;  %v8034_v4 = vrot.slane %v7719_v20, %v6744_v21  ;;  %v8046_v21 = vrot.slane %v7719_v20, %v7733_v26  ;;  %v8608_v20 = vld [vmem:[#allocation20_spill] sm:$0xff] }
 0x467   : > { %v5816_v28 = vpop.eup %5815  ;;  %5845 = vrcp.f32 %v7950_v32  ;;  %v8612_v32 = vld [vmem:[#allocation28_spill] sm:$0xff] }
 0x468   : > { %v3442_v63 = vmul.f32 %v8008_v29, %v7522_v1  ;;  %v3444_v1 = vmul.f32 %v8022_v33, %v7538_v53  ;;  %v3446_v53 = vmul.f32 %v8034_v4, %v7373_v62  ;;  %v3448_v62 = vmul.f32 %v8046_v21, %v7466_v58 }
 0x469   : > { %v8068_v58 = vpop.permute.xlu0 %4315  ;;  %5847 = vrcp.f32 %v7988_v48 }
 0x46a   : > { %3678 = vperm.xlu0 %5658, %v3617_v59   ;;  %v8013_v59 = vpop.permute.xlu1 %4238  ;;  %v3599_v50 = vmul.f32 %v5810_v5, %v3442_v63  ;;  %v3603_v51 = vmul.f32 %v5814_v19, %v3444_v1 }
 0x46d   : > { %v8083_v47 = vpop.permute.xlu0 %4329 }
 0x46e   : > { %3639 = vperm.xlu1 %5657, %v3591_v22   ;;  %3684 = vperm.xlu0 %5658, %v3621_v9   ;;  %v8037_v30 = vpop.permute.xlu1 %4252  ;;  %v5818_v22 = vpop.eup %5817  ;;  %v3979_v9 = vmul.f32 %v5816_v28, %v3821_v43  ;;  %v8607_v28 = vld [vmem:[#allocation26_spill] sm:$0xff]  ;;  %5849 = vrcp.f32 %v7891_v8  ;;  %v8615_v8 = vld [vmem:[#allocation29_spill] sm:$0xff] }
 0x46f   : > { %v5820_v34 = vpop.eup %5819  ;;  %v3607_v40 = vmul.f32 %v5818_v22, %v3446_v53  ;;  %v3827_v41 = vmul.f32 %v8607_v28, %v7960_v60  ;;  %5851 = vrcp.f32 %v8011_v24 }
 0x470   : > { %v5822_v44 = vpop.eup %5821  ;;  %v3983_v5 = vmul.f32 %v5820_v34, %v3823_v54  ;;  %v8609_v34 = vld [vmem:[#allocation27_spill] sm:$0xff] }
 0x471   : > { %v5824_v0 = vpop.eup %5823  ;;  %v3611_v63 = vmul.f32 %v5822_v44, %v3448_v62  ;;  %v3829_v53 = vmul.f32 %v8609_v34, %v7968_v39  ;;  %v3816_v62 = vmul.f32 %v8610_v13, %v7985_v49  ;;  %v8616_v34 = vld [vmem:[#allocation37_spill] sm:$0xff] }
 0x472   : > { %3645 = vperm.xlu1 %5657, %v3595_v37   ;;  %4020 = vperm.xlu0 %5658, %v3971_v11   ;;  %v8051_v37 = vpop.permute.xlu1 %4266  ;;  %v3825_v11 = vmul.f32 %v8605_v55, %v7947_v42  ;;  %v5826_v14 = vpop.eup %5825  ;;  %v8611_v55 = vld [vmem:[#allocation31_spill] sm:$0xff]  ;;  %v8617_v13 = vld [vmem:[#allocation45_spill] sm:$0xff] }
 0x473   : > { %v5828_v19 = vpop.eup %5827 }
 0x474   : > { %v3987_v27 = vmul.f32 %v5824_v0, %v3825_v11  ;;  %v5830_v43 = vpop.eup %5829  ;;  %v3991_v22 = vmul.f32 %v5828_v19, %v3827_v41  ;;  %v3831_v11 = vmul.f32 %v8611_v55, %v7979_v7 }
 0x476   : > { %3651 = vperm.xlu1 %5657, %v3599_v50   ;;  %4026 = vperm.xlu0 %5658, %v3975_v57   ;;  %v8606_v50 = vld [vmem:[#allocation15_spill] sm:$0xff]  ;;  %v8075_v1 = vpop.permute.xlu1 %4280 }
 0x477   : > { %v3450_v57 = vmul.f32 %v8060_v2, %v8606_v50  ;;  %v3818_v50 = vmul.f32 %v8612_v32, %v7996_v52 }
 0x479   : > { %v3615_v61 = vmul.f32 %v5826_v14, %v3450_v57  ;;  %v8093_v14 = vpop.xlane.xlu0 %4544  ;;  %v8613_v57 = vld [vmem:[#allocation33_spill] sm:$0xff] }
 0x47a   : > { %3657 = vperm.xlu1 %5657, %v3603_v51   ;;  %4032 = vperm.xlu0 %5658, %v3979_v9   ;;  %v5832_v51 = vpop.eup %5831  ;;  %v3452_v9 = vmul.f32 %v8066_v25, %v8608_v20  ;;  %v8085_v0 = vpop.permute.xlu1 %4294  ;;  %v4196_v28 = vmul.f32 %v8613_v57, %v7913_v23  ;;  %v8620_v57 = vld [vmem:[#allocation46_spill] sm:$0xff] }
 0x47b   : > { %v5834_v54 = vpop.eup %5833 }
 0x47c   : > { %v3619_v44 = vmul.f32 %v5830_v43, %v3452_v9  ;;  %v3820_v9 = vmul.f32 %v8615_v8, %v8008_v29 }
 0x47d   : > { %v8104_v20 = vpop.xlane.xlu0 %4558 }
 0x47e   : > { %3663 = vperm.xlu1 %5657, %v3607_v40   ;;  %4038 = vperm.xlu0 %5658, %v3983_v5   ;;  %v3995_v40 = vmul.f32 %v5832_v51, %v3829_v53  ;;  %v5836_v5 = vpop.eup %5835  ;;  %v8101_v41 = vpop.permute.xlu1 %4308  ;;  %v8614_v51 = vld [vmem:[#allocation44_spill] sm:$0xff]  ;;  %v4198_v53 = vmul.f32 %v8616_v34, %v7921_v18 }
 0x47f   : > { %v5838_v17 = vpop.eup %5837  ;;  %5853 = vrcp.f32 %v8614_v51 }
 0x480   : > { %v5840_v19 = vpop.eup %5839  ;;  %v3973_v43 = vmul.f32 %v5838_v17, %v3818_v50  ;;  %5855 = vrcp.f32 %v8026_v12 }
 0x481   : > { %v5842_v48 = vpop.eup %5841  ;;  %5857 = vrcp.f32 %v8617_v13  ;;  %v8119_v12 = vpop.xlane.xlu0 %4546 }
 0x482   : > { %3669 = vperm.xlu1 %5657, %v3611_v63   ;;  %4044 = vperm.xlu0 %5658, %v3987_v27   ;;  %v3969_v63 = vmul.f32 %v5836_v5, %v3816_v62  ;;  %v3999_v27 = vmul.f32 %v5834_v54, %v3831_v11  ;;  %v3977_v54 = vmul.f32 %v5842_v48, %v3820_v9  ;;  %v8111_v5 = vpop.permute.xlu1 %4322  ;;  %v8618_v62 = vld [vmem:[#allocation32_spill] sm:$0xff]  ;;  %v8619_v11 = vld [vmem:[#allocation38_spill] sm:$0xff]  ;;  %5859 = vrcp.f32 %v8049_v35 }
 0x483   : > { %v3822_v55 = vmul.f32 %v8618_v62, %v8022_v33  ;;  %v4200_v17 = vmul.f32 %v8619_v11, %v7929_v46  ;;  %5861 = vrcp.f32 %v8620_v57 }
 0x484   : > { %5863 = vrcp.f32 %v8068_v58 }
 0x485   : > { %5865 = vrcp.f32 %v7954_v38  ;;  %v8132_v34 = vpop.xlane.xlu0 %4548  ;;  %v8625_v38 = vld [vmem:[#allocation24_spill] sm:$0xff] }
 0x486   : > { %3675 = vperm.xlu1 %5657, %v3615_v61   ;;  %4050 = vperm.xlu0 %5658, %v3991_v22   ;;  %v4350_v61 = vmul.f32 %v5840_v19, %v4196_v28  ;;  %v5844_v22 = vpop.eup %5843  ;;  %v8621_v28 = vld [vmem:[#allocation19_spill] sm:$0xff]  ;;  %5867 = vrcp.f32 %v8083_v47  ;;  %v3828_v11 = vmul.f32 %v8625_v38, %v8060_v2 }
 0x487   : > { %v5846_v24 = vpop.eup %5845  ;;  %v3824_v48 = vmul.f32 %v8621_v28, %v8034_v4  ;;  %5869 = vrcp.f32 %v8013_v59 }
 0x488   : > { %5871 = vrcp.f32 %v8037_v30 }
 0x489   : > { %5873 = vrcp.f32 %v8051_v37 }
 0x48a   : > { %3681 = vperm.xlu1 %5657, %v3619_v44   ;;  %4056 = vperm.xlu0 %5658, %v3995_v40   ;;  %v4354_v44 = vmul.f32 %v5844_v22, %v4198_v53  ;;  %v5848_v40 = vpop.eup %5847  ;;  %v8623_v53 = vld [vmem:[#allocation23_spill] sm:$0xff]  ;;  %5875 = vrcp.f32 %v8075_v1 }
 0x48b   : > { %v4358_v19 = vmul.f32 %v5848_v40, %v4200_v17  ;;  %v8626_v17 = vld [vmem:[#allocation39_spill] sm:$0xff]  ;;  %5877 = vrcp.f32 %v8085_v0 }
 0x48c   : > { %v8633_v1 = vld [vmem:[#allocation43_spill] sm:$0xff]  ;;  %5879 = vrcp.f32 %v8101_v41 }
 0x48d   : > { %v8636_v0 = vrot.slane %v8633_v1, %v7743_v6  ;;  %v8638_v41 = vrot.slane %v8633_v1, %v7740_v56 }
 0x48e   : > { %4017 = vperm.xlu1 %5657, %v3969_v63   ;;  %4062 = vperm.xlu0 %5658, %v3999_v27   ;;  %v5850_v63 = vpop.eup %5849  ;;  %v3981_v27 = vmul.f32 %v5846_v24, %v3822_v55  ;;  %v3826_v24 = vmul.f32 %v8623_v53, %v8046_v21  ;;  %v4210_v53 = vmul.f32 %v7974_v16, %v7979_v7  ;;  %5881 = vrcp.f32 %v8111_v5 }
 0x48f   : > { %v5852_v32 = vpop.eup %5851  ;;  %v3985_v22 = vmul.f32 %v5850_v63, %v3824_v48  ;;  %v4206_v63 = vmul.f32 %v8626_v17, %v7960_v60  ;;  %v4208_v48 = vmul.f32 %v7963_v36, %v7968_v39  ;;  %v8628_v36 = vld [vmem:[#allocation35_spill] sm:$0xff] }
 0x490   : > { %v5854_v35 = vpop.eup %5853 }
 0x491   : > { %v5856_v8 = vpop.eup %5855  ;;  %v3989_v40 = vmul.f32 %v5854_v35, %v3826_v24 }
 0x492   : > { %4023 = vperm.xlu1 %5657, %v3973_v43   ;;  %4399 = vperm.xlu0 %5658, %v4350_v61   ;;  %v8622_v43 = vld [vmem:[#allocation41_spill] sm:$0xff]  ;;  %v5858_v58 = vpop.eup %5857 }
 0x493   : > { %v4202_v61 = vmul.f32 %v8622_v43, %v7939_v31  ;;  %v5860_v62 = vpop.eup %5859  ;;  %v3993_v47 = vmul.f32 %v5858_v58, %v3828_v11  ;;  %v8627_v43 = vld [vmem:[#allocation30_spill] sm:$0xff] }
 0x495   : > { %v4362_v51 = vmul.f32 %v5852_v32, %v4202_v61  ;;  %v4370_v32 = vmul.f32 %v5860_v62, %v4206_v63  ;;  %v3830_v61 = vmul.f32 %v8627_v43, %v8066_v25  ;;  %v8630_v63 = vld [vmem:[#allocation17_spill] sm:$0xff]  ;;  %v8634_v43 = vrot.slane %v8633_v1, %v7730_v45 }
 0x496   : > { %4029 = vperm.xlu1 %5657, %v3977_v54   ;;  %4405 = vperm.xlu0 %5658, %v4354_v44   ;;  %v8624_v54 = vld [vmem:[#allocation25_spill] sm:$0xff]  ;;  %v8631_v37 = vrot.slane %v8630_v63, %v7733_v26 }
 0x497   : > { %v4204_v44 = vmul.f32 %v8624_v54, %v7947_v42  ;;  %v4195_v54 = vmul.f32 %v8628_v36, %v7985_v49 }
 0x499   : > { %v8121_v50 = vpop.xlane.xlu1 %4542  ;;  %v4366_v13 = vmul.f32 %v5856_v8, %v4204_v44 }
 0x49a   : > { %4035 = vperm.xlu1 %5657, %v3981_v27   ;;  %4411 = vperm.xlu0 %5658, %v4358_v19   ;;  %v5862_v27 = vpop.eup %5861  ;;  %v8146_v19 = vpop.xlane.xlu0 %4550 }
 0x49b   : > { %v5864_v57 = vpop.eup %5863 }
 0x49c   : > { %v5866_v35 = vpop.eup %5865  ;;  %v4374_v59 = vmul.f32 %v5864_v57, %v4208_v48 }
 0x49d   : > { %v8129_v9 = vpop.xlane.xlu1 %4560  ;;  %v4348_v30 = vmul.f32 %v5866_v35, %v4195_v54 }
 0x49e   : > { %4041 = vperm.xlu1 %5657, %v3985_v22   ;;  %4417 = vperm.xlu0 %5658, %v4362_v51   ;;  %v3997_v22 = vmul.f32 %v5862_v27, %v3830_v61  ;;  %v5868_v51 = vpop.eup %5867  ;;  %v8159_v24 = vpop.xlane.xlu0 %4552  ;;  %v8632_v27 = vld [vmem:[#allocation36_spill] sm:$0xff]  ;;  %v8635_v61 = vld [vmem:[#allocation14_spill] sm:$0xff] }
 0x49f   : > { %v4378_v44 = vmul.f32 %v5868_v51, %v4210_v53  ;;  %v5870_v58 = vpop.eup %5869  ;;  %v4201_v35 = vmul.f32 %v8635_v61, %v8022_v33  ;;  %v8637_v53 = vld [vmem:[#allocation42_spill] sm:$0xff]  ;;  %v8642_v61 = vrot.slane %v8633_v1, %v7749_v15 }
 0x4a0   : > { %v5872_v11 = vpop.eup %5871  ;;  %v4203_v36 = vmul.f32 %v8637_v53, %v8034_v4 }
 0x4a1   : > { %v8139_v55 = vpop.xlane.xlu1 %4562  ;;  %v5874_v57 = vpop.eup %5873 }
 0x4a2   : > { %4047 = vperm.xlu1 %5657, %v3989_v40   ;;  %4423 = vperm.xlu0 %5658, %v4366_v13   ;;  %v8629_v13 = vld [vmem:[#allocation34_spill] sm:$0xff]  ;;  %v8169_v16 = vpop.xlane.xlu0 %4554  ;;  %v5876_v51 = vpop.eup %5875 }
 0x4a3   : > { %v4197_v62 = vmul.f32 %v8629_v13, %v7996_v52 }
 0x4a5   : > { %v8148_v28 = vpop.xlane.xlu1 %4564  ;;  %v4352_v38 = vmul.f32 %v5870_v58, %v4197_v62  ;;  %v8639_v58 = vld [vmem:[#allocation40_spill] sm:$0xff] }
 0x4a6   : > { %4053 = vperm.xlu1 %5657, %v3993_v47   ;;  %4429 = vperm.xlu0 %5658, %v4370_v32   ;;  %v4199_v47 = vmul.f32 %v8632_v27, %v8008_v29  ;;  %v4604_v48 = vpop.permute.xlu0 %4603  ;;  %v4205_v5 = vmul.f32 %v8639_v58, %v8046_v21 }
 0x4a8   : > { %v4356_v32 = vmul.f32 %v5872_v11, %v4199_v47  ;;  %v8641_v11 = vld [vmem:[#allocation18_spill] sm:$0xff] }
 0x4a9   : > { %v8155_v8 = vpop.xlane.xlu1 %4566 }
 0x4aa   : > { %4059 = vperm.xlu1 %5657, %v3997_v22   ;;  %4435 = vperm.xlu0 %5658, %v4374_v59   ;;  %v4360_v22 = vmul.f32 %v5874_v57, %v4201_v35  ;;  %v4667_v54 = vpop.permute.xlu0 %4666  ;;  %v4209_v57 = vmul.f32 %v7941_v10, %v8066_v25  ;;  %v8643_v10 = vrot.slane %v8633_v1, %v7733_v26 }
 0x4ad   : > { %v8164_v40 = vpop.xlane.xlu1 %4568 }
 0x4ae   : > { %4396 = vperm.xlu1 %5657, %v4348_v30   ;;  %4441 = vperm.xlu0 %5658, %v4378_v44   ;;  %v4364_v44 = vmul.f32 %v5876_v51, %v4203_v36  ;;  %v5878_v30 = vpop.eup %5877  ;;  %v4583_v51 = vmul.f32 %v8129_v9, %v7947_v42 }
 0x4af   : > { %v4368_v13 = vmul.f32 %v5878_v30, %v4205_v5  ;;  %v5880_v62 = vpop.eup %5879 }
 0x4b0   : > { %v5882_v27 = vpop.eup %5881 }
 0x4b1   : > { %v8171_v17 = vpop.xlane.xlu1 %4570  ;;  %v4376_v35 = vmul.f32 %v5882_v27, %v4209_v57 }
 0x4b2   : > { %4617 = vbcast.lane.b32.xlu0 %v8631_v37, 256  ;;  %4402 = vperm.xlu1 %5657, %v4352_v38   ;;  %v8640_v38 = vrot.slane %v8633_v1, %v7752_v3  ;;  %v4207_v37 = vmul.f32 %v8641_v11, %v8060_v2  ;;  %v8647_v1 = vrot.slane %v8630_v63, %v7752_v3 }
 0x4b4   : > { %v4372_v47 = vmul.f32 %v5880_v62, %v4207_v37 }
 0x4b5   : > { %v4611_v59 = vpop.permute.xlu1 %4610 }
 0x4b6   : > { %4680 = vbcast.lane.b32.xlu0 %v8634_v43, 256  ;;  %4408 = vperm.xlu1 %5657, %v4356_v32   ;;  %5883 = vrcp.f32 %v4611_v59  ;;  %v4575_v43 = vmul.f32 %v8093_v14, %v7913_v23  ;;  %v8644_v14 = vrot.slane %v8630_v63, %v7730_v45 }
 0x4b7   : > { %5885 = vrcp.f32 %v4667_v54  ;;  %v8645_v54 = vrot.slane %v8630_v63, %v7743_v6  ;;  %v8648_v6 = vrot.slane %v8630_v63, %v7749_v15 }
 0x4b8   : > { %5887 = vrcp.f32 %v4604_v48 }
 0x4b9   : > { %v4660_v42 = vpop.permute.xlu1 %4659 }
 0x4ba   : > { %4687 = vbcast.lane.b32.xlu0 %v8636_v0, 256  ;;  %4414 = vperm.xlu1 %5657, %v4360_v22   ;;  %5889 = vrcp.f32 %v4660_v42 }
 0x4be   : > { %4694 = vbcast.lane.b32.xlu0 %v8638_v41, 256  ;;  %4420 = vperm.xlu1 %5657, %v4364_v44   ;;  %v8646_v44 = vrot.slane %v8630_v63, %v7740_v56  ;;  %v4574_v41 = vmul.f32 %v8121_v50, %v7985_v49  ;;  %v4582_v56 = vmul.f32 %v8104_v20, %v8034_v4  ;;  %v8649_v49 = vld [vmem:[#allocation16_spill] sm:$0xff] }
 0x4c0   : > { %v5884_v32 = vpop.eup %5883 }
 0x4c1   : > { %v4729_v59 = vmul.f32 %v5884_v32, %v4575_v43  ;;  %v5886_v22 = vpop.eup %5885 }
 0x4c2   : > { %4701 = vbcast.lane.b32.xlu0 %v8640_v38, 256  ;;  %4426 = vperm.xlu1 %5657, %v4368_v13   ;;  %v4745_v0 = vmul.f32 %v5886_v22, %v4583_v51  ;;  %v5888_v45 = vpop.eup %5887 }
 0x4c3   : > { %v4727_v48 = vmul.f32 %v5888_v45, %v4574_v41 }
 0x4c4   : > { %v5890_v58 = vpop.eup %5889 }
 0x4c5   : > { %v4743_v13 = vmul.f32 %v5890_v58, %v4582_v56 }
 0x4c6   : > { %4708 = vbcast.lane.b32.xlu0 %v8642_v61, 256  ;;  %4432 = vperm.xlu1 %5657, %v4372_v47  }
 0x4c9   : > { %v8210_v53 = vpop.xlane.xlu0 %4572 }
 0x4ca   : > { %4438 = vperm.xlu1 %5657, %v4376_v35   ;;  %4778 = vperm.xlu0 %5658, %v4729_v59  }
 0x4ce   : > { %4673 = vbcast.lane.b32.xlu1 %v8643_v10, 256  ;;  %4802 = vperm.xlu0 %5658, %v4745_v0  }
 0x4d1   : > { %v3643_v23 = vpop.permute.xlu0 %3642 }
 0x4d2   : > { %4624 = vbcast.lane.b32.xlu1 %v8644_v14, 256  ;;  %v3693_v15 = vrot.slane %v3643_v23, %v8649_v49 }
 0x4d5   : > { %v3649_v36 = vpop.permute.xlu0 %3648 }
 0x4d6   : > { %4631 = vbcast.lane.b32.xlu1 %v8645_v54, 256  ;;  %v3701_v32 = vrot.slane %v3649_v36, %v8649_v49 }
 0x4d9   : > { %v3655_v9 = vpop.permute.xlu0 %3654 }
 0x4da   : > { %4638 = vbcast.lane.b32.xlu1 %v8646_v44, 256  ;;  %v3709_v22 = vrot.slane %v3655_v9, %v8649_v49 }
 0x4dd   : > { %v3661_v26 = vpop.permute.xlu0 %3660 }
 0x4de   : > { %4645 = vbcast.lane.b32.xlu1 %v8647_v1, 256  ;;  %v3717_v10 = vrot.slane %v3661_v26, %v8649_v49 }
 0x4e1   : > { %v3667_v30 = vpop.permute.xlu0 %3666 }
 0x4e2   : > { %4652 = vbcast.lane.b32.xlu1 %v8648_v6, 256  ;;  %v3725_v1 = vrot.slane %v3667_v30, %v8649_v49 }
 0x4e5   : > { %v3673_v5 = vpop.permute.xlu0 %3672 }
 0x4e6   : > { %4775 = vperm.xlu1 %5657, %v4727_v48   ;;  %v3733_v58 = vrot.slane %v3673_v5, %v8649_v49 }
 0x4e9   : > { %v3679_v62 = vpop.permute.xlu0 %3678 }
 0x4ea   : > { %4799 = vperm.xlu1 %5657, %v4743_v13   ;;  %v8234_v3 = vpop.xlane.xlu1 %4556  ;;  %v3741_v30 = vrot.slane %v3679_v62, %v8649_v49 }
 0x4ed   : > { %v3685_v38 = vpop.permute.xlu0 %3684 }
 0x4ee   : > { %v3640_v11 = vpop.permute.xlu1 %3639 }
 0x4ef   : > { %v3689_v50 = vrot.slane %v3640_v11, %v8649_v49 }
 0x4f1   : > { %v4021_v37 = vpop.permute.xlu0 %4020  ;;  %v3750_v47 = vsel %vm1527_vm1, %v3693_v15, %v3689_v50 }
 0x4f2   : > { %v3646_v63 = vpop.permute.xlu1 %3645  ;;  %v4071_v62 = vrot.slane %v4021_v37, %v8649_v49 }
 0x4f3   : > { %v3697_v27 = vrot.slane %v3646_v63, %v8649_v49 }
 0x4f5   : > { %v3751_v4 = vsel %vm1529_vm2, %v3697_v27, %v3750_v47  ;;  %v4027_v20 = vpop.permute.xlu0 %4026  ;;  %v3749_v47 = vrot.slane %v3685_v38, %v8649_v49 }
 0x4f6   : > { %v3652_v57 = vpop.permute.xlu1 %3651  ;;  %v3752_v61 = vsel %vm1531_vm3, %v3701_v32, %v3751_v4 }
 0x4f7   : > { %v3705_v43 = vrot.slane %v3652_v57, %v8649_v49 }
 0x4f9   : > { %v3753_v35 = vsel %vm1533_vm4, %v3705_v43, %v3752_v61  ;;  %v4033_v59 = vpop.permute.xlu0 %4032 }
 0x4fa   : > { %v3658_v51 = vpop.permute.xlu1 %3657  ;;  %v3754_v23 = vsel %vm1535_vm5, %v3709_v22, %v3753_v35  ;;  %v4087_v37 = vrot.slane %v4033_v59, %v8649_v49 }
 0x4fb   : > { %v3713_v0 = vrot.slane %v3658_v51, %v8649_v49 }
 0x4fd   : > { %v3755_v14 = vsel %vm1537_vm6, %v3713_v0, %v3754_v23  ;;  %v4039_v36 = vpop.permute.xlu0 %4038  ;;  %v4079_v23 = vrot.slane %v4027_v20, %v8649_v49 }
 0x4fe   : > { %v3756_v54 = vsel %vm1539_vm7, %v3717_v10, %v3755_v14  ;;  %v3664_v42 = vpop.permute.xlu1 %3663 }
 0x4ff   : > { %3766 = vst.msk [vmem:[%s8252_s12] sm:$0xff] %vm562_vm0, %v3756_v54  ;;  %v3721_v9 = vrot.slane %v3664_v42, %v8649_v49 }
 0x501   : > { %v4045_v44 = vpop.permute.xlu0 %4044  ;;  %v3757_v41 = vsel %vm1527_vm1, %v3725_v1, %v3721_v9 }
 0x502   : > { %v3670_v45 = vpop.permute.xlu1 %3669  ;;  %v4103_v59 = vrot.slane %v4045_v44, %v8649_v49 }
 0x503   : > { %v3729_v26 = vrot.slane %v3670_v45, %v8649_v49 }
 0x505   : > { %v3758_v6 = vsel %vm1529_vm2, %v3729_v26, %v3757_v41  ;;  %v4051_v48 = vpop.permute.xlu0 %4050  ;;  %v4095_v41 = vrot.slane %v4039_v36, %v8649_v49 }
 0x506   : > { %v3676_v56 = vpop.permute.xlu1 %3675  ;;  %v3759_v11 = vsel %vm1531_vm3, %v3733_v58, %v3758_v6 }
 0x507   : > { %v3737_v13 = vrot.slane %v3676_v56, %v8649_v49 }
 0x509   : > { %v3760_v50 = vsel %vm1533_vm4, %v3737_v13, %v3759_v11  ;;  %v4057_v15 = vpop.permute.xlu0 %4056 }
 0x50a   : > { %v3682_v63 = vpop.permute.xlu1 %3681  ;;  %v3761_v4 = vsel %vm1535_vm5, %v3741_v30, %v3760_v50  ;;  %v4119_v44 = vrot.slane %v4057_v15, %v8649_v49 }
 0x50b   : > { %v3745_v27 = vrot.slane %v3682_v63, %v8649_v49 }
 0x50d   : > { %v3762_v32 = vsel %vm1537_vm6, %v3745_v27, %v3761_v4  ;;  %v4063_v5 = vpop.permute.xlu0 %4062  ;;  %v4111_v4 = vrot.slane %v4051_v48, %v8649_v49 }
 0x50e   : > { %v3763_v57 = vsel %vm1539_vm7, %v3749_v47, %v3762_v32  ;;  %v4018_v43 = vpop.permute.xlu1 %4017 }
 0x50f   : > { %3767 = vst.msk [vmem:[%s8252_s12 + $0x8] sm:$0xff] %vm562_vm0, %v3763_v57  ;;  %v4067_v61 = vrot.slane %v4018_v43, %v8649_v49 }
 0x511   : > { %v4400_v35 = vpop.permute.xlu0 %4399  ;;  %v4128_v38 = vsel %vm1527_vm1, %v4071_v62, %v4067_v61 }
 0x512   : > { %v4024_v22 = vpop.permute.xlu1 %4023  ;;  %v4450_v15 = vrot.slane %v4400_v35, %v8649_v49 }
 0x513   : > { %v4075_v51 = vrot.slane %v4024_v22, %v8649_v49 }
 0x515   : > { %v4129_v0 = vsel %vm1529_vm2, %v4075_v51, %v4128_v38  ;;  %v4406_v10 = vpop.permute.xlu0 %4405  ;;  %v4127_v38 = vrot.slane %v4063_v5, %v8649_v49 }
 0x516   : > { %v4030_v14 = vpop.permute.xlu1 %4029  ;;  %v4130_v42 = vsel %vm1531_vm3, %v4079_v23, %v4129_v0 }
 0x517   : > { %v4083_v54 = vrot.slane %v4030_v14, %v8649_v49 }
 0x519   : > { %v4131_v9 = vsel %vm1533_vm4, %v4083_v54, %v4130_v42  ;;  %v4412_v1 = vpop.permute.xlu0 %4411 }
 0x51a   : > { %v4036_v45 = vpop.permute.xlu1 %4035  ;;  %v4132_v6 = vsel %vm1535_vm5, %v4087_v37, %v4131_v9  ;;  %v4466_v35 = vrot.slane %v4412_v1, %v8649_v49 }
 0x51b   : > { %v4091_v26 = vrot.slane %v4036_v45, %v8649_v49 }
 0x51d   : > { %v4133_v58 = vsel %vm1537_vm6, %v4091_v26, %v4132_v6  ;;  %v4418_v20 = vpop.permute.xlu0 %4417 }
 0x51e   : > { %v4134_v56 = vsel %vm1539_vm7, %v4095_v41, %v4133_v58  ;;  %v4042_v13 = vpop.permute.xlu1 %4041  ;;  %v4458_v41 = vrot.slane %v4406_v10, %v8649_v49 }
 0x51f   : > { %5247 = vst.msk [vmem:[%s8252_s12 + $0x10] sm:$0xff] %vm562_vm0, %v4134_v56  ;;  %v4099_v11 = vrot.slane %v4042_v13, %v8649_v49 }
 0x521   : > { %v4424_v50 = vpop.permute.xlu0 %4423  ;;  %v4135_v36 = vsel %vm1527_vm1, %v4103_v59, %v4099_v11  ;;  %v4576_v59 = vmul.f32 %v8119_v12, %v7996_v52 }
 0x522   : > { %v4048_v30 = vpop.permute.xlu1 %4047  ;;  %v4482_v52 = vrot.slane %v4424_v50, %v8649_v49 }
 0x523   : > { %v4107_v63 = vrot.slane %v4048_v30, %v8649_v49 }
 0x525   : > { %v4136_v27 = vsel %vm1529_vm2, %v4107_v63, %v4135_v36  ;;  %v4430_v47 = vpop.permute.xlu0 %4429  ;;  %v4474_v36 = vrot.slane %v4418_v20, %v8649_v49 }
 0x526   : > { %v4054_v32 = vpop.permute.xlu1 %4053  ;;  %v4137_v43 = vsel %vm1531_vm3, %v4111_v4, %v4136_v27 }
 0x527   : > { %v4115_v57 = vrot.slane %v4054_v32, %v8649_v49 }
 0x529   : > { %v4138_v61 = vsel %vm1533_vm4, %v4115_v57, %v4137_v43  ;;  %v4436_v62 = vpop.permute.xlu0 %4435 }
 0x52a   : > { %v4060_v22 = vpop.permute.xlu1 %4059  ;;  %v4139_v0 = vsel %vm1535_vm5, %v4119_v44, %v4138_v61  ;;  %v4490_v44 = vrot.slane %v4430_v47, %v8649_v49  ;;  %v4498_v50 = vrot.slane %v4436_v62, %v8649_v49 }
 0x52b   : > { %v4123_v51 = vrot.slane %v4060_v22, %v8649_v49 }
 0x52d   : > { %v4140_v23 = vsel %vm1537_vm6, %v4123_v51, %v4139_v0  ;;  %v4442_v48 = vpop.permute.xlu0 %4441 }
 0x52e   : > { %v4141_v14 = vsel %vm1539_vm7, %v4127_v38, %v4140_v23  ;;  %v4397_v54 = vpop.permute.xlu1 %4396 }
 0x52f   : > { %5248 = vst.msk [vmem:[%s8252_s12 + $0x18] sm:$0xff] %vm562_vm0, %v4141_v14  ;;  %v4446_v42 = vrot.slane %v4397_v54, %v8649_v49 }
 0x531   : > { %v4618_v9 = vpop.permute.xlu0 %4617  ;;  %v4507_v5 = vsel %vm1527_vm1, %v4450_v15, %v4446_v42  ;;  %v4506_v42 = vrot.slane %v4442_v48, %v8649_v49  ;;  %v4584_v48 = vmul.f32 %v8139_v55, %v8046_v21 }
 0x532   : > { %5891 = vrcp.f32 %v4618_v9  ;;  %v4403_v37 = vpop.permute.xlu1 %4402 }
 0x533   : > { %v4454_v45 = vrot.slane %v4403_v37, %v8649_v49 }
 0x535   : > { %v4508_v26 = vsel %vm1529_vm2, %v4454_v45, %v4507_v5  ;;  %v4681_v22 = vpop.permute.xlu0 %4680 }
 0x536   : > { %v4409_v6 = vpop.permute.xlu1 %4408  ;;  %v4509_v56 = vsel %vm1531_vm3, %v4458_v41, %v4508_v26 }
 0x537   : > { %v4462_v58 = vrot.slane %v4409_v6, %v8649_v49 }
 0x539   : > { %v4510_v13 = vsel %vm1533_vm4, %v4462_v58, %v4509_v56  ;;  %v4688_v9 = vpop.permute.xlu0 %4687 }
 0x53a   : > { %v4415_v11 = vpop.permute.xlu1 %4414  ;;  %v4511_v10 = vsel %vm1535_vm5, %v4466_v35, %v4510_v13  ;;  %v4577_v35 = vmul.f32 %v8132_v34, %v7921_v18 }
 0x53b   : > { %v4470_v30 = vrot.slane %v4415_v11, %v8649_v49  ;;  %v4585_v11 = vmul.f32 %v8148_v28, %v7960_v60 }
 0x53c   : > { %v5892_v63 = vpop.eup %5891 }
 0x53d   : > { %v4512_v27 = vsel %vm1537_vm6, %v4470_v30, %v4511_v10  ;;  %v4731_v4 = vmul.f32 %v5892_v63, %v4576_v59  ;;  %v4695_v5 = vpop.permute.xlu0 %4694  ;;  %v4578_v10 = vmul.f32 %v8146_v19, %v8008_v29 }
 0x53e   : > { %v4513_v32 = vsel %vm1539_vm7, %v4474_v36, %v4512_v27  ;;  %v4421_v57 = vpop.permute.xlu1 %4420  ;;  %v4586_v27 = vmul.f32 %v8155_v8, %v8060_v2 }
 0x53f   : > { %5249 = vst.msk [vmem:[%s8252_s12 + $0x20] sm:$0xff] %vm562_vm0, %v4513_v32  ;;  %4781 = vperm.xlu1 %5657, %v4731_v4   ;;  %v4478_v1 = vrot.slane %v4421_v57, %v8649_v49  ;;  %v4579_v32 = vmul.f32 %v8159_v24, %v7929_v46  ;;  %v4587_v57 = vmul.f32 %v8164_v40, %v7968_v39 }
 0x540   : > { %v4589_v39 = vmul.f32 %v8210_v53, %v7979_v7  ;;  %v4581_v40 = vmul.f32 %v8234_v3, %v7939_v31 }
 0x541   : > { %v4514_v20 = vsel %vm1527_vm1, %v4482_v52, %v4478_v1  ;;  %v4702_v41 = vpop.permute.xlu0 %4701  ;;  %v4580_v1 = vmul.f32 %v8169_v16, %v8022_v33  ;;  %v4588_v52 = vmul.f32 %v8171_v17, %v8066_v25 }
 0x542   : > { %v4427_v12 = vpop.permute.xlu1 %4426 }
 0x543   : > { %v4486_v43 = vrot.slane %v4427_v12, %v8649_v49 }
 0x545   : > { %v4515_v61 = vsel %vm1529_vm2, %v4486_v43, %v4514_v20  ;;  %v4709_v30 = vpop.permute.xlu0 %4708 }
 0x546   : > { %v4433_v51 = vpop.permute.xlu1 %4432  ;;  %v4516_v0 = vsel %vm1531_vm3, %v4490_v44, %v4515_v61 }
 0x547   : > { %v4494_v38 = vrot.slane %v4433_v51, %v8649_v49 }
 0x549   : > { %v4517_v23 = vsel %vm1533_vm4, %v4494_v38, %v4516_v0  ;;  %v4779_v25 = vpop.permute.xlu0 %4778 }
 0x54a   : > { %v4439_v14 = vpop.permute.xlu1 %4438  ;;  %v4518_v15 = vsel %vm1535_vm5, %v4498_v50, %v4517_v23 }
 0x54b   : > { %v4502_v54 = vrot.slane %v4439_v14, %v8649_v49 }
 0x54d   : > { %v4519_v47 = vsel %vm1537_vm6, %v4502_v54, %v4518_v15  ;;  %v4803_v17 = vpop.permute.xlu0 %4802 }
 0x54e   : > { %v4520_v37 = vsel %vm1539_vm7, %v4506_v42, %v4519_v47  ;;  %v4674_v45 = vpop.permute.xlu1 %4673  ;;  %v4829_v42 = vrot.slane %v4779_v25, %v8649_v49 }
 0x54f   : > { %5250 = vst.msk [vmem:[%s8252_s12 + $0x28] sm:$0xff] %vm562_vm0, %v4520_v37  ;;  %5893 = vrcp.f32 %v4674_v45 }
 0x550   : > { %5895 = vrcp.f32 %v4681_v22 }
 0x552   : > { %v4625_v26 = vpop.permute.xlu1 %4624 }
 0x553   : > { %5897 = vrcp.f32 %v4625_v26 }
 0x554   : > { %5899 = vrcp.f32 %v4688_v9  ;;  %v4861_v9 = vrot.slane %v4803_v17, %v8649_v49 }
 0x556   : > { %v4632_v62 = vpop.permute.xlu1 %4631 }
 0x557   : > { %5901 = vrcp.f32 %v4632_v62 }
 0x558   : > { %5903 = vrcp.f32 %v4695_v5 }
 0x559   : > { %v5894_v6 = vpop.eup %5893 }
 0x55a   : > { %v4639_v58 = vpop.permute.xlu1 %4638  ;;  %v4747_v56 = vmul.f32 %v5894_v6, %v4584_v48  ;;  %v5896_v13 = vpop.eup %5895 }
 0x55b   : > { %5905 = vrcp.f32 %v4639_v58  ;;  %v4749_v36 = vmul.f32 %v5896_v13, %v4585_v11 }
 0x55c   : > { %4805 = vperm.xlu0 %5658, %v4747_v56   ;;  %5907 = vrcp.f32 %v4702_v41 }
 0x55d   : > { %v5898_v59 = vpop.eup %5897 }
 0x55e   : > { %v4646_v63 = vpop.permute.xlu1 %4645  ;;  %v4733_v21 = vmul.f32 %v5898_v59, %v4577_v35  ;;  %v5900_v55 = vpop.eup %5899 }
 0x55f   : > { %5909 = vrcp.f32 %v4646_v63  ;;  %v4751_v34 = vmul.f32 %v5900_v55, %v4586_v27 }
 0x560   : > { %4808 = vperm.xlu0 %5658, %v4749_v36   ;;  %4784 = vperm.xlu1 %5657, %v4733_v21   ;;  %5911 = vrcp.f32 %v4709_v30 }
 0x561   : > { %v5902_v18 = vpop.eup %5901 }
 0x562   : > { %v4653_v60 = vpop.permute.xlu1 %4652  ;;  %v4735_v28 = vmul.f32 %v5902_v18, %v4578_v10  ;;  %v5904_v4 = vpop.eup %5903 }
 0x563   : > { %5913 = vrcp.f32 %v4653_v60  ;;  %v4753_v19 = vmul.f32 %v5904_v4, %v4587_v57  ;;  %v4962_v57 = vld [vmem:[%s8252_s12 + $0x10] sm:$0xff] (%p8651_p10) }
 0x564   : > { %4811 = vperm.xlu0 %5658, %v4751_v34   ;;  %4787 = vperm.xlu1 %5657, %v4735_v28   ;;  %4963 = vst [vmem:[%s4916_s21 + $0x80] sm:$0xff] (%p8651_p10), %v4962_v57 }
 0x565   : > { %v5906_v29 = vpop.eup %5905 }
 0x566   : > { %v4737_v2 = vmul.f32 %v5906_v29, %v4579_v32  ;;  %v5908_v8 = vpop.eup %5907  ;;  %v4776_v16 = vpop.permute.xlu1 %4775  ;;  %v4960_v32 = vld [vmem:[%s8252_s12 + $0x8] sm:$0xff] (%p8651_p10)  ;;  %v4964_v29 = vld [vmem:[%s8252_s12 + $0x18] sm:$0xff] (%p8651_p10) }
 0x567   : > { %v4755_v43 = vmul.f32 %v5908_v8, %v4588_v52  ;;  %v4825_v31 = vrot.slane %v4776_v16, %v8649_v49  ;;  %4961 = vst [vmem:[%s4916_s21 + $0x8] sm:$0xff] (%p8651_p10), %v4960_v32  ;;  %4965 = vst [vmem:[%s4916_s21 + $0x88] sm:$0xff] (%p8651_p10), %v4964_v29 }
 0x568   : > { %4814 = vperm.xlu0 %5658, %v4753_v19   ;;  %4790 = vperm.xlu1 %5657, %v4737_v2   ;;  %v4966_v19 = vld [vmem:[%s8252_s12 + $0x20] sm:$0xff] (%p8651_p10)  ;;  %v4968_v2 = vld [vmem:[%s8252_s12 + $0x28] sm:$0xff] (%p8651_p10) }
 0x569   : > { %v5910_v12 = vpop.eup %5909  ;;  %v4886_v62 = vsel %vm1527_vm1, %v4829_v42, %v4825_v31  ;;  %4967 = vst [vmem:[%s4916_s21 + $0x100] sm:$0xff] (%p8651_p10), %v4966_v19  ;;  %4969 = vst [vmem:[%s4916_s21 + $0x108] sm:$0xff] (%p8651_p10), %v4968_v2 }
 0x56a   : > { %v4739_v46 = vmul.f32 %v5910_v12, %v4580_v1  ;;  %v5912_v24 = vpop.eup %5911  ;;  %v4800_v44 = vpop.permute.xlu1 %4799 }
 0x56b   : > { %v4757_v61 = vmul.f32 %v5912_v24, %v4589_v39  ;;  %v4857_v3 = vrot.slane %v4800_v44, %v8649_v49 }
 0x56c   : > { %4817 = vperm.xlu0 %5658, %v4755_v43   ;;  %4793 = vperm.xlu1 %5657, %v4739_v46  }
 0x56d   : > { %v5914_v20 = vpop.eup %5913  ;;  %v4893_v48 = vsel %vm1527_vm1, %v4861_v9, %v4857_v3 }
 0x56e   : > { %v4741_v33 = vmul.f32 %v5914_v20, %v4581_v40 }
 0x570   : > { %4820 = vperm.xlu0 %5658, %v4757_v61   ;;  %4796 = vperm.xlu1 %5657, %v4741_v33  }
 0x5be   : > { %v4782_v22 = vpop.permute.xlu1 %4781 }
 0x5bf   : > { %v4833_v14 = vrot.slane %v4782_v22, %v8649_v49 }
 0x5c1   : > { %v4887_v58 = vsel %vm1529_vm2, %v4833_v14, %v4886_v62 }
 0x5db   : > { %v4806_v51 = vpop.permute.xlu0 %4805 }
 0x5dc   : > { %v4865_v54 = vrot.slane %v4806_v51, %v8649_v49 }
 0x5de   : > { %v4894_v56 = vsel %vm1529_vm2, %v4865_v54, %v4893_v48 }
 0x5df   : > { %v4809_v38 = vpop.permute.xlu0 %4808  ;;  %v4785_v0 = vpop.permute.xlu1 %4784 }
 0x5e0   : > { %v4869_v15 = vrot.slane %v4809_v38, %v8649_v49  ;;  %v4837_v47 = vrot.slane %v4785_v0, %v8649_v49 }
 0x5e2   : > { %v4895_v11 = vsel %vm1531_vm3, %v4869_v15, %v4894_v56  ;;  %v4888_v59 = vsel %vm1531_vm3, %v4837_v47, %v4887_v58 }
 0x5e3   : > { %v4812_v23 = vpop.permute.xlu0 %4811  ;;  %v4788_v7 = vpop.permute.xlu1 %4787 }
 0x5e4   : > { %v4873_v37 = vrot.slane %v4812_v23, %v8649_v49  ;;  %v4841_v45 = vrot.slane %v4788_v7, %v8649_v49 }
 0x5e6   : > { %v4896_v30 = vsel %vm1533_vm4, %v4873_v37, %v4895_v11  ;;  %v4889_v63 = vsel %vm1533_vm4, %v4841_v45, %v4888_v59 }
 0x5e7   : > { %v4815_v53 = vpop.permute.xlu0 %4814  ;;  %v4791_v50 = vpop.permute.xlu1 %4790 }
 0x5e8   : > { %v4877_v41 = vrot.slane %v4815_v53, %v8649_v49  ;;  %v4845_v6 = vrot.slane %v4791_v50, %v8649_v49 }
 0x5ea   : > { %v4897_v55 = vsel %vm1535_vm5, %v4877_v41, %v4896_v30  ;;  %v4890_v10 = vsel %vm1535_vm5, %v4845_v6, %v4889_v63 }
 0x5eb   : > { %v4818_v5 = vpop.permute.xlu0 %4817  ;;  %v4794_v26 = vpop.permute.xlu1 %4793 }
 0x5ec   : > { %v4881_v13 = vrot.slane %v4818_v5, %v8649_v49  ;;  %v4849_v35 = vrot.slane %v4794_v26, %v8649_v49 }
 0x5ed   : > { %4911 = sbr.rel (!%p8651_p10) target bundleno = 1532 (0x5fc), region = 68 }
 0x5ee   : > { %v4898_v60 = vsel %vm1537_vm6, %v4881_v13, %v4897_v55  ;;  %v4891_v34 = vsel %vm1537_vm6, %v4849_v35, %v4890_v10 }
 0x5ef   : > { %v4821_v36 = vpop.permute.xlu0 %4820  ;;  %v4797_v21 = vpop.permute.xlu1 %4796 }
 0x5f0   : > { %v4885_v27 = vrot.slane %v4821_v36, %v8649_v49  ;;  %v4853_v18 = vrot.slane %v4797_v21, %v8649_v49  ;;  %v4958_v49 = vld [vmem:[%s8252_s12] sm:$0xff] (%p8651_p10) }
 0x5f1   : > { %4959 = vst [vmem:[%s4916_s21] sm:$0xff] (%p8651_p10), %v4958_v49 }
 0x5f2   : > { %v4899_v28 = vsel %vm1539_vm7, %v4885_v27, %v4898_v60  ;;  %v4892_v4 = vsel %vm1539_vm7, %v4853_v18, %v4891_v34 }
 0x5f3   : > { %5252 = vst.msk [vmem:[%s8252_s12 + $0x38] sm:$0xff] %vm562_vm0, %v4899_v28  ;;  %5251 = vst.msk [vmem:[%s8252_s12 + $0x30] sm:$0xff] %vm562_vm0, %v4892_v4 }
 0x5fa   : > { %v4970_v8 = vld [vmem:[%s8252_s12 + $0x30] sm:$0xff]  ;;  %v4972_v1 = vld [vmem:[%s8252_s12 + $0x38] sm:$0xff] }
 0x5fb   : > { %4971 = vst [vmem:[%s4916_s21 + $0x180] sm:$0xff] %v4970_v8  ;;  %4973 = vst [vmem:[%s4916_s21 + $0x188] sm:$0xff] %v4972_v1 }
 0x5fc PF: > { %s23_s11 = sadd.s32 1, %s6071_s11   ;;  %s8653_s16 = sld [smem:[#allocation11_spill]] }
 0x5fd   : > { %p20_p4 = scmp.ge.s32.totalorder %s23_s11, 18   ;;  %s8654_s18 = sld [smem:[#allocation13_spill]] }
 0x5fe   : > { %s8655_s24 = smov %s6035_s25  ;;  %s8656_s25 = smov %s6039_s26 }
 0x5ff   : > { %s8657_s26 = smov %s6295_s7  ;;  %s8658_s27 = smov %s6047_s28 }
 0x600   : > { %s8659_s28 = smov %s6051_s29  ;;  %s8660_s29 = smov %s6292_s17 }
 0x601   : > { %s8661_s30 = smov %s6063_s9  ;;  %s8662_s8 = smov %s6067_s10 }
 0x602   : > { %s8663_s9 = smov %s8653_s16  ;;  %22 = sbr.rel (!%p20_p4) target bundleno = 16 (0x10), region = 168 }
 0x603   : > { %s8664_s10 = smov %s8654_s18 }
 0x609   :  { %4989 = vsyncpa [#allocation5], 1 }
 0x60a   :  { %4991 = vsyncpa [#allocation5 + $0x1], 1 }
 0x60b   :  { %4992 = vsyncpa [#allocation7], 1 }
 0x60c   :  { %4994 = vsyncpa [#allocation7 + $0x1], 1 }

</bundles_post_ra>
